<compile_context>
chip_gen: v7x
topology: tpu7x:2x2x1
jax: 0.10.0
libtpu: 0.0.40
codegen_flags: <defaults>
</compile_context>

<pallas_src>
import numpy as np
import jax
import jax.numpy as jnp
from jax import lax
from jax.experimental import pallas as pl
from jax.experimental.pallas import tpu as pltpu


# ----------------------------------------------------------------------------
# Fused kernel: one CIFAR-10 sample per grid step.
#
# Layouts (per sample):
#   input  x_ref[0] : (32, 128)  rows grouped by (row mod 4), lane = w*3 + ci
#   conv1  acc      : (7, 256)   rows = conv row 4t+c, lanes [0:84]=even ow,
#                                [128:212]=odd ow, both encoded co*14 + q
#   pool1  p1_even/odd : (7, 84) rows = pooled row p (even / odd), lane = c*14+q
#   conv2  acc      : (5, 256)   lanes [0:80]=even ow2, [128:208]=odd ow2 (co2*5+q2)
#   pool2  p2       : (5, 80)    rows = pooled h, lane = co2*5 + q2
#   fc     flatten is folded into the fc1 weight row order -> 5 small matmuls
# ----------------------------------------------------------------------------
def _lenet_kernel(x_ref, w1_ref, b1_ref, w2_ref, b2_ref,
                  wf1_ref, bf1_ref, wf2_ref, bf2_ref, wf3_ref, bf3_ref,
                  o_ref):
    f32 = jnp.float32

    # ---- conv1 (5x5, 3->6) + ReLU + 2x2 maxpool ------------------------------
    hp = []
    for c in range(4):                       # conv1 output rows h = 4t + c
        acc = None
        for kh in range(5):
            r = c + kh                       # needed input row = 4t + r
            start = 8 * (r % 4) + r // 4     # rows are pre-grouped by (row mod 4)
            lhs = x_ref[0, start:start + 7, :]                      # (7, 128)
            term = jnp.dot(lhs, w1_ref[kh], preferred_element_type=f32)
            acc = term if acc is None else acc + term               # (7, 256)
        # horizontal pool: max(even ow block, odd ow block)
        hp.append(jnp.maximum(acc[:, 0:84], acc[:, 128:212]))       # (7, 84)
    # vertical pool + bias + ReLU (relu/pool commute; bias constant per window)
    p1_even = jnp.maximum(jnp.maximum(hp[0], hp[1]) + b1_ref[...], 0.0)  # p = 0,2,..,12
    p1_odd = jnp.maximum(jnp.maximum(hp[2], hp[3]) + b1_ref[...], 0.0)   # p = 1,3,..,13

    # ---- conv2 (5x5, 6->16) + ReLU + 2x2 maxpool -----------------------------
    acc_e = None                             # conv2 rows 2*p2
    acc_o = None                             # conv2 rows 2*p2 + 1
    for kh in range(5):
        m, r = kh // 2, kh % 2
        w2k = w2_ref[kh]                                            # (84, 256)
        src_e = p1_even[m:m + 5, :] if r == 0 else p1_odd[m:m + 5, :]
        src_o = p1_odd[m:m + 5, :] if r == 0 else p1_even[m + 1:m + 6, :]
        te = jnp.dot(src_e, w2k, preferred_element_type=f32)
        to = jnp.dot(src_o, w2k, preferred_element_type=f32)
        acc_e = te if acc_e is None else acc_e + te
        acc_o = to if acc_o is None else acc_o + to
    h2 = jnp.maximum(jnp.maximum(acc_e[:, 0:80], acc_e[:, 128:208]),
                     jnp.maximum(acc_o[:, 0:80], acc_o[:, 128:208]))
    p2 = jnp.maximum(h2 + b2_ref[...], 0.0)                         # (5, 80)

    # ---- fc1 (NCHW flatten folded into weight rows) + fc2 + fc3 --------------
    y = bf1_ref[...]                                                # (1, 120)
    for h in range(5):
        y = y + jnp.dot(p2[h:h + 1, :], wf1_ref[h * 80:(h + 1) * 80, :],
                        preferred_element_type=f32)
    y = jnp.maximum(y, 0.0)
    y = jnp.maximum(jnp.dot(y, wf2_ref[...], preferred_element_type=f32)
                    + bf2_ref[...], 0.0)                            # (1, 84)
    y = jnp.dot(y, wf3_ref[...], preferred_element_type=f32) + bf3_ref[...]  # (1, 128)
    o_ref[0] = y


# ----------------------------------------------------------------------------
# Host-side packing of the PyTorch-style parameters into kernel matrices.
# ----------------------------------------------------------------------------
def prepare_params(p):
    w1 = np.asarray(jax.device_get(p["conv1_w"]), np.float32)   # (6, 3, 5, 5)
    w2 = np.asarray(jax.device_get(p["conv2_w"]), np.float32)   # (16, 6, 5, 5)

    # conv1 "shifted" matrices: (kh, in_lane = w*3+ci (padded to 128),
    #                            out_lane: [0:84]=even ow, [128:212]=odd ow)
    W1 = np.zeros((5, 128, 256), np.float32)
    for kh in range(5):
        for q in range(14):
            for kw in range(5):
                cols = np.arange(6) * 14 + q
                for ci in range(3):
                    W1[kh, (2 * q + kw) * 3 + ci, cols] = w1[:, ci, kh, kw]
                    W1[kh, (2 * q + 1 + kw) * 3 + ci, 128 + cols] = w1[:, ci, kh, kw]

    # conv2 matrices: rows = ci*14 + w (matches pool1 lane layout),
    #                 cols: [0:80]=even ow2, [128:208]=odd ow2, both co2*5+q2
    W2 = np.zeros((5, 84, 256), np.float32)
    for kh in range(5):
        for q in range(5):
            for kw in range(5):
                cols = np.arange(16) * 5 + q
                for ci in range(6):
                    W2[kh, ci * 14 + 2 * q + kw, cols] = w2[:, ci, kh, kw]
                    W2[kh, ci * 14 + 2 * q + 1 + kw, 128 + cols] = w2[:, ci, kh, kw]

    b1row = np.repeat(np.asarray(jax.device_get(p["conv1_b"]), np.float32), 14)
    b2row = np.repeat(np.asarray(jax.device_get(p["conv2_b"]), np.float32), 5)

    # fc1: reorder rows from PyTorch NCHW-flatten order (c*25 + h*5 + w) to the
    # kernel's (h*80 + c*5 + w) order so the flatten can stay implicit.
    wf1 = (p["fc1_w"].reshape(16, 5, 5, 120)
           .transpose(1, 0, 2, 3).reshape(400, 120).astype(jnp.float32))
    bf1 = p["fc1_b"].reshape(1, 120).astype(jnp.float32)
    wf2 = p["fc2_w"].astype(jnp.float32)
    bf2 = p["fc2_b"].reshape(1, 84).astype(jnp.float32)
    # fc3: pad output lanes 10 -> 128 so the final store is lane-dense.
    wf3 = jnp.pad(p["fc3_w"].astype(jnp.float32), ((0, 0), (0, 118)))
    bf3 = jnp.pad(p["fc3_b"].astype(jnp.float32), (0, 118)).reshape(1, 128)

    return (jnp.asarray(W1), jnp.asarray(b1row.reshape(1, 84)),
            jnp.asarray(W2), jnp.asarray(b2row.reshape(1, 80)),
            wf1, bf1, wf2, bf2, wf3, bf3)


_ROW_ORDER = np.concatenate([np.arange(c, 32, 4) for c in range(4)])


def prepare_input(x_nchw):
    """NCHW -> per-sample (32, 128) matrix: lane = w*3+ci (zero padded to 128),
    rows grouped by (row mod 4) so all in-kernel row windows are contiguous."""
    n = x_nchw.shape[0]
    x = jnp.transpose(x_nchw, (0, 2, 3, 1)).reshape(n, 32, 96)
    x = jnp.pad(x, ((0, 0), (0, 0), (0, 32)))
    return x[:, _ROW_ORDER, :]


def net_forward(x_nchw, p):
    n = x_nchw.shape[0]
    packed = prepare_params(p)
    x_pre = prepare_input(x_nchw)

    out = pl.pallas_call(
        _lenet_kernel,
        out_shape=jax.ShapeDtypeStruct((n, 1, 128), jnp.float32),
        grid=(n,),
        in_specs=[
            pl.BlockSpec((1, 32, 128), lambda s: (s, 0, 0)),    # input sample
            pl.BlockSpec((5, 128, 256), lambda s: (0, 0, 0)),   # conv1 mats
            pl.BlockSpec((1, 84), lambda s: (0, 0)),            # conv1 bias row
            pl.BlockSpec((5, 84, 256), lambda s: (0, 0, 0)),    # conv2 mats
            pl.BlockSpec((1, 80), lambda s: (0, 0)),            # conv2 bias row
            pl.BlockSpec((400, 120), lambda s: (0, 0)),         # fc1 w (reordered)
            pl.BlockSpec((1, 120), lambda s: (0, 0)),           # fc1 b
            pl.BlockSpec((120, 84), lambda s: (0, 0)),          # fc2 w
            pl.BlockSpec((1, 84), lambda s: (0, 0)),            # fc2 b
            pl.BlockSpec((84, 128), lambda s: (0, 0)),          # fc3 w (padded)
            pl.BlockSpec((1, 128), lambda s: (0, 0)),           # fc3 b (padded)
        ],
        out_specs=pl.BlockSpec((1, 1, 128), lambda s: (s, 0, 0)),
        compiler_params=pltpu.CompilerParams(
            dimension_semantics=("parallel",),
            vmem_limit_bytes=32 * 1024 * 1024,
        ),
    )(x_pre, *packed)
    return out.reshape(n, 128)[:, :10]


# ----------------------------------------------------------------------------
# Parameter init (PyTorch-like) and a pure-JAX reference for correctness.
# ----------------------------------------------------------------------------
def init_params(key):
    ks = jax.random.split(key, 10)

    def u(k, shape, fan_in):
        bound = 1.0 / float(np.sqrt(fan_in))
        return jax.random.uniform(k, shape, jnp.float32, -bound, bound)

    return dict(
        conv1_w=u(ks[0], (6, 3, 5, 5), 3 * 5 * 5),
        conv1_b=u(ks[1], (6,), 3 * 5 * 5),
        conv2_w=u(ks[2], (16, 6, 5, 5), 6 * 5 * 5),
        conv2_b=u(ks[3], (16,), 6 * 5 * 5),
        fc1_w=u(ks[4], (400, 120), 400),   # stored (in, out)
        fc1_b=u(ks[5], (120,), 400),
        fc2_w=u(ks[6], (120, 84), 120),
        fc2_b=u(ks[7], (84,), 120),
        fc3_w=u(ks[8], (84, 10), 84),
        fc3_b=u(ks[9], (10,), 84),
    )


def reference_forward(x, p):
    def conv(xx, w, b):
        y = lax.conv_general_dilated(
            xx, w, window_strides=(1, 1), padding="VALID",
            dimension_numbers=("NCHW", "OIHW", "NCHW"))
        return y + b[None, :, None, None]

    def pool(xx):
        return lax.reduce_window(xx, -jnp.inf, lax.max,
                                 (1, 1, 2, 2), (1, 1, 2, 2), "VALID")

    y = pool(jnp.maximum(conv(x, p["conv1_w"], p["conv1_b"]), 0.0))
    y = pool(jnp.maximum(conv(y, p["conv2_w"], p["conv2_b"]), 0.0))
    y = y.reshape(y.shape[0], -1)                       # NCHW flatten, like .view()
    y = jnp.maximum(y @ p["fc1_w"] + p["fc1_b"], 0.0)
    y = jnp.maximum(y @ p["fc2_w"] + p["fc2_b"], 0.0)
    return y @ p["fc3_w"] + p["fc3_b"]


if __name__ == "__main__":
    key = jax.random.PRNGKey(0)
    pkey, xkey = jax.random.split(key)
    params = init_params(pkey)
    x = jax.random.normal(xkey, (2, 3, 32, 32), jnp.float32)  # NCHW, like PyTorch

    out = net_forward(x, params)
    out = jax.block_until_ready(out)

    assert out.shape == (2, 10)
    ref = reference_forward(x, params)
    assert np.allclose(np.asarray(out), np.asarray(ref), rtol=2e-2, atol=2e-2)
    print("KERNEL_OK")
</pallas_src>

<mosaic_0001>
module attributes {stable_mosaic.version = 11 : i64} {
  func.func @_lenet_kernel(%arg0: i32, %arg1: memref<1x32x128xf32, #tpu.memory_space<vmem>>, %arg2: memref<5x128x256xf32, #tpu.memory_space<vmem>>, %arg3: memref<1x84xf32, #tpu.memory_space<vmem>>, %arg4: memref<5x84x256xf32, #tpu.memory_space<vmem>>, %arg5: memref<1x80xf32, #tpu.memory_space<vmem>>, %arg6: memref<400x120xf32, #tpu.memory_space<vmem>>, %arg7: memref<1x120xf32, #tpu.memory_space<vmem>>, %arg8: memref<120x84xf32, #tpu.memory_space<vmem>>, %arg9: memref<1x84xf32, #tpu.memory_space<vmem>>, %arg10: memref<84x128xf32, #tpu.memory_space<vmem>>, %arg11: memref<1x128xf32, #tpu.memory_space<vmem>>, %arg12: memref<1x1x128xf32, #tpu.memory_space<vmem>>) attributes {dimension_semantics = [#tpu.dimension_semantics<parallel>], iteration_bounds = array<i64: 2>, scalar_prefetch = 0 : i64, scratch_operands = 0 : i64, tpu.core_type = #tpu.core_type<tc>, window_params = [{transform_indices = @transform_0, window_bounds = array<i64: 1, 32, 128>}, {pipeline_mode = #tpu.pipeline_mode<synchronous>, transform_indices = @transform_1, window_bounds = array<i64: 5, 128, 256>}, {pipeline_mode = #tpu.pipeline_mode<synchronous>, transform_indices = @transform_2, window_bounds = array<i64: 1, 84>}, {pipeline_mode = #tpu.pipeline_mode<synchronous>, transform_indices = @transform_3, window_bounds = array<i64: 5, 84, 256>}, {pipeline_mode = #tpu.pipeline_mode<synchronous>, transform_indices = @transform_4, window_bounds = array<i64: 1, 80>}, {pipeline_mode = #tpu.pipeline_mode<synchronous>, transform_indices = @transform_5, window_bounds = array<i64: 400, 120>}, {pipeline_mode = #tpu.pipeline_mode<synchronous>, transform_indices = @transform_6, window_bounds = array<i64: 1, 120>}, {pipeline_mode = #tpu.pipeline_mode<synchronous>, transform_indices = @transform_7, window_bounds = array<i64: 120, 84>}, {pipeline_mode = #tpu.pipeline_mode<synchronous>, transform_indices = @transform_8, window_bounds = array<i64: 1, 84>}, {pipeline_mode = #tpu.pipeline_mode<synchronous>, transform_indices = @transform_9, window_bounds = array<i64: 84, 128>}, {pipeline_mode = #tpu.pipeline_mode<synchronous>, transform_indices = @transform_10, window_bounds = array<i64: 1, 128>}, {transform_indices = @transform_11, window_bounds = array<i64: 1, 1, 128>}]} {
    %c0 = arith.constant 0 : index
    %c0_0 = arith.constant 0 : index
    %c0_1 = arith.constant 0 : index
    %0 = vector.load %arg1[%c0, %c0_0, %c0_1] : memref<1x32x128xf32, #tpu.memory_space<vmem>>, vector<1x7x128xf32>
    %1 = vector.shape_cast %0 : vector<1x7x128xf32> to vector<7x128xf32>
    %c0_2 = arith.constant 0 : index
    %c0_3 = arith.constant 0 : index
    %c0_4 = arith.constant 0 : index
    %2 = vector.load %arg2[%c0_2, %c0_3, %c0_4] : memref<5x128x256xf32, #tpu.memory_space<vmem>>, vector<1x128x256xf32>
    %3 = vector.shape_cast %2 : vector<1x128x256xf32> to vector<128x256xf32>
    %cst = arith.constant dense<0.000000e+00> : vector<7x256xf32>
    %4 = tpu.matmul %1, %3, %cst {dimension_numbers = #tpu.dot_dimension_numbers<[1], [0], [0], [1], [0, 0, 1, 1], [], []>} : vector<7x128xf32>, vector<128x256xf32>, vector<7x256xf32> -> vector<7x256xf32>
    %c0_5 = arith.constant 0 : index
    %c8 = arith.constant 8 : index
    %c0_6 = arith.constant 0 : index
    %5 = vector.load %arg1[%c0_5, %c8, %c0_6] : memref<1x32x128xf32, #tpu.memory_space<vmem>>, vector<1x7x128xf32>
    %6 = vector.shape_cast %5 : vector<1x7x128xf32> to vector<7x128xf32>
    %c1 = arith.constant 1 : index
    %c0_7 = arith.constant 0 : index
    %c0_8 = arith.constant 0 : index
    %7 = vector.load %arg2[%c1, %c0_7, %c0_8] : memref<5x128x256xf32, #tpu.memory_space<vmem>>, vector<1x128x256xf32>
    %8 = vector.shape_cast %7 : vector<1x128x256xf32> to vector<128x256xf32>
    %cst_9 = arith.constant dense<0.000000e+00> : vector<7x256xf32>
    %9 = tpu.matmul %6, %8, %cst_9 {dimension_numbers = #tpu.dot_dimension_numbers<[1], [0], [0], [1], [0, 0, 1, 1], [], []>} : vector<7x128xf32>, vector<128x256xf32>, vector<7x256xf32> -> vector<7x256xf32>
    %10 = arith.addf %4, %9 : vector<7x256xf32>
    %c0_10 = arith.constant 0 : index
    %c16 = arith.constant 16 : index
    %c0_11 = arith.constant 0 : index
    %11 = vector.load %arg1[%c0_10, %c16, %c0_11] : memref<1x32x128xf32, #tpu.memory_space<vmem>>, vector<1x7x128xf32>
    %12 = vector.shape_cast %11 : vector<1x7x128xf32> to vector<7x128xf32>
    %c2 = arith.constant 2 : index
    %c0_12 = arith.constant 0 : index
    %c0_13 = arith.constant 0 : index
    %13 = vector.load %arg2[%c2, %c0_12, %c0_13] : memref<5x128x256xf32, #tpu.memory_space<vmem>>, vector<1x128x256xf32>
    %14 = vector.shape_cast %13 : vector<1x128x256xf32> to vector<128x256xf32>
    %cst_14 = arith.constant dense<0.000000e+00> : vector<7x256xf32>
    %15 = tpu.matmul %12, %14, %cst_14 {dimension_numbers = #tpu.dot_dimension_numbers<[1], [0], [0], [1], [0, 0, 1, 1], [], []>} : vector<7x128xf32>, vector<128x256xf32>, vector<7x256xf32> -> vector<7x256xf32>
    %16 = arith.addf %10, %15 : vector<7x256xf32>
    %c0_15 = arith.constant 0 : index
    %c24 = arith.constant 24 : index
    %c0_16 = arith.constant 0 : index
    %17 = vector.load %arg1[%c0_15, %c24, %c0_16] : memref<1x32x128xf32, #tpu.memory_space<vmem>>, vector<1x7x128xf32>
    %18 = vector.shape_cast %17 : vector<1x7x128xf32> to vector<7x128xf32>
    %c3 = arith.constant 3 : index
    %c0_17 = arith.constant 0 : index
    %c0_18 = arith.constant 0 : index
    %19 = vector.load %arg2[%c3, %c0_17, %c0_18] : memref<5x128x256xf32, #tpu.memory_space<vmem>>, vector<1x128x256xf32>
    %20 = vector.shape_cast %19 : vector<1x128x256xf32> to vector<128x256xf32>
    %cst_19 = arith.constant dense<0.000000e+00> : vector<7x256xf32>
    %21 = tpu.matmul %18, %20, %cst_19 {dimension_numbers = #tpu.dot_dimension_numbers<[1], [0], [0], [1], [0, 0, 1, 1], [], []>} : vector<7x128xf32>, vector<128x256xf32>, vector<7x256xf32> -> vector<7x256xf32>
    %22 = arith.addf %16, %21 : vector<7x256xf32>
    %c0_20 = arith.constant 0 : index
    %c1_21 = arith.constant 1 : index
    %c0_22 = arith.constant 0 : index
    %23 = vector.load %arg1[%c0_20, %c1_21, %c0_22] : memref<1x32x128xf32, #tpu.memory_space<vmem>>, vector<1x7x128xf32>
    %24 = vector.shape_cast %23 : vector<1x7x128xf32> to vector<7x128xf32>
    %c4 = arith.constant 4 : index
    %c0_23 = arith.constant 0 : index
    %c0_24 = arith.constant 0 : index
    %25 = vector.load %arg2[%c4, %c0_23, %c0_24] : memref<5x128x256xf32, #tpu.memory_space<vmem>>, vector<1x128x256xf32>
    %26 = vector.shape_cast %25 : vector<1x128x256xf32> to vector<128x256xf32>
    %cst_25 = arith.constant dense<0.000000e+00> : vector<7x256xf32>
    %27 = tpu.matmul %24, %26, %cst_25 {dimension_numbers = #tpu.dot_dimension_numbers<[1], [0], [0], [1], [0, 0, 1, 1], [], []>} : vector<7x128xf32>, vector<128x256xf32>, vector<7x256xf32> -> vector<7x256xf32>
    %28 = arith.addf %22, %27 : vector<7x256xf32>
    %29 = vector.extract_strided_slice %28 {offsets = [0, 0], sizes = [7, 84], strides = [1, 1]} : vector<7x256xf32> to vector<7x84xf32>
    %30 = vector.extract_strided_slice %28 {offsets = [0, 128], sizes = [7, 84], strides = [1, 1]} : vector<7x256xf32> to vector<7x84xf32>
    %31 = arith.maximumf %29, %30 : vector<7x84xf32>
    %c0_26 = arith.constant 0 : index
    %c8_27 = arith.constant 8 : index
    %c0_28 = arith.constant 0 : index
    %32 = vector.load %arg1[%c0_26, %c8_27, %c0_28] : memref<1x32x128xf32, #tpu.memory_space<vmem>>, vector<1x7x128xf32>
    %33 = vector.shape_cast %32 : vector<1x7x128xf32> to vector<7x128xf32>
    %c0_29 = arith.constant 0 : index
    %c0_30 = arith.constant 0 : index
    %c0_31 = arith.constant 0 : index
    %34 = vector.load %arg2[%c0_29, %c0_30, %c0_31] : memref<5x128x256xf32, #tpu.memory_space<vmem>>, vector<1x128x256xf32>
    %35 = vector.shape_cast %34 : vector<1x128x256xf32> to vector<128x256xf32>
    %cst_32 = arith.constant dense<0.000000e+00> : vector<7x256xf32>
    %36 = tpu.matmul %33, %35, %cst_32 {dimension_numbers = #tpu.dot_dimension_numbers<[1], [0], [0], [1], [0, 0, 1, 1], [], []>} : vector<7x128xf32>, vector<128x256xf32>, vector<7x256xf32> -> vector<7x256xf32>
    %c0_33 = arith.constant 0 : index
    %c16_34 = arith.constant 16 : index
    %c0_35 = arith.constant 0 : index
    %37 = vector.load %arg1[%c0_33, %c16_34, %c0_35] : memref<1x32x128xf32, #tpu.memory_space<vmem>>, vector<1x7x128xf32>
    %38 = vector.shape_cast %37 : vector<1x7x128xf32> to vector<7x128xf32>
    %c1_36 = arith.constant 1 : index
    %c0_37 = arith.constant 0 : index
    %c0_38 = arith.constant 0 : index
    %39 = vector.load %arg2[%c1_36, %c0_37, %c0_38] : memref<5x128x256xf32, #tpu.memory_space<vmem>>, vector<1x128x256xf32>
    %40 = vector.shape_cast %39 : vector<1x128x256xf32> to vector<128x256xf32>
    %cst_39 = arith.constant dense<0.000000e+00> : vector<7x256xf32>
    %41 = tpu.matmul %38, %40, %cst_39 {dimension_numbers = #tpu.dot_dimension_numbers<[1], [0], [0], [1], [0, 0, 1, 1], [], []>} : vector<7x128xf32>, vector<128x256xf32>, vector<7x256xf32> -> vector<7x256xf32>
    %42 = arith.addf %36, %41 : vector<7x256xf32>
    %c0_40 = arith.constant 0 : index
    %c24_41 = arith.constant 24 : index
    %c0_42 = arith.constant 0 : index
    %43 = vector.load %arg1[%c0_40, %c24_41, %c0_42] : memref<1x32x128xf32, #tpu.memory_space<vmem>>, vector<1x7x128xf32>
    %44 = vector.shape_cast %43 : vector<1x7x128xf32> to vector<7x128xf32>
    %c2_43 = arith.constant 2 : index
    %c0_44 = arith.constant 0 : index
    %c0_45 = arith.constant 0 : index
    %45 = vector.load %arg2[%c2_43, %c0_44, %c0_45] : memref<5x128x256xf32, #tpu.memory_space<vmem>>, vector<1x128x256xf32>
    %46 = vector.shape_cast %45 : vector<1x128x256xf32> to vector<128x256xf32>
    %cst_46 = arith.constant dense<0.000000e+00> : vector<7x256xf32>
    %47 = tpu.matmul %44, %46, %cst_46 {dimension_numbers = #tpu.dot_dimension_numbers<[1], [0], [0], [1], [0, 0, 1, 1], [], []>} : vector<7x128xf32>, vector<128x256xf32>, vector<7x256xf32> -> vector<7x256xf32>
    %48 = arith.addf %42, %47 : vector<7x256xf32>
    %c0_47 = arith.constant 0 : index
    %c1_48 = arith.constant 1 : index
    %c0_49 = arith.constant 0 : index
    %49 = vector.load %arg1[%c0_47, %c1_48, %c0_49] : memref<1x32x128xf32, #tpu.memory_space<vmem>>, vector<1x7x128xf32>
    %50 = vector.shape_cast %49 : vector<1x7x128xf32> to vector<7x128xf32>
    %c3_50 = arith.constant 3 : index
    %c0_51 = arith.constant 0 : index
    %c0_52 = arith.constant 0 : index
    %51 = vector.load %arg2[%c3_50, %c0_51, %c0_52] : memref<5x128x256xf32, #tpu.memory_space<vmem>>, vector<1x128x256xf32>
    %52 = vector.shape_cast %51 : vector<1x128x256xf32> to vector<128x256xf32>
    %cst_53 = arith.constant dense<0.000000e+00> : vector<7x256xf32>
    %53 = tpu.matmul %50, %52, %cst_53 {dimension_numbers = #tpu.dot_dimension_numbers<[1], [0], [0], [1], [0, 0, 1, 1], [], []>} : vector<7x128xf32>, vector<128x256xf32>, vector<7x256xf32> -> vector<7x256xf32>
    %54 = arith.addf %48, %53 : vector<7x256xf32>
    %c0_54 = arith.constant 0 : index
    %c9 = arith.constant 9 : index
    %c0_55 = arith.constant 0 : index
    %55 = vector.load %arg1[%c0_54, %c9, %c0_55] : memref<1x32x128xf32, #tpu.memory_space<vmem>>, vector<1x7x128xf32>
    %56 = vector.shape_cast %55 : vector<1x7x128xf32> to vector<7x128xf32>
    %c4_56 = arith.constant 4 : index
    %c0_57 = arith.constant 0 : index
    %c0_58 = arith.constant 0 : index
    %57 = vector.load %arg2[%c4_56, %c0_57, %c0_58] : memref<5x128x256xf32, #tpu.memory_space<vmem>>, vector<1x128x256xf32>
    %58 = vector.shape_cast %57 : vector<1x128x256xf32> to vector<128x256xf32>
    %cst_59 = arith.constant dense<0.000000e+00> : vector<7x256xf32>
    %59 = tpu.matmul %56, %58, %cst_59 {dimension_numbers = #tpu.dot_dimension_numbers<[1], [0], [0], [1], [0, 0, 1, 1], [], []>} : vector<7x128xf32>, vector<128x256xf32>, vector<7x256xf32> -> vector<7x256xf32>
    %60 = arith.addf %54, %59 : vector<7x256xf32>
    %61 = vector.extract_strided_slice %60 {offsets = [0, 0], sizes = [7, 84], strides = [1, 1]} : vector<7x256xf32> to vector<7x84xf32>
    %62 = vector.extract_strided_slice %60 {offsets = [0, 128], sizes = [7, 84], strides = [1, 1]} : vector<7x256xf32> to vector<7x84xf32>
    %63 = arith.maximumf %61, %62 : vector<7x84xf32>
    %c0_60 = arith.constant 0 : index
    %c16_61 = arith.constant 16 : index
    %c0_62 = arith.constant 0 : index
    %64 = vector.load %arg1[%c0_60, %c16_61, %c0_62] : memref<1x32x128xf32, #tpu.memory_space<vmem>>, vector<1x7x128xf32>
    %65 = vector.shape_cast %64 : vector<1x7x128xf32> to vector<7x128xf32>
    %c0_63 = arith.constant 0 : index
    %c0_64 = arith.constant 0 : index
    %c0_65 = arith.constant 0 : index
    %66 = vector.load %arg2[%c0_63, %c0_64, %c0_65] : memref<5x128x256xf32, #tpu.memory_space<vmem>>, vector<1x128x256xf32>
    %67 = vector.shape_cast %66 : vector<1x128x256xf32> to vector<128x256xf32>
    %cst_66 = arith.constant dense<0.000000e+00> : vector<7x256xf32>
    %68 = tpu.matmul %65, %67, %cst_66 {dimension_numbers = #tpu.dot_dimension_numbers<[1], [0], [0], [1], [0, 0, 1, 1], [], []>} : vector<7x128xf32>, vector<128x256xf32>, vector<7x256xf32> -> vector<7x256xf32>
    %c0_67 = arith.constant 0 : index
    %c24_68 = arith.constant 24 : index
    %c0_69 = arith.constant 0 : index
    %69 = vector.load %arg1[%c0_67, %c24_68, %c0_69] : memref<1x32x128xf32, #tpu.memory_space<vmem>>, vector<1x7x128xf32>
    %70 = vector.shape_cast %69 : vector<1x7x128xf32> to vector<7x128xf32>
    %c1_70 = arith.constant 1 : index
    %c0_71 = arith.constant 0 : index
    %c0_72 = arith.constant 0 : index
    %71 = vector.load %arg2[%c1_70, %c0_71, %c0_72] : memref<5x128x256xf32, #tpu.memory_space<vmem>>, vector<1x128x256xf32>
    %72 = vector.shape_cast %71 : vector<1x128x256xf32> to vector<128x256xf32>
    %cst_73 = arith.constant dense<0.000000e+00> : vector<7x256xf32>
    %73 = tpu.matmul %70, %72, %cst_73 {dimension_numbers = #tpu.dot_dimension_numbers<[1], [0], [0], [1], [0, 0, 1, 1], [], []>} : vector<7x128xf32>, vector<128x256xf32>, vector<7x256xf32> -> vector<7x256xf32>
    %74 = arith.addf %68, %73 : vector<7x256xf32>
    %c0_74 = arith.constant 0 : index
    %c1_75 = arith.constant 1 : index
    %c0_76 = arith.constant 0 : index
    %75 = vector.load %arg1[%c0_74, %c1_75, %c0_76] : memref<1x32x128xf32, #tpu.memory_space<vmem>>, vector<1x7x128xf32>
    %76 = vector.shape_cast %75 : vector<1x7x128xf32> to vector<7x128xf32>
    %c2_77 = arith.constant 2 : index
    %c0_78 = arith.constant 0 : index
    %c0_79 = arith.constant 0 : index
    %77 = vector.load %arg2[%c2_77, %c0_78, %c0_79] : memref<5x128x256xf32, #tpu.memory_space<vmem>>, vector<1x128x256xf32>
    %78 = vector.shape_cast %77 : vector<1x128x256xf32> to vector<128x256xf32>
    %cst_80 = arith.constant dense<0.000000e+00> : vector<7x256xf32>
    %79 = tpu.matmul %76, %78, %cst_80 {dimension_numbers = #tpu.dot_dimension_numbers<[1], [0], [0], [1], [0, 0, 1, 1], [], []>} : vector<7x128xf32>, vector<128x256xf32>, vector<7x256xf32> -> vector<7x256xf32>
    %80 = arith.addf %74, %79 : vector<7x256xf32>
    %c0_81 = arith.constant 0 : index
    %c9_82 = arith.constant 9 : index
    %c0_83 = arith.constant 0 : index
    %81 = vector.load %arg1[%c0_81, %c9_82, %c0_83] : memref<1x32x128xf32, #tpu.memory_space<vmem>>, vector<1x7x128xf32>
    %82 = vector.shape_cast %81 : vector<1x7x128xf32> to vector<7x128xf32>
    %c3_84 = arith.constant 3 : index
    %c0_85 = arith.constant 0 : index
    %c0_86 = arith.constant 0 : index
    %83 = vector.load %arg2[%c3_84, %c0_85, %c0_86] : memref<5x128x256xf32, #tpu.memory_space<vmem>>, vector<1x128x256xf32>
    %84 = vector.shape_cast %83 : vector<1x128x256xf32> to vector<128x256xf32>
    %cst_87 = arith.constant dense<0.000000e+00> : vector<7x256xf32>
    %85 = tpu.matmul %82, %84, %cst_87 {dimension_numbers = #tpu.dot_dimension_numbers<[1], [0], [0], [1], [0, 0, 1, 1], [], []>} : vector<7x128xf32>, vector<128x256xf32>, vector<7x256xf32> -> vector<7x256xf32>
    %86 = arith.addf %80, %85 : vector<7x256xf32>
    %c0_88 = arith.constant 0 : index
    %c17 = arith.constant 17 : index
    %c0_89 = arith.constant 0 : index
    %87 = vector.load %arg1[%c0_88, %c17, %c0_89] : memref<1x32x128xf32, #tpu.memory_space<vmem>>, vector<1x7x128xf32>
    %88 = vector.shape_cast %87 : vector<1x7x128xf32> to vector<7x128xf32>
    %c4_90 = arith.constant 4 : index
    %c0_91 = arith.constant 0 : index
    %c0_92 = arith.constant 0 : index
    %89 = vector.load %arg2[%c4_90, %c0_91, %c0_92] : memref<5x128x256xf32, #tpu.memory_space<vmem>>, vector<1x128x256xf32>
    %90 = vector.shape_cast %89 : vector<1x128x256xf32> to vector<128x256xf32>
    %cst_93 = arith.constant dense<0.000000e+00> : vector<7x256xf32>
    %91 = tpu.matmul %88, %90, %cst_93 {dimension_numbers = #tpu.dot_dimension_numbers<[1], [0], [0], [1], [0, 0, 1, 1], [], []>} : vector<7x128xf32>, vector<128x256xf32>, vector<7x256xf32> -> vector<7x256xf32>
    %92 = arith.addf %86, %91 : vector<7x256xf32>
    %93 = vector.extract_strided_slice %92 {offsets = [0, 0], sizes = [7, 84], strides = [1, 1]} : vector<7x256xf32> to vector<7x84xf32>
    %94 = vector.extract_strided_slice %92 {offsets = [0, 128], sizes = [7, 84], strides = [1, 1]} : vector<7x256xf32> to vector<7x84xf32>
    %95 = arith.maximumf %93, %94 : vector<7x84xf32>
    %c0_94 = arith.constant 0 : index
    %c24_95 = arith.constant 24 : index
    %c0_96 = arith.constant 0 : index
    %96 = vector.load %arg1[%c0_94, %c24_95, %c0_96] : memref<1x32x128xf32, #tpu.memory_space<vmem>>, vector<1x7x128xf32>
    %97 = vector.shape_cast %96 : vector<1x7x128xf32> to vector<7x128xf32>
    %c0_97 = arith.constant 0 : index
    %c0_98 = arith.constant 0 : index
    %c0_99 = arith.constant 0 : index
    %98 = vector.load %arg2[%c0_97, %c0_98, %c0_99] : memref<5x128x256xf32, #tpu.memory_space<vmem>>, vector<1x128x256xf32>
    %99 = vector.shape_cast %98 : vector<1x128x256xf32> to vector<128x256xf32>
    %cst_100 = arith.constant dense<0.000000e+00> : vector<7x256xf32>
    %100 = tpu.matmul %97, %99, %cst_100 {dimension_numbers = #tpu.dot_dimension_numbers<[1], [0], [0], [1], [0, 0, 1, 1], [], []>} : vector<7x128xf32>, vector<128x256xf32>, vector<7x256xf32> -> vector<7x256xf32>
    %c0_101 = arith.constant 0 : index
    %c1_102 = arith.constant 1 : index
    %c0_103 = arith.constant 0 : index
    %101 = vector.load %arg1[%c0_101, %c1_102, %c0_103] : memref<1x32x128xf32, #tpu.memory_space<vmem>>, vector<1x7x128xf32>
    %102 = vector.shape_cast %101 : vector<1x7x128xf32> to vector<7x128xf32>
    %c1_104 = arith.constant 1 : index
    %c0_105 = arith.constant 0 : index
    %c0_106 = arith.constant 0 : index
    %103 = vector.load %arg2[%c1_104, %c0_105, %c0_106] : memref<5x128x256xf32, #tpu.memory_space<vmem>>, vector<1x128x256xf32>
    %104 = vector.shape_cast %103 : vector<1x128x256xf32> to vector<128x256xf32>
    %cst_107 = arith.constant dense<0.000000e+00> : vector<7x256xf32>
    %105 = tpu.matmul %102, %104, %cst_107 {dimension_numbers = #tpu.dot_dimension_numbers<[1], [0], [0], [1], [0, 0, 1, 1], [], []>} : vector<7x128xf32>, vector<128x256xf32>, vector<7x256xf32> -> vector<7x256xf32>
    %106 = arith.addf %100, %105 : vector<7x256xf32>
    %c0_108 = arith.constant 0 : index
    %c9_109 = arith.constant 9 : index
    %c0_110 = arith.constant 0 : index
    %107 = vector.load %arg1[%c0_108, %c9_109, %c0_110] : memref<1x32x128xf32, #tpu.memory_space<vmem>>, vector<1x7x128xf32>
    %108 = vector.shape_cast %107 : vector<1x7x128xf32> to vector<7x128xf32>
    %c2_111 = arith.constant 2 : index
    %c0_112 = arith.constant 0 : index
    %c0_113 = arith.constant 0 : index
    %109 = vector.load %arg2[%c2_111, %c0_112, %c0_113] : memref<5x128x256xf32, #tpu.memory_space<vmem>>, vector<1x128x256xf32>
    %110 = vector.shape_cast %109 : vector<1x128x256xf32> to vector<128x256xf32>
    %cst_114 = arith.constant dense<0.000000e+00> : vector<7x256xf32>
    %111 = tpu.matmul %108, %110, %cst_114 {dimension_numbers = #tpu.dot_dimension_numbers<[1], [0], [0], [1], [0, 0, 1, 1], [], []>} : vector<7x128xf32>, vector<128x256xf32>, vector<7x256xf32> -> vector<7x256xf32>
    %112 = arith.addf %106, %111 : vector<7x256xf32>
    %c0_115 = arith.constant 0 : index
    %c17_116 = arith.constant 17 : index
    %c0_117 = arith.constant 0 : index
    %113 = vector.load %arg1[%c0_115, %c17_116, %c0_117] : memref<1x32x128xf32, #tpu.memory_space<vmem>>, vector<1x7x128xf32>
    %114 = vector.shape_cast %113 : vector<1x7x128xf32> to vector<7x128xf32>
    %c3_118 = arith.constant 3 : index
    %c0_119 = arith.constant 0 : index
    %c0_120 = arith.constant 0 : index
    %115 = vector.load %arg2[%c3_118, %c0_119, %c0_120] : memref<5x128x256xf32, #tpu.memory_space<vmem>>, vector<1x128x256xf32>
    %116 = vector.shape_cast %115 : vector<1x128x256xf32> to vector<128x256xf32>
    %cst_121 = arith.constant dense<0.000000e+00> : vector<7x256xf32>
    %117 = tpu.matmul %114, %116, %cst_121 {dimension_numbers = #tpu.dot_dimension_numbers<[1], [0], [0], [1], [0, 0, 1, 1], [], []>} : vector<7x128xf32>, vector<128x256xf32>, vector<7x256xf32> -> vector<7x256xf32>
    %118 = arith.addf %112, %117 : vector<7x256xf32>
    %c0_122 = arith.constant 0 : index
    %c25 = arith.constant 25 : index
    %c0_123 = arith.constant 0 : index
    %119 = vector.load %arg1[%c0_122, %c25, %c0_123] : memref<1x32x128xf32, #tpu.memory_space<vmem>>, vector<1x7x128xf32>
    %120 = vector.shape_cast %119 : vector<1x7x128xf32> to vector<7x128xf32>
    %c4_124 = arith.constant 4 : index
    %c0_125 = arith.constant 0 : index
    %c0_126 = arith.constant 0 : index
    %121 = vector.load %arg2[%c4_124, %c0_125, %c0_126] : memref<5x128x256xf32, #tpu.memory_space<vmem>>, vector<1x128x256xf32>
    %122 = vector.shape_cast %121 : vector<1x128x256xf32> to vector<128x256xf32>
    %cst_127 = arith.constant dense<0.000000e+00> : vector<7x256xf32>
    %123 = tpu.matmul %120, %122, %cst_127 {dimension_numbers = #tpu.dot_dimension_numbers<[1], [0], [0], [1], [0, 0, 1, 1], [], []>} : vector<7x128xf32>, vector<128x256xf32>, vector<7x256xf32> -> vector<7x256xf32>
    %124 = arith.addf %118, %123 : vector<7x256xf32>
    %125 = vector.extract_strided_slice %124 {offsets = [0, 0], sizes = [7, 84], strides = [1, 1]} : vector<7x256xf32> to vector<7x84xf32>
    %126 = vector.extract_strided_slice %124 {offsets = [0, 128], sizes = [7, 84], strides = [1, 1]} : vector<7x256xf32> to vector<7x84xf32>
    %127 = arith.maximumf %125, %126 : vector<7x84xf32>
    %128 = arith.maximumf %31, %63 : vector<7x84xf32>
    %c0_128 = arith.constant 0 : index
    %c0_129 = arith.constant 0 : index
    %129 = vector.load %arg3[%c0_128, %c0_129] : memref<1x84xf32, #tpu.memory_space<vmem>>, vector<1x84xf32>
    %130 = vector.broadcast %129 : vector<1x84xf32> to vector<7x84xf32>
    %131 = arith.addf %128, %130 : vector<7x84xf32>
    %cst_130 = arith.constant 0.000000e+00 : f32
    %132 = vector.broadcast %cst_130 : f32 to vector<7x84xf32>
    %133 = arith.maximumf %131, %132 : vector<7x84xf32>
    %134 = arith.maximumf %95, %127 : vector<7x84xf32>
    %c0_131 = arith.constant 0 : index
    %c0_132 = arith.constant 0 : index
    %135 = vector.load %arg3[%c0_131, %c0_132] : memref<1x84xf32, #tpu.memory_space<vmem>>, vector<1x84xf32>
    %136 = vector.broadcast %135 : vector<1x84xf32> to vector<7x84xf32>
    %137 = arith.addf %134, %136 : vector<7x84xf32>
    %cst_133 = arith.constant 0.000000e+00 : f32
    %138 = vector.broadcast %cst_133 : f32 to vector<7x84xf32>
    %139 = arith.maximumf %137, %138 : vector<7x84xf32>
    %c0_134 = arith.constant 0 : index
    %c0_135 = arith.constant 0 : index
    %c0_136 = arith.constant 0 : index
    %140 = vector.load %arg4[%c0_134, %c0_135, %c0_136] : memref<5x84x256xf32, #tpu.memory_space<vmem>>, vector<1x84x256xf32>
    %141 = vector.shape_cast %140 : vector<1x84x256xf32> to vector<84x256xf32>
    %142 = vector.extract_strided_slice %133 {offsets = [0, 0], sizes = [5, 84], strides = [1, 1]} : vector<7x84xf32> to vector<5x84xf32>
    %143 = vector.extract_strided_slice %139 {offsets = [0, 0], sizes = [5, 84], strides = [1, 1]} : vector<7x84xf32> to vector<5x84xf32>
    %cst_137 = arith.constant dense<0.000000e+00> : vector<5x256xf32>
    %144 = tpu.matmul %142, %141, %cst_137 {dimension_numbers = #tpu.dot_dimension_numbers<[1], [0], [0], [1], [0, 0, 1, 1], [], []>} : vector<5x84xf32>, vector<84x256xf32>, vector<5x256xf32> -> vector<5x256xf32>
    %cst_138 = arith.constant dense<0.000000e+00> : vector<5x256xf32>
    %145 = tpu.matmul %143, %141, %cst_138 {dimension_numbers = #tpu.dot_dimension_numbers<[1], [0], [0], [1], [0, 0, 1, 1], [], []>} : vector<5x84xf32>, vector<84x256xf32>, vector<5x256xf32> -> vector<5x256xf32>
    %c1_139 = arith.constant 1 : index
    %c0_140 = arith.constant 0 : index
    %c0_141 = arith.constant 0 : index
    %146 = vector.load %arg4[%c1_139, %c0_140, %c0_141] : memref<5x84x256xf32, #tpu.memory_space<vmem>>, vector<1x84x256xf32>
    %147 = vector.shape_cast %146 : vector<1x84x256xf32> to vector<84x256xf32>
    %148 = vector.extract_strided_slice %139 {offsets = [0, 0], sizes = [5, 84], strides = [1, 1]} : vector<7x84xf32> to vector<5x84xf32>
    %149 = vector.extract_strided_slice %133 {offsets = [1, 0], sizes = [5, 84], strides = [1, 1]} : vector<7x84xf32> to vector<5x84xf32>
    %cst_142 = arith.constant dense<0.000000e+00> : vector<5x256xf32>
    %150 = tpu.matmul %148, %147, %cst_142 {dimension_numbers = #tpu.dot_dimension_numbers<[1], [0], [0], [1], [0, 0, 1, 1], [], []>} : vector<5x84xf32>, vector<84x256xf32>, vector<5x256xf32> -> vector<5x256xf32>
    %cst_143 = arith.constant dense<0.000000e+00> : vector<5x256xf32>
    %151 = tpu.matmul %149, %147, %cst_143 {dimension_numbers = #tpu.dot_dimension_numbers<[1], [0], [0], [1], [0, 0, 1, 1], [], []>} : vector<5x84xf32>, vector<84x256xf32>, vector<5x256xf32> -> vector<5x256xf32>
    %152 = arith.addf %144, %150 : vector<5x256xf32>
    %153 = arith.addf %145, %151 : vector<5x256xf32>
    %c2_144 = arith.constant 2 : index
    %c0_145 = arith.constant 0 : index
    %c0_146 = arith.constant 0 : index
    %154 = vector.load %arg4[%c2_144, %c0_145, %c0_146] : memref<5x84x256xf32, #tpu.memory_space<vmem>>, vector<1x84x256xf32>
    %155 = vector.shape_cast %154 : vector<1x84x256xf32> to vector<84x256xf32>
    %156 = vector.extract_strided_slice %133 {offsets = [1, 0], sizes = [5, 84], strides = [1, 1]} : vector<7x84xf32> to vector<5x84xf32>
    %157 = vector.extract_strided_slice %139 {offsets = [1, 0], sizes = [5, 84], strides = [1, 1]} : vector<7x84xf32> to vector<5x84xf32>
    %cst_147 = arith.constant dense<0.000000e+00> : vector<5x256xf32>
    %158 = tpu.matmul %156, %155, %cst_147 {dimension_numbers = #tpu.dot_dimension_numbers<[1], [0], [0], [1], [0, 0, 1, 1], [], []>} : vector<5x84xf32>, vector<84x256xf32>, vector<5x256xf32> -> vector<5x256xf32>
    %cst_148 = arith.constant dense<0.000000e+00> : vector<5x256xf32>
    %159 = tpu.matmul %157, %155, %cst_148 {dimension_numbers = #tpu.dot_dimension_numbers<[1], [0], [0], [1], [0, 0, 1, 1], [], []>} : vector<5x84xf32>, vector<84x256xf32>, vector<5x256xf32> -> vector<5x256xf32>
    %160 = arith.addf %152, %158 : vector<5x256xf32>
    %161 = arith.addf %153, %159 : vector<5x256xf32>
    %c3_149 = arith.constant 3 : index
    %c0_150 = arith.constant 0 : index
    %c0_151 = arith.constant 0 : index
    %162 = vector.load %arg4[%c3_149, %c0_150, %c0_151] : memref<5x84x256xf32, #tpu.memory_space<vmem>>, vector<1x84x256xf32>
    %163 = vector.shape_cast %162 : vector<1x84x256xf32> to vector<84x256xf32>
    %164 = vector.extract_strided_slice %139 {offsets = [1, 0], sizes = [5, 84], strides = [1, 1]} : vector<7x84xf32> to vector<5x84xf32>
    %165 = vector.extract_strided_slice %133 {offsets = [2, 0], sizes = [5, 84], strides = [1, 1]} : vector<7x84xf32> to vector<5x84xf32>
    %cst_152 = arith.constant dense<0.000000e+00> : vector<5x256xf32>
    %166 = tpu.matmul %164, %163, %cst_152 {dimension_numbers = #tpu.dot_dimension_numbers<[1], [0], [0], [1], [0, 0, 1, 1], [], []>} : vector<5x84xf32>, vector<84x256xf32>, vector<5x256xf32> -> vector<5x256xf32>
    %cst_153 = arith.constant dense<0.000000e+00> : vector<5x256xf32>
    %167 = tpu.matmul %165, %163, %cst_153 {dimension_numbers = #tpu.dot_dimension_numbers<[1], [0], [0], [1], [0, 0, 1, 1], [], []>} : vector<5x84xf32>, vector<84x256xf32>, vector<5x256xf32> -> vector<5x256xf32>
    %168 = arith.addf %160, %166 : vector<5x256xf32>
    %169 = arith.addf %161, %167 : vector<5x256xf32>
    %c4_154 = arith.constant 4 : index
    %c0_155 = arith.constant 0 : index
    %c0_156 = arith.constant 0 : index
    %170 = vector.load %arg4[%c4_154, %c0_155, %c0_156] : memref<5x84x256xf32, #tpu.memory_space<vmem>>, vector<1x84x256xf32>
    %171 = vector.shape_cast %170 : vector<1x84x256xf32> to vector<84x256xf32>
    %172 = vector.extract_strided_slice %133 {offsets = [2, 0], sizes = [5, 84], strides = [1, 1]} : vector<7x84xf32> to vector<5x84xf32>
    %173 = vector.extract_strided_slice %139 {offsets = [2, 0], sizes = [5, 84], strides = [1, 1]} : vector<7x84xf32> to vector<5x84xf32>
    %cst_157 = arith.constant dense<0.000000e+00> : vector<5x256xf32>
    %174 = tpu.matmul %172, %171, %cst_157 {dimension_numbers = #tpu.dot_dimension_numbers<[1], [0], [0], [1], [0, 0, 1, 1], [], []>} : vector<5x84xf32>, vector<84x256xf32>, vector<5x256xf32> -> vector<5x256xf32>
    %cst_158 = arith.constant dense<0.000000e+00> : vector<5x256xf32>
    %175 = tpu.matmul %173, %171, %cst_158 {dimension_numbers = #tpu.dot_dimension_numbers<[1], [0], [0], [1], [0, 0, 1, 1], [], []>} : vector<5x84xf32>, vector<84x256xf32>, vector<5x256xf32> -> vector<5x256xf32>
    %176 = arith.addf %168, %174 : vector<5x256xf32>
    %177 = arith.addf %169, %175 : vector<5x256xf32>
    %178 = vector.extract_strided_slice %176 {offsets = [0, 0], sizes = [5, 80], strides = [1, 1]} : vector<5x256xf32> to vector<5x80xf32>
    %179 = vector.extract_strided_slice %176 {offsets = [0, 128], sizes = [5, 80], strides = [1, 1]} : vector<5x256xf32> to vector<5x80xf32>
    %180 = arith.maximumf %178, %179 : vector<5x80xf32>
    %181 = vector.extract_strided_slice %177 {offsets = [0, 0], sizes = [5, 80], strides = [1, 1]} : vector<5x256xf32> to vector<5x80xf32>
    %182 = vector.extract_strided_slice %177 {offsets = [0, 128], sizes = [5, 80], strides = [1, 1]} : vector<5x256xf32> to vector<5x80xf32>
    %183 = arith.maximumf %181, %182 : vector<5x80xf32>
    %184 = arith.maximumf %180, %183 : vector<5x80xf32>
    %c0_159 = arith.constant 0 : index
    %c0_160 = arith.constant 0 : index
    %185 = vector.load %arg5[%c0_159, %c0_160] : memref<1x80xf32, #tpu.memory_space<vmem>>, vector<1x80xf32>
    %186 = vector.broadcast %185 : vector<1x80xf32> to vector<5x80xf32>
    %187 = arith.addf %184, %186 : vector<5x80xf32>
    %cst_161 = arith.constant 0.000000e+00 : f32
    %188 = vector.broadcast %cst_161 : f32 to vector<5x80xf32>
    %189 = arith.maximumf %187, %188 : vector<5x80xf32>
    %c0_162 = arith.constant 0 : index
    %c0_163 = arith.constant 0 : index
    %190 = vector.load %arg7[%c0_162, %c0_163] : memref<1x120xf32, #tpu.memory_space<vmem>>, vector<1x120xf32>
    %191 = vector.extract_strided_slice %189 {offsets = [0, 0], sizes = [1, 80], strides = [1, 1]} : vector<5x80xf32> to vector<1x80xf32>
    %c0_164 = arith.constant 0 : index
    %c0_165 = arith.constant 0 : index
    %192 = vector.load %arg6[%c0_164, %c0_165] : memref<400x120xf32, #tpu.memory_space<vmem>>, vector<80x120xf32>
    %cst_166 = arith.constant dense<0.000000e+00> : vector<1x120xf32>
    %193 = tpu.matmul %191, %192, %cst_166 {dimension_numbers = #tpu.dot_dimension_numbers<[1], [0], [0], [1], [0, 0, 1, 1], [], []>} : vector<1x80xf32>, vector<80x120xf32>, vector<1x120xf32> -> vector<1x120xf32>
    %194 = arith.addf %190, %193 : vector<1x120xf32>
    %195 = vector.extract_strided_slice %189 {offsets = [1, 0], sizes = [1, 80], strides = [1, 1]} : vector<5x80xf32> to vector<1x80xf32>
    %c80 = arith.constant 80 : index
    %c0_167 = arith.constant 0 : index
    %196 = vector.load %arg6[%c80, %c0_167] : memref<400x120xf32, #tpu.memory_space<vmem>>, vector<80x120xf32>
    %cst_168 = arith.constant dense<0.000000e+00> : vector<1x120xf32>
    %197 = tpu.matmul %195, %196, %cst_168 {dimension_numbers = #tpu.dot_dimension_numbers<[1], [0], [0], [1], [0, 0, 1, 1], [], []>} : vector<1x80xf32>, vector<80x120xf32>, vector<1x120xf32> -> vector<1x120xf32>
    %198 = arith.addf %194, %197 : vector<1x120xf32>
    %199 = vector.extract_strided_slice %189 {offsets = [2, 0], sizes = [1, 80], strides = [1, 1]} : vector<5x80xf32> to vector<1x80xf32>
    %c160 = arith.constant 160 : index
    %c0_169 = arith.constant 0 : index
    %200 = vector.load %arg6[%c160, %c0_169] : memref<400x120xf32, #tpu.memory_space<vmem>>, vector<80x120xf32>
    %cst_170 = arith.constant dense<0.000000e+00> : vector<1x120xf32>
    %201 = tpu.matmul %199, %200, %cst_170 {dimension_numbers = #tpu.dot_dimension_numbers<[1], [0], [0], [1], [0, 0, 1, 1], [], []>} : vector<1x80xf32>, vector<80x120xf32>, vector<1x120xf32> -> vector<1x120xf32>
    %202 = arith.addf %198, %201 : vector<1x120xf32>
    %203 = vector.extract_strided_slice %189 {offsets = [3, 0], sizes = [1, 80], strides = [1, 1]} : vector<5x80xf32> to vector<1x80xf32>
    %c240 = arith.constant 240 : index
    %c0_171 = arith.constant 0 : index
    %204 = vector.load %arg6[%c240, %c0_171] : memref<400x120xf32, #tpu.memory_space<vmem>>, vector<80x120xf32>
    %cst_172 = arith.constant dense<0.000000e+00> : vector<1x120xf32>
    %205 = tpu.matmul %203, %204, %cst_172 {dimension_numbers = #tpu.dot_dimension_numbers<[1], [0], [0], [1], [0, 0, 1, 1], [], []>} : vector<1x80xf32>, vector<80x120xf32>, vector<1x120xf32> -> vector<1x120xf32>
    %206 = arith.addf %202, %205 : vector<1x120xf32>
    %207 = vector.extract_strided_slice %189 {offsets = [4, 0], sizes = [1, 80], strides = [1, 1]} : vector<5x80xf32> to vector<1x80xf32>
    %c320 = arith.constant 320 : index
    %c0_173 = arith.constant 0 : index
    %208 = vector.load %arg6[%c320, %c0_173] : memref<400x120xf32, #tpu.memory_space<vmem>>, vector<80x120xf32>
    %cst_174 = arith.constant dense<0.000000e+00> : vector<1x120xf32>
    %209 = tpu.matmul %207, %208, %cst_174 {dimension_numbers = #tpu.dot_dimension_numbers<[1], [0], [0], [1], [0, 0, 1, 1], [], []>} : vector<1x80xf32>, vector<80x120xf32>, vector<1x120xf32> -> vector<1x120xf32>
    %210 = arith.addf %206, %209 : vector<1x120xf32>
    %cst_175 = arith.constant 0.000000e+00 : f32
    %211 = vector.broadcast %cst_175 : f32 to vector<1x120xf32>
    %212 = arith.maximumf %210, %211 : vector<1x120xf32>
    %c0_176 = arith.constant 0 : index
    %c0_177 = arith.constant 0 : index
    %213 = vector.load %arg8[%c0_176, %c0_177] : memref<120x84xf32, #tpu.memory_space<vmem>>, vector<120x84xf32>
    %cst_178 = arith.constant dense<0.000000e+00> : vector<1x84xf32>
    %214 = tpu.matmul %212, %213, %cst_178 {dimension_numbers = #tpu.dot_dimension_numbers<[1], [0], [0], [1], [0, 0, 1, 1], [], []>} : vector<1x120xf32>, vector<120x84xf32>, vector<1x84xf32> -> vector<1x84xf32>
    %c0_179 = arith.constant 0 : index
    %c0_180 = arith.constant 0 : index
    %215 = vector.load %arg9[%c0_179, %c0_180] : memref<1x84xf32, #tpu.memory_space<vmem>>, vector<1x84xf32>
    %216 = arith.addf %214, %215 : vector<1x84xf32>
    %cst_181 = arith.constant 0.000000e+00 : f32
    %217 = vector.broadcast %cst_181 : f32 to vector<1x84xf32>
    %218 = arith.maximumf %216, %217 : vector<1x84xf32>
    %c0_182 = arith.constant 0 : index
    %c0_183 = arith.constant 0 : index
    %219 = vector.load %arg10[%c0_182, %c0_183] : memref<84x128xf32, #tpu.memory_space<vmem>>, vector<84x128xf32>
    %cst_184 = arith.constant dense<0.000000e+00> : vector<1x128xf32>
    %220 = tpu.matmul %218, %219, %cst_184 {dimension_numbers = #tpu.dot_dimension_numbers<[1], [0], [0], [1], [0, 0, 1, 1], [], []>} : vector<1x84xf32>, vector<84x128xf32>, vector<1x128xf32> -> vector<1x128xf32>
    %c0_185 = arith.constant 0 : index
    %c0_186 = arith.constant 0 : index
    %221 = vector.load %arg11[%c0_185, %c0_186] : memref<1x128xf32, #tpu.memory_space<vmem>>, vector<1x128xf32>
    %222 = arith.addf %220, %221 : vector<1x128xf32>
    %c0_187 = arith.constant 0 : index
    %c0_188 = arith.constant 0 : index
    %c0_189 = arith.constant 0 : index
    %223 = vector.load %arg12[%c0_187, %c0_188, %c0_189] : memref<1x1x128xf32, #tpu.memory_space<vmem>>, vector<1x1x128xf32>
    %224 = vector.shape_cast %223 : vector<1x1x128xf32> to vector<1x128xf32>
    %225 = vector.shape_cast %222 : vector<1x128xf32> to vector<1x1x128xf32>
    tpu.vector_store %arg12[%c0_187, %c0_188, %c0_189], %225 {strides = array<i32>} : memref<1x1x128xf32, #tpu.memory_space<vmem>>, vector<1x1x128xf32>,
    return
  }
  func.func @transform_0(%arg0: i32) -> (i32, i32, i32) {
    %c0_i32 = arith.constant 0 : i32
    %c0_i32_0 = arith.constant 0 : i32
    %c0_i32_1 = arith.constant 0 : i32
    return %arg0, %c0_i32, %c0_i32_0 : i32, i32, i32
  }
  func.func @transform_1(%arg0: i32) -> (i32, i32, i32) {
    %c0_i32 = arith.constant 0 : i32
    %c0_i32_0 = arith.constant 0 : i32
    %c0_i32_1 = arith.constant 0 : i32
    %c0_i32_2 = arith.constant 0 : i32
    return %c0_i32, %c0_i32_0, %c0_i32_1 : i32, i32, i32
  }
  func.func @transform_2(%arg0: i32) -> (i32, i32) {
    %c0_i32 = arith.constant 0 : i32
    %c0_i32_0 = arith.constant 0 : i32
    %c0_i32_1 = arith.constant 0 : i32
    return %c0_i32, %c0_i32_0 : i32, i32
  }
  func.func @transform_3(%arg0: i32) -> (i32, i32, i32) {
    %c0_i32 = arith.constant 0 : i32
    %c0_i32_0 = arith.constant 0 : i32
    %c0_i32_1 = arith.constant 0 : i32
    %c0_i32_2 = arith.constant 0 : i32
    return %c0_i32, %c0_i32_0, %c0_i32_1 : i32, i32, i32
  }
  func.func @transform_4(%arg0: i32) -> (i32, i32) {
    %c0_i32 = arith.constant 0 : i32
    %c0_i32_0 = arith.constant 0 : i32
    %c0_i32_1 = arith.constant 0 : i32
    return %c0_i32, %c0_i32_0 : i32, i32
  }
  func.func @transform_5(%arg0: i32) -> (i32, i32) {
    %c0_i32 = arith.constant 0 : i32
    %c0_i32_0 = arith.constant 0 : i32
    %c0_i32_1 = arith.constant 0 : i32
    return %c0_i32, %c0_i32_0 : i32, i32
  }
  func.func @transform_6(%arg0: i32) -> (i32, i32) {
    %c0_i32 = arith.constant 0 : i32
    %c0_i32_0 = arith.constant 0 : i32
    %c0_i32_1 = arith.constant 0 : i32
    return %c0_i32, %c0_i32_0 : i32, i32
  }
  func.func @transform_7(%arg0: i32) -> (i32, i32) {
    %c0_i32 = arith.constant 0 : i32
    %c0_i32_0 = arith.constant 0 : i32
    %c0_i32_1 = arith.constant 0 : i32
    return %c0_i32, %c0_i32_0 : i32, i32
  }
  func.func @transform_8(%arg0: i32) -> (i32, i32) {
    %c0_i32 = arith.constant 0 : i32
    %c0_i32_0 = arith.constant 0 : i32
    %c0_i32_1 = arith.constant 0 : i32
    return %c0_i32, %c0_i32_0 : i32, i32
  }
  func.func @transform_9(%arg0: i32) -> (i32, i32) {
    %c0_i32 = arith.constant 0 : i32
    %c0_i32_0 = arith.constant 0 : i32
    %c0_i32_1 = arith.constant 0 : i32
    return %c0_i32, %c0_i32_0 : i32, i32
  }
  func.func @transform_10(%arg0: i32) -> (i32, i32) {
    %c0_i32 = arith.constant 0 : i32
    %c0_i32_0 = arith.constant 0 : i32
    %c0_i32_1 = arith.constant 0 : i32
    return %c0_i32, %c0_i32_0 : i32, i32
  }
  func.func @transform_11(%arg0: i32) -> (i32, i32, i32) {
    %c0_i32 = arith.constant 0 : i32
    %c0_i32_0 = arith.constant 0 : i32
    %c0_i32_1 = arith.constant 0 : i32
    return %arg0, %c0_i32, %c0_i32_0 : i32, i32, i32
  }
}

</mosaic_0001>

<bundles_post_ra>
// kernel: tpu_custom_call.1
= control target key start
LH: loop header
LB: loop body
LE: loop exit
PB: predicated region body
PF: predicated region fallthrough
CT: control target
= control target key end

     0   :  { %s6484_s0 = inlined_call_operand.vmem [shape: f32[2,32,128], index: 0, kind: input, shape index: {}]   ;;  %s6485_s1 = inlined_call_operand.hbm [shape: f32[5,128,256], index: 1, kind: input, shape index: {}]   ;;  %s6486_s2 = inlined_call_operand.vmem [shape: f32[1,84], index: 2, kind: input, shape index: {}]   ;;  %s6487_s3 = inlined_call_operand.hbm [shape: f32[5,84,256], index: 3, kind: input, shape index: {}]   ;;  %s6488_s4 = inlined_call_operand.vmem [shape: f32[1,80], index: 4, kind: input, shape index: {}]   ;;  %s6489_s5 = inlined_call_operand.hbm [shape: f32[400,120], index: 5, kind: input, shape index: {}]   ;;  %s6490_s6 = inlined_call_operand.vmem [shape: f32[1,120], index: 6, kind: input, shape index: {}]   ;;  %s6491_s7 = inlined_call_operand.vmem [shape: f32[120,84], index: 7, kind: input, shape index: {}]   ;;  %s6492_s8 = inlined_call_operand.vmem [shape: f32[1,84], index: 8, kind: input, shape index: {}]   ;;  %s6493_s9 = inlined_call_operand.vmem [shape: f32[84,128], index: 9, kind: input, shape index: {}]   ;;  %s6494_s10 = inlined_call_operand.vmem [shape: f32[1,128], index: 10, kind: input, shape index: {}]   ;;  %s6495_s11 = inlined_call_operand.hbm [shape: f32[2,1,128], index: 11, kind: output, shape index: {}]  }
   0x1   :  { %6564 = sst [smem:[#allocation44_spill]] %s6495_s11 }
   0x2   :  { %16 = vsyncpa [#allocation3], 0 }
   0x3   :  { %17 = vsyncpa [#allocation6], 0 }
   0x4   :  { %18 = vsyncpa [#allocation4], 0 }
   0x5   :  { %20 = vsyncpa [#allocation4 + $0x1], 0  ;;  %s5285_s17 = smov 0   ;;  %s5287_s18 = smov 0  }
   0x6   :  { %s5289_s19 = smov 0   ;;  %s5291_s20 = smov 0  }
   0x7 LB: > { %6565 = sst [smem:[#allocation12_spill]] %s5200_s17  ;;  %s5306_s21 = sadd.s32 4294967295, %s5212_s20   ;;  %s5212_s20 = sphi %s5291_s20, %s6648_s20   ;;  %s5208_s19 = sphi %s5289_s19, %s6650_s19   ;;  %s5204_s18 = sphi %s5287_s18, %s6652_s18   ;;  %s5200_s17 = sphi %s5285_s17, %s6651_s17  }
   0x8   : > { %6566 = sst [smem:[#allocation13_spill]] %s5208_s19  ;;  %s3661_s22 = sadd.s32 4294967294, %s5212_s20  }
   0x9   : > { %6567 = sst [smem:[#allocation14_spill]] %s5212_s20  ;;  %s5310_s23 = sadd.s32 1, %s5212_s20  }
   0xa   : > { %6568 = sst [smem:[#allocation15_spill]] %s5310_s23  ;;  %s269_s24 = sadd.s32 1, %s5208_s19 }
   0xb   : > { %s266_s25 = ssub.s32 %s5212_s20, %s5310_s23  ;;  %p279_p0 = scmp.ne.s32.totalorder %s5208_s19, %s5204_s18 }
   0xc   : > { %p267_p1 = scmp.eq.s32.totalorder %s266_s25, 0  ;;  %p280_p2 = scmp.eq.s32.totalorder %s5306_s21, 1 }
   0xd   : > { %p285_p3 = scmp.ne.s32.totalorder %s5204_s18, %s5200_s17  ;;  %p286_p4 = scmp.eq.s32.totalorder %s3661_s22, 1 }
   0xe   : > { %s5321_s26 = scalar_select %p267_p1, %s5208_s19, %s269_s24  }
   0xf   : > { %p5323_p5 = por %p280_p2, %p279_p0  ;;  %p5327_p6 = por %p286_p4, %p285_p3 }
  0x10   : > { %6569 = sst [smem:[#allocation16_spill]] %s5321_s26  ;;  %p3662_p7 = scmp.ge.s32.totalorder %s5212_s20, 1 }
  0x11   : > { %s6570_s27 = scalar_select %p5323_p5, 1, 0 }
  0x12   : > { %s6571_s28 = scalar_select %p5327_p6, 1, 0 }
  0x13   : > { %p293_p8 = scmp.lt.s32.totalorder %s5212_s20, 3  ;;  %p6499_p9 = scmp.eq.s32.totalorder %s5306_s21, 0 }
  0x14   : > { %6572 = sst [smem:[#allocation17_spill]] %s6571_s28  ;;  %s5214_s30 = smov [#allocation5]  }
  0x15   : > { %p5334_p10 = pnand %p3662_p7, %p293_p8  ;;  %s321_s12 = sshll.u32 %s5214_s30, 4  ;;  %s5340_s12 = int_to_ptr.vmem [resolvable:$true] %s321_s12 }
  0x16   : > { %s5215_s14 = smov [#allocation2]   ;;  %s5216_s16 = smov [#allocation7]  }
  0x17   : > { %s6573_s29 = scalar_select %p5334_p10, 1, 0 }
  0x18   : > { %p4995_p11 = pneg %p5334_p10  ;;  %s305_s15 = sshll.u32 %s5215_s14, 4  ;;  %s5348_s15 = int_to_ptr.vmem [resolvable:$true] %s305_s15 }
  0x19   : > { %s5350_s22 = sshll.u32 %s5216_s16, 4  ;;  %s5058_s26 = scalar_lea.hbm %s6487_s3, 14080  ;;  %s338_s22 = int_to_ptr.vmem [resolvable:$true] %s5350_s22 }
  0x1a   : > { %p5344_p12 = pnand %p6499_p9, %p4995_p11  ;;  %p5059_p13 = scmp.ne.s32.totalorder %s6487_s3, %s5058_s26 }
  0x1b   : > { %p5065_p3 = scmp.lt.u32.totalorder %s5058_s26, %s6487_s3 }
  0x1c   : > { %p5360_p0 = pneg %p5344_p12 }
  0x1e   : > { %p5061_p1 = pnand %p5360_p0, %p5059_p13 }
  0x20   : > { %p5062_p2 = pneg %p5061_p1 }
  0x22   : > { %p5067_p4 = pnand %p5065_p3, %p5062_p2 }
  0x24   : > { %5070 = shalt.err (!%p5067_p4)
}
  0x25   : > { %s5071_s19 = scalar_lea.vmem %s5340_s12, 14080  ;;  %p5079_p9 = scmp.lt.s32.totalorder %s5340_s12, %s5340_s12 }
  0x26   : > { %p5072_p7 = scmp.ne.s32.totalorder %s5340_s12, %s5071_s19  ;;  %p5080_p6 = scmp.lt.s32.totalorder %s5071_s19, %s5071_s19 }
  0x28   : > { %p5074_p8 = pnand %p5072_p7, %p5360_p0  ;;  %p5081_p13 = por %p5080_p6, %p5079_p9 }
  0x2a   : > { %p5075_p11 = pneg %p5074_p8 }
  0x2c   : > { %p5082_p1 = pnand %p5081_p13, %p5075_p11 }
  0x2e   : > { %5085 = shalt.err (!%p5082_p1)
}
  0x2f   : > { %s5217_s24 = smov 256   ;;  %s5218_s26 = smov 16  }
  0x30   : > { %5001 = dma.hbm_to_vmem [thread:$0]  (!%p5344_p12), %s6487_s3, 14080, %s5340_s12, [#allocation6], %s5217_s24, %s5217_s24, %s5218_s26  }
  0x31   : > { %s5086_s28 = scalar_lea.hbm %s6485_s1, 20480 }
  0x32   : > { %p5087_p6 = scmp.ne.s32.totalorder %s6485_s1, %s5086_s28  ;;  %p5093_p3 = scmp.lt.u32.totalorder %s5086_s28, %s6485_s1 }
  0x34   : > { %p5089_p9 = pnand %p5087_p6, %p5360_p0 }
  0x36   : > { %p5090_p2 = pneg %p5089_p9 }
  0x38   : > { %p5095_p4 = pnand %p5093_p3, %p5090_p2 }
  0x3a   : > { %5098 = shalt.err (!%p5095_p4)
}
  0x3b   : > { %s5099_s12 = scalar_lea.vmem %s5348_s15, 20480  ;;  %p5107_p13 = scmp.lt.s32.totalorder %s5348_s15, %s5348_s15 }
  0x3c   : > { %p5100_p7 = scmp.ne.s32.totalorder %s5348_s15, %s5099_s12  ;;  %p5108_p1 = scmp.lt.s32.totalorder %s5099_s12, %s5099_s12 }
  0x3e   : > { %p5102_p8 = pnand %p5100_p7, %p5360_p0  ;;  %p5109_p6 = por %p5108_p1, %p5107_p13 }
  0x40   : > { %p5103_p11 = pneg %p5102_p8 }
  0x42   : > { %p5110_p9 = pnand %p5109_p6, %p5103_p11 }
  0x44   : > { %5113 = shalt.err (!%p5110_p9)
}
  0x45   : > { %4998 = dma.hbm_to_vmem [thread:$0]  (!%p5344_p12), %s6485_s1, 20480, %s5348_s15, [#allocation3], %s5217_s24, %s5217_s24, %s5218_s26  }
  0x46   : > { %s5114_s25 = scalar_lea.hbm %s6489_s5, 6400 }
  0x47   : > { %p5115_p2 = scmp.ne.s32.totalorder %s6489_s5, %s5114_s25  ;;  %p5121_p7 = scmp.lt.u32.totalorder %s5114_s25, %s6489_s5 }
  0x49   : > { %p5117_p3 = pnand %p5115_p2, %p5360_p0 }
  0x4b   : > { %p5118_p4 = pneg %p5117_p3 }
  0x4d   : > { %p5123_p8 = pnand %p5121_p7, %p5118_p4 }
  0x4f   : > { %5126 = shalt.err (!%p5123_p8)
}
  0x50   : > { %s5127_s12 = scalar_lea.vmem %s338_s22, 6400  ;;  %p5135_p6 = scmp.lt.s32.totalorder %s338_s22, %s338_s22 }
  0x51   : > { %p5128_p11 = scmp.ne.s32.totalorder %s338_s22, %s5127_s12  ;;  %p5136_p9 = scmp.lt.s32.totalorder %s5127_s12, %s5127_s12 }
  0x53   : > { %p5130_p13 = pnand %p5128_p11, %p5360_p0  ;;  %p5137_p5 = por %p5136_p9, %p5135_p6 }
  0x55   : > { %p5131_p1 = pneg %p5130_p13 }
  0x57   : > { %p5138_p10 = pnand %p5137_p5, %p5131_p1 }
  0x59   : > { %5141 = shalt.err (!%p5138_p10)
}
  0x5a   : > { %s5219_s15 = smov 128   ;;  %s5220_s24 = smov 8  }
  0x5b   : > { %5004 = dma.hbm_to_vmem [thread:$0]  (!%p5344_p12), %s6489_s5, 6400, %s338_s22, [#allocation6], %s5219_s15, %s5219_s15, %s5220_s24  }
  0x5c   : > { %p6576_p2 = scmp.ne.s32.totalorder %s6573_s29, 0 }
  0x5e   : > { %376 = sbr.rel (%p6576_p2) target bundleno = 1723 (0x6bb), region = 64 }
  0x65   : > { %p6577_p3 = scmp.eq.s32.totalorder %s5306_s21, 0 }
  0x67   : > { %5187 = dma.done.wait (%p6577_p3), [#allocation3], 20480   ;;  %p6578_p0 = pmov %p6577_p3 }
  0x69   : > { %5189 = vsyncadd (%p6578_p0), [#allocation3], 4294946816  ;;  %p6579_p5 = pmov %p6578_p0 }
  0x6a   : > { %p6580_p10 = pmov %p6578_p0 }
  0x6b   : > { %5191 = dma.done.wait (%p6579_p5), [#allocation6], 20480  }
  0x6c   : > { %5193 = vsyncadd (%p6580_p10), [#allocation6], 4294946816  ;;  %v6510_v0 = vmov 0.0   ;;  %v464_v1 = vld [vmem:[#allocation2 + $0x108] sm:$0xff]  ;;  %v466_v2 = vld [vmem:[#allocation2 + $0x118] sm:$0xff]  ;;  %p423_p12 = scmp.lt.s32.totalorder %s5306_s21, 1 }
  0x6d   : > { %559 = vmatprep.mubr.f32.mxu0 %v6510_v0  ;;  %1023 = vmatprep.mubr.f32.mxu1 %v6510_v0  ;;  %v463_v3 = vld [vmem:[#allocation2 + $0x100] sm:$0xff]  ;;  %v5435_v4 = vpack.c.bf16 %v466_v2, %v464_v1  ;;  %v465_v5 = vld [vmem:[#allocation2 + $0x110] sm:$0xff]  ;;  %v468_v6 = vld [vmem:[#allocation2 + $0x128] sm:$0xff]  ;;  %vm2110_vm0 = vcmask 1043456   ;;  %vm2106_vm1 = vcmask 687104   ;;  %vm5223_vm2 = vmmov 0  }
  0x6e   : > { %v470_v7 = vld [vmem:[#allocation2 + $0x138] sm:$0xff]  ;;  %v5437_v8 = vpack.c.bf16 %v465_v5, %v463_v3  ;;  %v467_v10 = vld [vmem:[#allocation2 + $0x120] sm:$0xff]  ;;  %v469_v11 = vld [vmem:[#allocation2 + $0x130] sm:$0xff]  ;;  %s424_s23 = scalar_select %p423_p12, %s5306_s21, 1  ;;  %vm2970_vm3 = vcmask 654336   ;;  %vm3398_vm4 = vcmask 982016  }
  0x6f   : > { %v5439_v9 = vpack.c.bf16 %v470_v7, %v468_v6  ;;  %v472_v12 = vld [vmem:[#allocation2 + $0x148] sm:$0xff]  ;;  %3974 = vmatprep.subr.bf16.mxu0 %v5435_v4  ;;  %4134 = vmatprep.subr.bf16.mxu1 %v5435_v4  ;;  %v474_v13 = vld [vmem:[#allocation2 + $0x158] sm:$0xff]  ;;  %v5445_v14 = vpack.c.bf16 %v469_v11, %v467_v10  ;;  %v471_v16 = vld [vmem:[#allocation2 + $0x140] sm:$0xff]  ;;  %s421_s24 = sand.u32 1, %s5204_s18   ;;  %s6641_s20 = sld [smem:[#allocation44_spill]] }
  0x70   : > { %3976 = vmatpush1.bf16.msra.mxu0 %v5437_v8  ;;  %4136 = vmatpush1.bf16.msra.mxu1 %v5437_v8  ;;  %v5449_v15 = vpack.c.bf16 %v474_v13, %v472_v12  ;;  %v473_v17 = vld [vmem:[#allocation2 + $0x150] sm:$0xff]  ;;  %v476_v18 = vld [vmem:[#allocation2 + $0x168] sm:$0xff]  ;;  %v478_v19 = vld [vmem:[#allocation2 + $0x178] sm:$0xff]  ;;  %s3716_s29 = sshll.u32 %s424_s23, 5  ;;  %s3713_s23 = sshll.u32 %s5306_s21, 4 }
  0x71   : > { %3978 = vmatprep.subr.bf16.mxu0 %v5439_v9  ;;  %4138 = vmatprep.subr.bf16.mxu1 %v5439_v9  ;;  %v5453_v20 = vpack.c.bf16 %v473_v17, %v471_v16  ;;  %v5457_v21 = vpack.c.bf16 %v478_v19, %v476_v18  ;;  %v475_v22 = vld [vmem:[#allocation2 + $0x160] sm:$0xff]  ;;  %v477_v23 = vld [vmem:[#allocation2 + $0x170] sm:$0xff]  ;;  %v480_v24 = vld [vmem:[#allocation2 + $0x188] sm:$0xff]  ;;  %s5504_s17 = scalar_lea.vmem %s6484_s0, %s3716_s29  ;;  %s422_s29 = scalar_lea.vmem [#allocation8], %s421_s24 }
  0x72   : > { %v482_v25 = vld [vmem:[#allocation2 + $0x198] sm:$0xff]  ;;  %v5461_v26 = vpack.c.bf16 %v477_v23, %v475_v22  ;;  %v479_v28 = vld [vmem:[#allocation2 + $0x180] sm:$0xff]  ;;  %v481_v29 = vld [vmem:[#allocation2 + $0x190] sm:$0xff]  ;;  %s3575_s13 = sshll.u32 %s422_s29, 4  ;;  %s3563_s30 = scalar_lea.sflag [#allocation4], %s421_s24  ;;  %s6444_s13 = int_to_ptr.vmem [resolvable:$true] %s3575_s13 }
  0x73   : > { %v5465_v27 = vpack.c.bf16 %v482_v25, %v480_v24  ;;  %v484_v30 = vld [vmem:[#allocation2 + $0x1a8] sm:$0xff]  ;;  %v486_v31 = vld [vmem:[#allocation2 + $0x1b8] sm:$0xff]  ;;  %v5469_v32 = vpack.c.bf16 %v481_v29, %v479_v28  ;;  %v483_v34 = vld [vmem:[#allocation2 + $0x1a0] sm:$0xff]  ;;  %s5142_s14 = scalar_lea.vmem %s6444_s13, 16  ;;  %p6643_p7 = scmp.ne.s32.totalorder %s6570_s27, 0 }
  0x74   : > { %3980 = vmatpush1.bf16.msra.mxu0 %v5445_v14  ;;  %4140 = vmatpush1.bf16.msra.mxu1 %v5445_v14  ;;  %v5473_v33 = vpack.c.bf16 %v486_v31, %v484_v30  ;;  %v485_v35 = vld [vmem:[#allocation2 + $0x1b0] sm:$0xff]  ;;  %v488_v36 = vld [vmem:[#allocation2 + $0x1c8] sm:$0xff]  ;;  %v490_v37 = vld [vmem:[#allocation2 + $0x1d8] sm:$0xff]  ;;  %p5143_p4 = scmp.ne.s32.totalorder %s6444_s13, %s5142_s14  ;;  %s5224_s21 = smov [#allocation8]  }
  0x75   : > { %3982 = vmatprep.subr.bf16.mxu0 %v5449_v15  ;;  %4142 = vmatprep.subr.bf16.mxu1 %v5449_v15  ;;  %v5478_v38 = vpack.c.bf16 %v485_v35, %v483_v34  ;;  %v5482_v39 = vpack.c.bf16 %v490_v37, %v488_v36  ;;  %v487_v40 = vld [vmem:[#allocation2 + $0x1c0] sm:$0xff]  ;;  %v489_v41 = vld [vmem:[#allocation2 + $0x1d0] sm:$0xff]  ;;  %v492_v42 = vld [vmem:[#allocation2 + $0x1e8] sm:$0xff]  ;;  %s6642_s28 = smov %s6641_s20  ;;  %s6442_s25 = scalar_lea.hbm %s6641_s20, %s3713_s23 }
  0x76   : > { %v494_v43 = vld [vmem:[#allocation2 + $0x1f8] sm:$0xff]  ;;  %v5487_v44 = vpack.c.bf16 %v489_v41, %v487_v40  ;;  %v491_v46 = vld [vmem:[#allocation2 + $0x1e0] sm:$0xff]  ;;  %v493_v47 = vld [vmem:[#allocation2 + $0x1f0] sm:$0xff]  ;;  %p5144_p8 = pnand %p5143_p4, %p6643_p7  ;;  %s5146_s16 = sshll.u32 %s5224_s21, 4  ;;  %s5147_s16 = int_to_ptr.vmem [resolvable:$false] %s5146_s16 }
  0x77   : > { %v5491_v45 = vpack.c.bf16 %v494_v43, %v492_v42  ;;  %v430_v48 = vld [vmem:[#allocation2 + $0x8] sm:$0xff]  ;;  %v432_v49 = vld [vmem:[#allocation2 + $0x18] sm:$0xff]  ;;  %v5495_v50 = vpack.c.bf16 %v493_v47, %v491_v46  ;;  %v429_v52 = vld [vmem:[#allocation2] sm:$0xff]  ;;  %s5148_s19 = scalar_lea.vmem %s5147_s16, 32  ;;  %p5149_p13 = scmp.lt.s32.totalorder %s6444_s13, %s5147_s16 }
  0x78   : > { %3984 = vmatpush1.bf16.msra.mxu0 %v5453_v20  ;;  %4144 = vmatpush1.bf16.msra.mxu1 %v5453_v20  ;;  %v5499_v51 = vpack.c.bf16 %v432_v49, %v430_v48  ;;  %v431_v53 = vld [vmem:[#allocation2 + $0x10] sm:$0xff]  ;;  %v434_v54 = vld [vmem:[#allocation2 + $0x28] sm:$0xff]  ;;  %v436_v55 = vld [vmem:[#allocation2 + $0x38] sm:$0xff]  ;;  %p5145_p11 = pneg %p5144_p8  ;;  %p5150_p1 = scmp.lt.s32.totalorder %s5148_s19, %s5142_s14 }
  0x79   : > { %3986 = vmatprep.subr.bf16.mxu0 %v5457_v21  ;;  %4146 = vmatprep.subr.bf16.mxu1 %v5457_v21  ;;  %v5509_v56 = vld [vmem:[%s5504_s17 + $0x8] sm:$0x7f]  ;;  %v5511_v57 = vpack.c.bf16 %v431_v53, %v429_v52  ;;  %v5514_v58 = vld [vmem:[%s5504_s17 + $0x10] sm:$0x7f]  ;;  %v5518_v59 = vpack.c.bf16 %v436_v55, %v434_v54  ;;  %v433_v60 = vld [vmem:[#allocation2 + $0x20] sm:$0xff] }
  0x7a   : > { %v435_v61 = vld [vmem:[#allocation2 + $0x30] sm:$0xff]  ;;  %v438_v62 = vld [vmem:[#allocation2 + $0x48] sm:$0xff]  ;;  %v440_v63 = vld [vmem:[#allocation2 + $0x58] sm:$0xff]  ;;  %p5151_p6 = por %p5150_p1, %p5149_p13 }
  0x7b   : > { %v5524_v1 = vpack.c.bf16 %v435_v61, %v433_v60  ;;  %v5528_v2 = vpack.c.bf16 %v440_v63, %v438_v62  ;;  %v437_v3 = vld [vmem:[#allocation2 + $0x40] sm:$0xff]  ;;  %v439_v5 = vld [vmem:[#allocation2 + $0x50] sm:$0xff]  ;;  %v442_v6 = vld [vmem:[#allocation2 + $0x68] sm:$0xff] }
  0x7c   : > { %3988 = vmatpush1.bf16.msra.mxu0 %v5461_v26  ;;  %4148 = vmatpush1.bf16.msra.mxu1 %v5461_v26  ;;  %v444_v7 = vld [vmem:[#allocation2 + $0x78] sm:$0xff]  ;;  %v5534_v10 = vpack.c.bf16 %v439_v5, %v437_v3  ;;  %v441_v12 = vld [vmem:[#allocation2 + $0x60] sm:$0xff]  ;;  %v443_v13 = vld [vmem:[#allocation2 + $0x70] sm:$0xff]  ;;  %p5152_p9 = pnand %p5151_p6, %p5145_p11 }
  0x7d   : > { %3990 = vmatprep.subr.bf16.mxu0 %v5465_v27  ;;  %4150 = vmatprep.subr.bf16.mxu1 %v5465_v27  ;;  %v5538_v11 = vpack.c.bf16 %v444_v7, %v442_v6  ;;  %v446_v16 = vld [vmem:[#allocation2 + $0x88] sm:$0xff]  ;;  %v448_v17 = vld [vmem:[#allocation2 + $0x98] sm:$0xff]  ;;  %v5542_v18 = vpack.c.bf16 %v443_v13, %v441_v12  ;;  %v445_v22 = vld [vmem:[#allocation2 + $0x80] sm:$0xff] }
  0x7e   : > { %v5546_v19 = vpack.c.bf16 %v448_v17, %v446_v16  ;;  %v447_v23 = vld [vmem:[#allocation2 + $0x90] sm:$0xff]  ;;  %v450_v24 = vld [vmem:[#allocation2 + $0xa8] sm:$0xff]  ;;  %v452_v25 = vld [vmem:[#allocation2 + $0xb8] sm:$0xff] }
  0x7f   : > { %v5550_v28 = vpack.c.bf16 %v447_v23, %v445_v22  ;;  %v5554_v29 = vpack.c.bf16 %v452_v25, %v450_v24  ;;  %v449_v30 = vld [vmem:[#allocation2 + $0xa0] sm:$0xff]  ;;  %v451_v31 = vld [vmem:[#allocation2 + $0xb0] sm:$0xff]  ;;  %v454_v34 = vld [vmem:[#allocation2 + $0xc8] sm:$0xff] }
  0x80   : > { %3992 = vmatpush1.bf16.msra.mxu0 %v5469_v32  ;;  %4152 = vmatpush1.bf16.msra.mxu1 %v5469_v32  ;;  %v456_v35 = vld [vmem:[#allocation2 + $0xd8] sm:$0xff]  ;;  %v5558_v36 = vpack.c.bf16 %v451_v31, %v449_v30  ;;  %v453_v40 = vld [vmem:[#allocation2 + $0xc0] sm:$0xff]  ;;  %v455_v41 = vld [vmem:[#allocation2 + $0xd0] sm:$0xff] }
  0x81   : > { %3994 = vmatprep.subr.bf16.mxu0 %v5473_v33  ;;  %4154 = vmatprep.subr.bf16.mxu1 %v5473_v33  ;;  %v5562_v37 = vpack.c.bf16 %v456_v35, %v454_v34  ;;  %v458_v42 = vld [vmem:[#allocation2 + $0xe8] sm:$0xff]  ;;  %v460_v43 = vld [vmem:[#allocation2 + $0xf8] sm:$0xff]  ;;  %v5566_v46 = vpack.c.bf16 %v455_v41, %v453_v40  ;;  %v457_v48 = vld [vmem:[#allocation2 + $0xe0] sm:$0xff] }
  0x82   : > { %v5570_v47 = vpack.c.bf16 %v460_v43, %v458_v42  ;;  %v459_v49 = vld [vmem:[#allocation2 + $0xf0] sm:$0xff]  ;;  %v640_v52 = vld [vmem:[#allocation2 + $0x208] sm:$0xff]  ;;  %v642_v53 = vld [vmem:[#allocation2 + $0x218] sm:$0xff] }
  0x83   : > { %v5574_v54 = vpack.c.bf16 %v459_v49, %v457_v48  ;;  %v5578_v55 = vpack.c.bf16 %v642_v53, %v640_v52  ;;  %v639_v60 = vld [vmem:[#allocation2 + $0x200] sm:$0xff]  ;;  %v641_v61 = vld [vmem:[#allocation2 + $0x210] sm:$0xff]  ;;  %v644_v62 = vld [vmem:[#allocation2 + $0x228] sm:$0xff] }
  0x84   : > { %3996 = vmatpush1.bf16.msra.mxu0 %v5478_v38  ;;  %4156 = vmatpush1.bf16.msra.mxu1 %v5478_v38  ;;  %v646_v63 = vld [vmem:[#allocation2 + $0x238] sm:$0xff]  ;;  %v428_v3 = vld [vmem:[%s5504_s17] sm:$0x7f]  ;;  %v5583_v5 = vpack.c.bf16 %v641_v61, %v639_v60  ;;  %v645_v12 = vld [vmem:[#allocation2 + $0x230] sm:$0xff] }
  0x85   : > { %3998 = vmatprep.subr.bf16.mxu0 %v5482_v39  ;;  %4158 = vmatprep.subr.bf16.mxu1 %v5482_v39  ;;  %v5587_v6 = vpack.c.bf16 %v646_v63, %v644_v62  ;;  %v643_v7 = vld [vmem:[#allocation2 + $0x220] sm:$0xff]  ;;  %v648_v13 = vld [vmem:[#allocation2 + $0x248] sm:$0xff]  ;;  %v650_v16 = vld [vmem:[#allocation2 + $0x258] sm:$0xff] }
  0x86   : > { %v5592_v17 = vpack.c.bf16 %v645_v12, %v643_v7  ;;  %v5596_v22 = vpack.c.bf16 %v650_v16, %v648_v13  ;;  %v647_v23 = vld [vmem:[#allocation2 + $0x240] sm:$0xff]  ;;  %v649_v24 = vld [vmem:[#allocation2 + $0x250] sm:$0xff]  ;;  %v652_v25 = vld [vmem:[#allocation2 + $0x268] sm:$0xff] }
  0x87   : > { %v654_v30 = vld [vmem:[#allocation2 + $0x278] sm:$0xff]  ;;  %v651_v34 = vld [vmem:[#allocation2 + $0x260] sm:$0xff]  ;;  %v653_v35 = vld [vmem:[#allocation2 + $0x270] sm:$0xff] }
  0x88   : > { %4000 = vmatpush1.bf16.msra.mxu0 %v5487_v44  ;;  %4160 = vmatpush1.bf16.msra.mxu1 %v5487_v44  ;;  %v5606_v31 = vpack.c.bf16 %v654_v30, %v652_v25  ;;  %v656_v40 = vld [vmem:[#allocation2 + $0x288] sm:$0xff]  ;;  %v658_v41 = vld [vmem:[#allocation2 + $0x298] sm:$0xff]  ;;  %v5610_v42 = vpack.c.bf16 %v653_v35, %v651_v34  ;;  %v655_v48 = vld [vmem:[#allocation2 + $0x280] sm:$0xff] }
  0x89   : > { %4002 = vmatprep.subr.bf16.mxu0 %v5491_v45  ;;  %4162 = vmatprep.subr.bf16.mxu1 %v5491_v45  ;;  %v5614_v43 = vpack.c.bf16 %v658_v41, %v656_v40  ;;  %v657_v49 = vld [vmem:[#allocation2 + $0x290] sm:$0xff]  ;;  %v660_v52 = vld [vmem:[#allocation2 + $0x2a8] sm:$0xff]  ;;  %v662_v53 = vld [vmem:[#allocation2 + $0x2b8] sm:$0xff] }
  0x8a   : > { %v5618_v60 = vpack.c.bf16 %v657_v49, %v655_v48  ;;  %v5622_v61 = vpack.c.bf16 %v662_v53, %v660_v52  ;;  %v659_v62 = vld [vmem:[#allocation2 + $0x2a0] sm:$0xff]  ;;  %v661_v63 = vld [vmem:[#allocation2 + $0x2b0] sm:$0xff]  ;;  %v666_v7 = vld [vmem:[#allocation2 + $0x2d8] sm:$0xff] }
  0x8b   : > { %v5626_v12 = vpack.c.bf16 %v661_v63, %v659_v62  ;;  %v663_v16 = vld [vmem:[#allocation2 + $0x2c0] sm:$0xff]  ;;  %v670_v25 = vld [vmem:[#allocation2 + $0x2f8] sm:$0xff]  ;;  %v669_v40 = vld [vmem:[#allocation2 + $0x2f0] sm:$0xff] }
  0x8c   : > { %4004 = vmatpush1.bf16.msra.mxu0 %v5495_v50  ;;  %4164 = vmatpush1.bf16.msra.mxu1 %v5495_v50  ;;  %v667_v35 = vld [vmem:[#allocation2 + $0x2e0] sm:$0xff]  ;;  %v747_v41 = vld [vmem:[#allocation2 + $0x308] sm:$0xff]  ;;  %v749_v48 = vld [vmem:[#allocation2 + $0x318] sm:$0xff] }
  0x8d   : > { %4006 = vmatprep.subr.bf16.mxu0 %v5499_v51  ;;  %4166 = vmatprep.subr.bf16.mxu1 %v5499_v51  ;;  %v5642_v49 = vpack.c.bf16 %v669_v40, %v667_v35  ;;  %v5646_v52 = vpack.c.bf16 %v749_v48, %v747_v41  ;;  %v746_v53 = vld [vmem:[#allocation2 + $0x300] sm:$0xff]  ;;  %v748_v62 = vld [vmem:[#allocation2 + $0x310] sm:$0xff]  ;;  %v751_v63 = vld [vmem:[#allocation2 + $0x328] sm:$0xff] }
  0x8e   : > { %v755_v35 = vld [vmem:[#allocation2 + $0x348] sm:$0xff]  ;;  %v757_v40 = vld [vmem:[#allocation2 + $0x358] sm:$0xff] }
  0x8f   : > { %560 = vmatmul.mubr.f32.vlgmr.msra.gmra.mrb[0].mxu0 %v5509_v56  ;;  %1024 = vmatmul.mubr.f32.vlgmr.msra.gmra.mrb[0].mxu1 %v5514_v58  ;;  %6581 = vst [vmem:[#allocation18_spill] sm:$0xff] %v5642_v49  ;;  %6582 = vst [vmem:[#allocation19_spill] sm:$0xff] %v5646_v52  ;;  %v5667_v48 = vpack.c.bf16 %v757_v40, %v755_v35  ;;  %v758_v35 = vld [vmem:[#allocation2 + $0x360] sm:$0xff]  ;;  %v760_v40 = vld [vmem:[#allocation2 + $0x370] sm:$0xff] }
  0x90   : > { %4008 = vmatpush1.bf16.msra.mxu0 %v5511_v57  ;;  %4168 = vmatpush1.bf16.msra.mxu1 %v5511_v57 }
  0x91   : > { %4010 = vmatprep.subr.bf16.mxu0 %v5518_v59  ;;  %4170 = vmatprep.subr.bf16.mxu1 %v5518_v59  ;;  %6586 = vst [vmem:[#allocation23_spill] sm:$0xff] %v5667_v48 }
  0x92   : > { %630 = vmatprep.mubr.f32.mxu0 %v6510_v0  ;;  %1094 = vmatprep.mubr.f32.mxu1 %v6510_v0 }
  0x94   : > { %4012 = vmatpush1.bf16.msra.mxu0 %v5524_v1  ;;  %4172 = vmatpush1.bf16.msra.mxu1 %v5524_v1 }
  0x95   : > { %4014 = vmatprep.subr.bf16.mxu0 %v5528_v2  ;;  %4174 = vmatprep.subr.bf16.mxu1 %v5528_v2 }
  0x98   : > { %4016 = vmatpush1.bf16.msra.mxu0 %v5534_v10  ;;  %4176 = vmatpush1.bf16.msra.mxu1 %v5534_v10 }
  0x99   : > { %4018 = vmatprep.subr.bf16.mxu0 %v5538_v11  ;;  %4178 = vmatprep.subr.bf16.mxu1 %v5538_v11 }
  0x9c   : > { %4020 = vmatpush1.bf16.msra.mxu0 %v5542_v18  ;;  %4180 = vmatpush1.bf16.msra.mxu1 %v5542_v18 }
  0x9d   : > { %4022 = vmatprep.subr.bf16.mxu0 %v5546_v19  ;;  %4182 = vmatprep.subr.bf16.mxu1 %v5546_v19 }
  0xa0   : > { %4024 = vmatpush1.bf16.msra.mxu0 %v5550_v28  ;;  %4184 = vmatpush1.bf16.msra.mxu1 %v5550_v28 }
  0xa1   : > { %4026 = vmatprep.subr.bf16.mxu0 %v5554_v29  ;;  %4186 = vmatprep.subr.bf16.mxu1 %v5554_v29 }
  0xa4   : > { %4028 = vmatpush1.bf16.msra.mxu0 %v5558_v36  ;;  %4188 = vmatpush1.bf16.msra.mxu1 %v5558_v36 }
  0xa5   : > { %4030 = vmatprep.subr.bf16.mxu0 %v5562_v37  ;;  %4190 = vmatprep.subr.bf16.mxu1 %v5562_v37 }
  0xa8   : > { %4032 = vmatpush1.bf16.msra.mxu0 %v5566_v46  ;;  %4192 = vmatpush1.bf16.msra.mxu1 %v5566_v46 }
  0xa9   : > { %4034 = vmatprep.subr.bf16.mxu0 %v5570_v47  ;;  %4194 = vmatprep.subr.bf16.mxu1 %v5570_v47 }
  0xac   : > { %4036 = vmatpush1.bf16.msra.mxu0 %v5574_v54  ;;  %4196 = vmatpush1.bf16.msra.mxu1 %v5574_v54 }
  0xad   : > { %4038 = vmatprep.subr.bf16.mxu0 %v5578_v55  ;;  %4198 = vmatprep.subr.bf16.mxu1 %v5578_v55 }
  0xaf   : > { %631 = vmatmul.mubr.f32.vlgmr.msra.gmra.mrb[0].mxu0 %v428_v3  ;;  %1095 = vmatmul.mubr.f32.vlgmr.msra.gmra.mrb[0].mxu1 %v5509_v56  ;;  %v5602_v56 = vpack.c.bf16 %v649_v24, %v647_v23  ;;  %v664_v3 = vld [vmem:[#allocation2 + $0x2c8] sm:$0xff]  ;;  %v665_v23 = vld [vmem:[#allocation2 + $0x2d0] sm:$0xff] }
  0xb0   : > { %4040 = vmatpush1.bf16.msra.mxu0 %v5583_v5  ;;  %4200 = vmatpush1.bf16.msra.mxu1 %v5583_v5  ;;  %v5630_v13 = vpack.c.bf16 %v666_v7, %v664_v3  ;;  %v668_v24 = vld [vmem:[#allocation2 + $0x2e8] sm:$0xff]  ;;  %v5634_v30 = vpack.c.bf16 %v665_v23, %v663_v16  ;;  %v753_v3 = vld [vmem:[#allocation2 + $0x338] sm:$0xff]  ;;  %v5650_v7 = vpack.c.bf16 %v748_v62, %v746_v53  ;;  %v754_v53 = vld [vmem:[#allocation2 + $0x340] sm:$0xff] }
  0xb1   : > { %4042 = vmatprep.subr.bf16.mxu0 %v5587_v6  ;;  %4202 = vmatprep.subr.bf16.mxu1 %v5587_v6  ;;  %v5638_v34 = vpack.c.bf16 %v670_v25, %v668_v24  ;;  %v5653_v16 = vld [vmem:[%s5504_s17 + $0x18] sm:$0x7f]  ;;  %v5657_v23 = vpack.c.bf16 %v753_v3, %v751_v63  ;;  %v750_v24 = vld [vmem:[#allocation2 + $0x320] sm:$0xff]  ;;  %v752_v25 = vld [vmem:[#allocation2 + $0x330] sm:$0xff] }
  0xb2   : > { %735 = vmatprep.mubr.f32.mxu0 %v6510_v0  ;;  %1165 = vmatprep.mubr.f32.mxu1 %v6510_v0  ;;  %6583 = vst [vmem:[#allocation20_spill] sm:$0xff] %v5650_v7  ;;  %v5663_v41 = vpack.c.bf16 %v752_v25, %v750_v24  ;;  %v756_v62 = vld [vmem:[#allocation2 + $0x350] sm:$0xff]  ;;  %v759_v63 = vld [vmem:[#allocation2 + $0x368] sm:$0xff]  ;;  %v761_v3 = vld [vmem:[#allocation2 + $0x378] sm:$0xff] }
  0xb3   : > { %6584 = vst [vmem:[#allocation21_spill] sm:$0xff] %v5657_v23  ;;  %v5673_v24 = vpack.c.bf16 %v756_v62, %v754_v53  ;;  %v5677_v25 = vpack.c.bf16 %v761_v3, %v759_v63  ;;  %v762_v62 = vld [vmem:[#allocation2 + $0x380] sm:$0xff]  ;;  %v767_v63 = vld [vmem:[#allocation2 + $0x3a8] sm:$0xff]  ;;  %v769_v3 = vld [vmem:[#allocation2 + $0x3b8] sm:$0xff] }
  0xb4   : > { %4044 = vmatpush1.bf16.msra.mxu0 %v5592_v17  ;;  %4204 = vmatpush1.bf16.msra.mxu1 %v5592_v17  ;;  %6585 = vst [vmem:[#allocation22_spill] sm:$0xff] %v5663_v41 }
  0xb5   : > { %4046 = vmatprep.subr.bf16.mxu0 %v5596_v22  ;;  %4206 = vmatprep.subr.bf16.mxu1 %v5596_v22  ;;  %6587 = vst [vmem:[#allocation24_spill] sm:$0xff] %v5673_v24  ;;  %6588 = vst [vmem:[#allocation25_spill] sm:$0xff] %v5677_v25 }
  0xb8   : > { %4048 = vmatpush1.bf16.msra.mxu0 %v5602_v56  ;;  %4208 = vmatpush1.bf16.msra.mxu1 %v5602_v56 }
  0xb9   : > { %4050 = vmatprep.subr.bf16.mxu0 %v5606_v31  ;;  %4210 = vmatprep.subr.bf16.mxu1 %v5606_v31 }
  0xbc   : > { %4052 = vmatpush1.bf16.msra.mxu0 %v5610_v42  ;;  %4212 = vmatpush1.bf16.msra.mxu1 %v5610_v42 }
  0xbd   : > { %4054 = vmatprep.subr.bf16.mxu0 %v5614_v43  ;;  %4214 = vmatprep.subr.bf16.mxu1 %v5614_v43 }
  0xc0   : > { %4056 = vmatpush1.bf16.msra.mxu0 %v5618_v60  ;;  %4216 = vmatpush1.bf16.msra.mxu1 %v5618_v60 }
  0xc1   : > { %4058 = vmatprep.subr.bf16.mxu0 %v5622_v61  ;;  %4218 = vmatprep.subr.bf16.mxu1 %v5622_v61 }
  0xc4   : > { %4060 = vmatpush1.bf16.msra.mxu0 %v5626_v12  ;;  %4220 = vmatpush1.bf16.msra.mxu1 %v5626_v12 }
  0xc5   : > { %4062 = vmatprep.subr.bf16.mxu0 %v5630_v13  ;;  %4222 = vmatprep.subr.bf16.mxu1 %v5630_v13 }
  0xc8   : > { %4064 = vmatpush1.bf16.msra.mxu0 %v5634_v30  ;;  %4224 = vmatpush1.bf16.msra.mxu1 %v5634_v30 }
  0xc9   : > { %4066 = vmatprep.subr.bf16.mxu0 %v5638_v34  ;;  %4226 = vmatprep.subr.bf16.mxu1 %v5638_v34 }
  0xcc   : > { %4068 = vmatpush1.bf16.msra.mxu0 %v5642_v49  ;;  %4228 = vmatpush1.bf16.msra.mxu1 %v5642_v49 }
  0xcd   : > { %4070 = vmatprep.subr.bf16.mxu0 %v5646_v52  ;;  %4230 = vmatprep.subr.bf16.mxu1 %v5646_v52  ;;  %v5724_v52 = vld [vmem:[%s5504_s17 + $0x1] sm:$0x7f] }
  0xcf   : > { %736 = vmatmul.mubr.f32.vlgmr.msra.gmra.mrb[0].mxu0 %v5514_v58  ;;  %1166 = vmatmul.mubr.f32.vlgmr.msra.gmra.mrb[0].mxu1 %v5653_v16 }
  0xd0   : > { %4072 = vmatpush1.bf16.msra.mxu0 %v5650_v7  ;;  %4232 = vmatpush1.bf16.msra.mxu1 %v5650_v7  ;;  %v765_v7 = vld [vmem:[#allocation2 + $0x398] sm:$0xff] }
  0xd1   : > { %4074 = vmatprep.subr.bf16.mxu0 %v5657_v23  ;;  %4234 = vmatprep.subr.bf16.mxu1 %v5657_v23  ;;  %v763_v23 = vld [vmem:[#allocation2 + $0x388] sm:$0xff] }
  0xd2   : > { %842 = vmatprep.mubr.f32.mxu0 %v6510_v0  ;;  %1238 = vmatprep.mubr.f32.mxu1 %v6510_v0  ;;  %v5681_v0 = vpack.c.bf16 %v760_v40, %v758_v35  ;;  %v5685_v53 = vpack.c.bf16 %v765_v7, %v763_v23  ;;  %v5693_v35 = vpack.c.bf16 %v769_v3, %v767_v63  ;;  %v766_v40 = vld [vmem:[#allocation2 + $0x3a0] sm:$0xff]  ;;  %v771_v7 = vld [vmem:[#allocation2 + $0x3c8] sm:$0xff]  ;;  %v773_v23 = vld [vmem:[#allocation2 + $0x3d8] sm:$0xff] }
  0xd3   : > { %v775_v63 = vld [vmem:[#allocation2 + $0x3e8] sm:$0xff]  ;;  %v777_v3 = vld [vmem:[#allocation2 + $0x3f8] sm:$0xff] }
  0xd4   : > { %4076 = vmatpush1.bf16.msra.mxu0 %v5663_v41  ;;  %4236 = vmatpush1.bf16.msra.mxu1 %v5663_v41  ;;  %6589 = vst [vmem:[#allocation26_spill] sm:$0xff] %v5681_v0  ;;  %6590 = vst [vmem:[#allocation27_spill] sm:$0xff] %v5685_v53 }
  0xd5   : > { %4078 = vmatprep.subr.bf16.mxu0 %v5667_v48  ;;  %4238 = vmatprep.subr.bf16.mxu1 %v5667_v48  ;;  %v764_v48 = vld [vmem:[#allocation2 + $0x390] sm:$0xff]  ;;  %6592 = vst [vmem:[#allocation29_spill] sm:$0xff] %v5693_v35 }
  0xd6   : > { %v5689_v41 = vpack.c.bf16 %v764_v48, %v762_v62  ;;  %v5701_v48 = vpack.c.bf16 %v773_v23, %v771_v7  ;;  %v770_v62 = vld [vmem:[#allocation2 + $0x3c0] sm:$0xff]  ;;  %v854_v7 = vld [vmem:[#allocation2 + $0x408] sm:$0xff]  ;;  %v856_v23 = vld [vmem:[#allocation2 + $0x418] sm:$0xff] }
  0xd8   : > { %4080 = vmatpush1.bf16.msra.mxu0 %v5673_v24  ;;  %4240 = vmatpush1.bf16.msra.mxu1 %v5673_v24  ;;  %6591 = vst [vmem:[#allocation28_spill] sm:$0xff] %v5689_v41  ;;  %6594 = vst [vmem:[#allocation31_spill] sm:$0xff] %v5701_v48 }
  0xd9   : > { %4082 = vmatprep.subr.bf16.mxu0 %v5677_v25  ;;  %4242 = vmatprep.subr.bf16.mxu1 %v5677_v25  ;;  %v768_v25 = vld [vmem:[#allocation2 + $0x3b0] sm:$0xff] }
  0xda   : > { %v5697_v24 = vpack.c.bf16 %v768_v25, %v766_v40  ;;  %v5709_v25 = vpack.c.bf16 %v777_v3, %v775_v63  ;;  %v774_v40 = vld [vmem:[#allocation2 + $0x3e0] sm:$0xff]  ;;  %v855_v63 = vld [vmem:[#allocation2 + $0x410] sm:$0xff]  ;;  %v858_v3 = vld [vmem:[#allocation2 + $0x428] sm:$0xff] }
  0xdc   : > { %4084 = vmatpush1.bf16.msra.mxu0 %v5681_v0  ;;  %4244 = vmatpush1.bf16.msra.mxu1 %v5681_v0  ;;  %6593 = vst [vmem:[#allocation30_spill] sm:$0xff] %v5697_v24  ;;  %6596 = vst [vmem:[#allocation33_spill] sm:$0xff] %v5709_v25 }
  0xdd   : > { %4086 = vmatprep.subr.bf16.mxu0 %v5685_v53  ;;  %4246 = vmatprep.subr.bf16.mxu1 %v5685_v53  ;;  %v772_v53 = vld [vmem:[#allocation2 + $0x3d0] sm:$0xff] }
  0xde   : > { %v5705_v0 = vpack.c.bf16 %v772_v53, %v770_v62  ;;  %v5717_v53 = vpack.c.bf16 %v856_v23, %v854_v7  ;;  %v853_v62 = vld [vmem:[#allocation2 + $0x400] sm:$0xff]  ;;  %v859_v7 = vld [vmem:[#allocation2 + $0x430] sm:$0xff]  ;;  %v862_v23 = vld [vmem:[#allocation2 + $0x448] sm:$0xff] }
  0xe0   : > { %4088 = vmatpush1.bf16.msra.mxu0 %v5689_v41  ;;  %4248 = vmatpush1.bf16.msra.mxu1 %v5689_v41  ;;  %6595 = vst [vmem:[#allocation32_spill] sm:$0xff] %v5705_v0  ;;  %6598 = vst [vmem:[#allocation35_spill] sm:$0xff] %v5717_v53 }
  0xe1   : > { %4090 = vmatprep.subr.bf16.mxu0 %v5693_v35  ;;  %4250 = vmatprep.subr.bf16.mxu1 %v5693_v35  ;;  %v776_v35 = vld [vmem:[#allocation2 + $0x3f0] sm:$0xff] }
  0xe2   : > { %v5713_v41 = vpack.c.bf16 %v776_v35, %v774_v40  ;;  %v857_v40 = vld [vmem:[#allocation2 + $0x420] sm:$0xff] }
  0xe4   : > { %4092 = vmatpush1.bf16.msra.mxu0 %v5697_v24  ;;  %4252 = vmatpush1.bf16.msra.mxu1 %v5697_v24  ;;  %6597 = vst [vmem:[#allocation34_spill] sm:$0xff] %v5713_v41  ;;  %v5721_v24 = vpack.c.bf16 %v855_v63, %v853_v62  ;;  %v5734_v62 = vpack.c.bf16 %v859_v7, %v857_v40  ;;  %v861_v63 = vld [vmem:[#allocation2 + $0x440] sm:$0xff] }
  0xe5   : > { %4094 = vmatprep.subr.bf16.mxu0 %v5701_v48  ;;  %4254 = vmatprep.subr.bf16.mxu1 %v5701_v48  ;;  %v860_v48 = vld [vmem:[#allocation2 + $0x438] sm:$0xff]  ;;  %v865_v7 = vld [vmem:[#allocation2 + $0x460] sm:$0xff] }
  0xe6   : > { %6599 = vst [vmem:[#allocation36_spill] sm:$0xff] %v5721_v24  ;;  %v5728_v35 = vpack.c.bf16 %v860_v48, %v858_v3  ;;  %6601 = vst [vmem:[#allocation38_spill] sm:$0xff] %v5734_v62  ;;  %v863_v3 = vld [vmem:[#allocation2 + $0x450] sm:$0xff] }
  0xe7   : > { %v5744_v40 = vpack.c.bf16 %v863_v3, %v861_v63  ;;  %v869_v3 = vld [vmem:[#allocation2 + $0x480] sm:$0xff] }
  0xe8   : > { %4096 = vmatpush1.bf16.msra.mxu0 %v5705_v0  ;;  %4256 = vmatpush1.bf16.msra.mxu1 %v5705_v0  ;;  %6600 = vst [vmem:[#allocation37_spill] sm:$0xff] %v5728_v35  ;;  %v6603_v0 = vmov 0.0  }
  0xe9   : > { %4098 = vmatprep.subr.bf16.mxu0 %v5709_v25  ;;  %4258 = vmatprep.subr.bf16.mxu1 %v5709_v25  ;;  %v864_v25 = vld [vmem:[#allocation2 + $0x458] sm:$0xff]  ;;  %6604 = vst [vmem:[#allocation40_spill] sm:$0xff] %v5744_v40 }
  0xea   : > { %v5738_v48 = vpack.c.bf16 %v864_v25, %v862_v23  ;;  %v867_v23 = vld [vmem:[#allocation2 + $0x470] sm:$0xff] }
  0xeb   : > { %v5752_v49 = vpack.c.bf16 %v867_v23, %v865_v7  ;;  %v873_v23 = vld [vmem:[#allocation2 + $0x4a0] sm:$0xff] }
  0xec   : > { %4100 = vmatpush1.bf16.msra.mxu0 %v5713_v41  ;;  %4260 = vmatpush1.bf16.msra.mxu1 %v5713_v41  ;;  %6602 = vst [vmem:[#allocation39_spill] sm:$0xff] %v5738_v48  ;;  %v868_v41 = vld [vmem:[#allocation2 + $0x478] sm:$0xff] }
  0xed   : > { %4102 = vmatprep.subr.bf16.mxu0 %v5717_v53  ;;  %4262 = vmatprep.subr.bf16.mxu1 %v5717_v53  ;;  %v866_v53 = vld [vmem:[#allocation2 + $0x468] sm:$0xff]  ;;  %6606 = vst [vmem:[#allocation42_spill] sm:$0xff] %v5752_v49 }
  0xee   : > { %v5748_v25 = vpack.c.bf16 %v868_v41, %v866_v53  ;;  %v874_v41 = vld [vmem:[#allocation2 + $0x4a8] sm:$0xff]  ;;  %v876_v53 = vld [vmem:[#allocation2 + $0x4b8] sm:$0xff] }
  0xef   : > { %843 = vmatmul.mubr.f32.vlgmr.msra.gmra.mrb[0].mxu0 %v5653_v16  ;;  %1239 = vmatmul.mubr.f32.vlgmr.msra.gmra.mrb[0].mxu1 %v5724_v52  ;;  %v5764_v7 = vpack.c.bf16 %v876_v53, %v874_v41  ;;  %v882_v41 = vld [vmem:[#allocation2 + $0x4e8] sm:$0xff]  ;;  %v884_v53 = vld [vmem:[#allocation2 + $0x4f8] sm:$0xff] }
  0xf0   : > { %4104 = vmatpush1.bf16.msra.mxu0 %v5721_v24  ;;  %4264 = vmatpush1.bf16.msra.mxu1 %v5721_v24  ;;  %6605 = vst [vmem:[#allocation41_spill] sm:$0xff] %v5748_v25  ;;  %v872_v24 = vld [vmem:[#allocation2 + $0x498] sm:$0xff] }
  0xf1   : > { %4106 = vmatprep.subr.bf16.mxu0 %v5728_v35  ;;  %4266 = vmatprep.subr.bf16.mxu1 %v5728_v35  ;;  %v870_v35 = vld [vmem:[#allocation2 + $0x488] sm:$0xff] }
  0xf2   : > { %949 = vmatprep.mubr.f32.mxu0 %v6603_v0  ;;  %1312 = vmatprep.mubr.f32.mxu1 %v6603_v0  ;;  %v5756_v63 = vpack.c.bf16 %v872_v24, %v870_v35  ;;  %v878_v24 = vld [vmem:[#allocation2 + $0x4c8] sm:$0xff]  ;;  %v880_v35 = vld [vmem:[#allocation2 + $0x4d8] sm:$0xff] }
  0xf4   : > { %4108 = vmatpush1.bf16.msra.mxu0 %v5734_v62  ;;  %4268 = vmatpush1.bf16.msra.mxu1 %v5734_v62  ;;  %6607 = vst [vmem:[#allocation43_spill] sm:$0xff] %v5756_v63 }
  0xf5   : > { %4110 = vmatprep.subr.bf16.mxu0 %v5738_v48  ;;  %4270 = vmatprep.subr.bf16.mxu1 %v5738_v48  ;;  %v871_v48 = vld [vmem:[#allocation2 + $0x490] sm:$0xff] }
  0xf6   : > { %v5760_v62 = vpack.c.bf16 %v871_v48, %v869_v3  ;;  %v5772_v48 = vpack.c.bf16 %v880_v35, %v878_v24  ;;  %v877_v3 = vld [vmem:[#allocation2 + $0x4c0] sm:$0xff]  ;;  %v883_v24 = vld [vmem:[#allocation2 + $0x4f0] sm:$0xff] }
  0xf8   : > { %4112 = vmatpush1.bf16.msra.mxu0 %v5744_v40  ;;  %4272 = vmatpush1.bf16.msra.mxu1 %v5744_v40 }
  0xf9   : > { %4114 = vmatprep.subr.bf16.mxu0 %v5748_v25  ;;  %4274 = vmatprep.subr.bf16.mxu1 %v5748_v25  ;;  %v875_v25 = vld [vmem:[#allocation2 + $0x4b0] sm:$0xff] }
  0xfa   : > { %v5768_v40 = vpack.c.bf16 %v875_v25, %v873_v23  ;;  %v5780_v25 = vpack.c.bf16 %v884_v53, %v882_v41  ;;  %v881_v23 = vld [vmem:[#allocation2 + $0x4e0] sm:$0xff]  ;;  %v2071_v53 = vld [vmem:[#allocation5 + $0x50] sm:$0xff] }
  0xfb   : > { %v5784_v35 = vpack.c.bf16 %v883_v24, %v881_v23  ;;  %v2069_v41 = vld [vmem:[#allocation5 + $0x40] sm:$0xff]  ;;  %v2076_v24 = vld [vmem:[#allocation5 + $0x78] sm:$0xff] }
  0xfc   : > { %4116 = vmatpush1.bf16.msra.mxu0 %v5752_v49  ;;  %4276 = vmatpush1.bf16.msra.mxu1 %v5752_v49 }
  0xfd   : > { %4118 = vmatprep.subr.bf16.mxu0 %v5756_v63  ;;  %4278 = vmatprep.subr.bf16.mxu1 %v5756_v63  ;;  %v879_v63 = vld [vmem:[#allocation2 + $0x4d0] sm:$0xff] }
  0xfe   : > { %v5776_v49 = vpack.c.bf16 %v879_v63, %v877_v3  ;;  %v5791_v63 = vld [vmem:[%s5504_s17 + $0x9] sm:$0x7f] }
 0x100   : > { %4120 = vmatpush1.bf16.msra.mxu0 %v5760_v62  ;;  %4280 = vmatpush1.bf16.msra.mxu1 %v5760_v62 }
 0x101   : > { %4122 = vmatprep.subr.bf16.mxu0 %v5764_v7  ;;  %4282 = vmatprep.subr.bf16.mxu1 %v5764_v7 }
 0x104   : > { %4124 = vmatpush1.bf16.msra.mxu0 %v5768_v40  ;;  %4284 = vmatpush1.bf16.msra.mxu1 %v5768_v40 }
 0x105   : > { %4126 = vmatprep.subr.bf16.mxu0 %v5772_v48  ;;  %4286 = vmatprep.subr.bf16.mxu1 %v5772_v48 }
 0x108   : > { %4128 = vmatpush1.bf16.msra.mxu0 %v5776_v49  ;;  %4288 = vmatpush1.bf16.msra.mxu1 %v5776_v49 }
 0x109   : > { %4130 = vmatprep.subr.bf16.mxu0 %v5780_v25  ;;  %4290 = vmatprep.subr.bf16.mxu1 %v5780_v25 }
 0x10c   : > { %4132 = vmatpush1.bf16.msra.mxu0 %v5784_v35  ;;  %4292 = vmatpush1.bf16.msra.mxu1 %v5784_v35 }
 0x10d   : > { %4294 = vmatprep.subr.bf16.mxu0 %v5435_v4  ;;  %4454 = vmatprep.subr.bf16.mxu1 %v5435_v4  ;;  %v6608_v4 = vld [vmem:[#allocation18_spill] sm:$0xff] }
 0x10f   : > { %950 = vmatmul.mubr.f32.vlgmr.msra.gmra.mrb[0].mxu0 %v5724_v52  ;;  %1313 = vmatmul.mubr.f32.vlgmr.msra.gmra.mrb[0].mxu1 %v5791_v63 }
 0x110   : > { %4296 = vmatpush1.bf16.msra.mxu0 %v5437_v8  ;;  %4456 = vmatpush1.bf16.msra.mxu1 %v5437_v8  ;;  %v6609_v8 = vld [vmem:[#allocation19_spill] sm:$0xff] }
 0x111   : > { %4298 = vmatprep.subr.bf16.mxu0 %v5439_v9  ;;  %4458 = vmatprep.subr.bf16.mxu1 %v5439_v9  ;;  %v6610_v9 = vld [vmem:[#allocation20_spill] sm:$0xff] }
 0x112   : > { %1386 = vmatprep.mubr.f32.mxu0 %v6603_v0  ;;  %1749 = vmatprep.mubr.f32.mxu1 %v6603_v0 }
 0x114   : > { %4300 = vmatpush1.bf16.msra.mxu0 %v5445_v14  ;;  %4460 = vmatpush1.bf16.msra.mxu1 %v5445_v14  ;;  %v6611_v14 = vld [vmem:[#allocation21_spill] sm:$0xff] }
 0x115   : > { %4302 = vmatprep.subr.bf16.mxu0 %v5449_v15  ;;  %4462 = vmatprep.subr.bf16.mxu1 %v5449_v15  ;;  %v6612_v15 = vld [vmem:[#allocation22_spill] sm:$0xff] }
 0x118   : > { %4304 = vmatpush1.bf16.msra.mxu0 %v5453_v20  ;;  %4464 = vmatpush1.bf16.msra.mxu1 %v5453_v20  ;;  %v6613_v20 = vld [vmem:[#allocation23_spill] sm:$0xff] }
 0x119   : > { %4306 = vmatprep.subr.bf16.mxu0 %v5457_v21  ;;  %4466 = vmatprep.subr.bf16.mxu1 %v5457_v21  ;;  %v6614_v21 = vld [vmem:[#allocation24_spill] sm:$0xff] }
 0x11c   : > { %4308 = vmatpush1.bf16.msra.mxu0 %v5461_v26  ;;  %4468 = vmatpush1.bf16.msra.mxu1 %v5461_v26  ;;  %v6615_v26 = vld [vmem:[#allocation25_spill] sm:$0xff] }
 0x11d   : > { %4310 = vmatprep.subr.bf16.mxu0 %v5465_v27  ;;  %4470 = vmatprep.subr.bf16.mxu1 %v5465_v27  ;;  %v6616_v27 = vld [vmem:[#allocation26_spill] sm:$0xff] }
 0x120   : > { %4312 = vmatpush1.bf16.msra.mxu0 %v5469_v32  ;;  %4472 = vmatpush1.bf16.msra.mxu1 %v5469_v32  ;;  %v6617_v32 = vld [vmem:[#allocation27_spill] sm:$0xff] }
 0x121   : > { %4314 = vmatprep.subr.bf16.mxu0 %v5473_v33  ;;  %4474 = vmatprep.subr.bf16.mxu1 %v5473_v33  ;;  %v6618_v33 = vld [vmem:[#allocation28_spill] sm:$0xff] }
 0x124   : > { %4316 = vmatpush1.bf16.msra.mxu0 %v5478_v38  ;;  %4476 = vmatpush1.bf16.msra.mxu1 %v5478_v38  ;;  %v6619_v38 = vld [vmem:[#allocation29_spill] sm:$0xff] }
 0x125   : > { %4318 = vmatprep.subr.bf16.mxu0 %v5482_v39  ;;  %4478 = vmatprep.subr.bf16.mxu1 %v5482_v39  ;;  %v6620_v39 = vld [vmem:[#allocation30_spill] sm:$0xff] }
 0x128   : > { %4320 = vmatpush1.bf16.msra.mxu0 %v5487_v44  ;;  %4480 = vmatpush1.bf16.msra.mxu1 %v5487_v44  ;;  %v6621_v44 = vld [vmem:[#allocation31_spill] sm:$0xff] }
 0x129   : > { %4322 = vmatprep.subr.bf16.mxu0 %v5491_v45  ;;  %4482 = vmatprep.subr.bf16.mxu1 %v5491_v45  ;;  %v6622_v45 = vld [vmem:[#allocation32_spill] sm:$0xff] }
 0x12c   : > { %4324 = vmatpush1.bf16.msra.mxu0 %v5495_v50  ;;  %4484 = vmatpush1.bf16.msra.mxu1 %v5495_v50  ;;  %v6623_v50 = vld [vmem:[#allocation33_spill] sm:$0xff] }
 0x12d   : > { %4326 = vmatprep.subr.bf16.mxu0 %v5499_v51  ;;  %4486 = vmatprep.subr.bf16.mxu1 %v5499_v51  ;;  %v6624_v51 = vld [vmem:[#allocation34_spill] sm:$0xff] }
 0x12f   : > { %1387 = vmatmul.mubr.f32.vlgmr.msra.gmra.mrb[2].mxu0 %v5653_v16  ;;  %1750 = vmatmul.mubr.f32.vlgmr.msra.gmra.mrb[2].mxu1 %v5724_v52 }
 0x130   : > { %4328 = vmatpush1.bf16.msra.mxu0 %v5511_v57  ;;  %4488 = vmatpush1.bf16.msra.mxu1 %v5511_v57  ;;  %v5938_v57 = vld [vmem:[%s5504_s17 + $0x11] sm:$0x7f] }
 0x131   : > { %4330 = vmatprep.subr.bf16.mxu0 %v5518_v59  ;;  %4490 = vmatprep.subr.bf16.mxu1 %v5518_v59  ;;  %v6626_v59 = vld [vmem:[#allocation36_spill] sm:$0xff] }
 0x132   : > { %1457 = vmatprep.mubr.f32.mxu0 %v6603_v0  ;;  %1820 = vmatprep.mubr.f32.mxu1 %v6603_v0 }
 0x134   : > { %4332 = vmatpush1.bf16.msra.mxu0 %v5524_v1  ;;  %4492 = vmatpush1.bf16.msra.mxu1 %v5524_v1  ;;  %v6627_v1 = vld [vmem:[#allocation37_spill] sm:$0xff] }
 0x135   : > { %4334 = vmatprep.subr.bf16.mxu0 %v5528_v2  ;;  %4494 = vmatprep.subr.bf16.mxu1 %v5528_v2  ;;  %v6628_v2 = vld [vmem:[#allocation38_spill] sm:$0xff] }
 0x138   : > { %4336 = vmatpush1.bf16.msra.mxu0 %v5534_v10  ;;  %4496 = vmatpush1.bf16.msra.mxu1 %v5534_v10  ;;  %v6629_v10 = vld [vmem:[#allocation39_spill] sm:$0xff] }
 0x139   : > { %4338 = vmatprep.subr.bf16.mxu0 %v5538_v11  ;;  %4498 = vmatprep.subr.bf16.mxu1 %v5538_v11  ;;  %v6630_v11 = vld [vmem:[#allocation40_spill] sm:$0xff] }
 0x13c   : > { %4340 = vmatpush1.bf16.msra.mxu0 %v5542_v18  ;;  %4500 = vmatpush1.bf16.msra.mxu1 %v5542_v18  ;;  %v6631_v18 = vld [vmem:[#allocation41_spill] sm:$0xff] }
 0x13d   : > { %4342 = vmatprep.subr.bf16.mxu0 %v5546_v19  ;;  %4502 = vmatprep.subr.bf16.mxu1 %v5546_v19  ;;  %v6632_v19 = vld [vmem:[#allocation42_spill] sm:$0xff] }
 0x140   : > { %4344 = vmatpush1.bf16.msra.mxu0 %v5550_v28  ;;  %4504 = vmatpush1.bf16.msra.mxu1 %v5550_v28  ;;  %v6633_v28 = vld [vmem:[#allocation43_spill] sm:$0xff] }
 0x141   : > { %4346 = vmatprep.subr.bf16.mxu0 %v5554_v29  ;;  %4506 = vmatprep.subr.bf16.mxu1 %v5554_v29  ;;  %v2062_v29 = vld [vmem:[#allocation5 + $0x8] sm:$0xff] }
 0x144   : > { %4348 = vmatpush1.bf16.msra.mxu0 %v5558_v36  ;;  %4508 = vmatpush1.bf16.msra.mxu1 %v5558_v36  ;;  %v2064_v36 = vld [vmem:[#allocation5 + $0x18] sm:$0xff] }
 0x145   : > { %4350 = vmatprep.subr.bf16.mxu0 %v5562_v37  ;;  %4510 = vmatprep.subr.bf16.mxu1 %v5562_v37  ;;  %v2085_v37 = vld [vmem:[#allocation5 + $0xb8] sm:$0xff] }
 0x148   : > { %4352 = vmatpush1.bf16.msra.mxu0 %v5566_v46  ;;  %4512 = vmatpush1.bf16.msra.mxu1 %v5566_v46  ;;  %v2087_v46 = vld [vmem:[#allocation5 + $0xc8] sm:$0xff] }
 0x149   : > { %4354 = vmatprep.subr.bf16.mxu0 %v5570_v47  ;;  %4514 = vmatprep.subr.bf16.mxu1 %v5570_v47  ;;  %v5974_v47 = vpack.c.bf16 %v2064_v36, %v2062_v29  ;;  %v6045_v29 = vld [vmem:[%s6486_s2] ss:$0 sm:$0xff] }
 0x14c   : > { %4356 = vmatpush1.bf16.msra.mxu0 %v5574_v54  ;;  %4516 = vmatpush1.bf16.msra.mxu1 %v5574_v54  ;;  %v2061_v54 = vld [vmem:[#allocation5] sm:$0xff] }
 0x14d   : > { %4358 = vmatprep.subr.bf16.mxu0 %v5578_v55  ;;  %4518 = vmatprep.subr.bf16.mxu1 %v5578_v55  ;;  %v2063_v55 = vld [vmem:[#allocation5 + $0x10] sm:$0xff] }
 0x14f   : > { %1458 = vmatmul.mubr.f32.vlgmr.msra.gmra.mrb[2].mxu0 %v5514_v58  ;;  %1821 = vmatmul.mubr.f32.vlgmr.msra.gmra.mrb[2].mxu1 %v5653_v16  ;;  %v6625_v58 = vld [vmem:[#allocation35_spill] sm:$0xff] }
 0x150   : > { %4360 = vmatpush1.bf16.msra.mxu0 %v5583_v5  ;;  %4520 = vmatpush1.bf16.msra.mxu1 %v5583_v5  ;;  %v2066_v5 = vld [vmem:[#allocation5 + $0x28] sm:$0xff]  ;;  %v2088_v16 = vld [vmem:[#allocation5 + $0xd0] sm:$0xff] }
 0x151   : > { %4362 = vmatprep.subr.bf16.mxu0 %v5587_v6  ;;  %4522 = vmatprep.subr.bf16.mxu1 %v5587_v6  ;;  %v5976_v6 = vpack.c.bf16 %v2087_v46, %v2085_v37  ;;  %v2414_v37 = vld [vmem:[#allocation5 + $0x160] sm:$0xff]  ;;  %v2416_v46 = vld [vmem:[#allocation5 + $0x170] sm:$0xff] }
 0x152   : > { %1528 = vmatprep.mubr.f32.mxu0 %v6603_v0  ;;  %1891 = vmatprep.mubr.f32.mxu1 %v6603_v0 }
 0x154   : > { %4364 = vmatpush1.bf16.msra.mxu0 %v5592_v17  ;;  %4524 = vmatpush1.bf16.msra.mxu1 %v5592_v17  ;;  %v2068_v17 = vld [vmem:[#allocation5 + $0x38] sm:$0xff] }
 0x155   : > { %4366 = vmatprep.subr.bf16.mxu0 %v5596_v22  ;;  %4526 = vmatprep.subr.bf16.mxu1 %v5596_v22  ;;  %v2084_v22 = vld [vmem:[#allocation5 + $0xb0] sm:$0xff] }
 0x158   : > { %4368 = vmatpush1.bf16.msra.mxu0 %v5602_v56  ;;  %4528 = vmatpush1.bf16.msra.mxu1 %v5602_v56  ;;  %v2086_v56 = vld [vmem:[#allocation5 + $0xc0] sm:$0xff] }
 0x159   : > { %4370 = vmatprep.subr.bf16.mxu0 %v5606_v31  ;;  %4530 = vmatprep.subr.bf16.mxu1 %v5606_v31  ;;  %v2089_v31 = vld [vmem:[#allocation5 + $0xd8] sm:$0xff] }
 0x15c   : > { %4372 = vmatpush1.bf16.msra.mxu0 %v5610_v42  ;;  %4532 = vmatpush1.bf16.msra.mxu1 %v5610_v42  ;;  %v2091_v42 = vld [vmem:[#allocation5 + $0xe8] sm:$0xff] }
 0x15d   : > { %4374 = vmatprep.subr.bf16.mxu0 %v5614_v43  ;;  %4534 = vmatprep.subr.bf16.mxu1 %v5614_v43  ;;  %v1973_v43 = vld [vmem:[%s5504_s17 + $0x19] sm:$0x7f] }
 0x160   : > { %4376 = vmatpush1.bf16.msra.mxu0 %v5618_v60  ;;  %4536 = vmatpush1.bf16.msra.mxu1 %v5618_v60  ;;  %v5981_v60 = vpack.c.bf16 %v2063_v55, %v2061_v54  ;;  %v2419_v54 = vld [vmem:[#allocation5 + $0x188] sm:$0xff]  ;;  %v2421_v55 = vld [vmem:[#allocation5 + $0x198] sm:$0xff] }
 0x161   : > { %4378 = vmatprep.subr.bf16.mxu0 %v5622_v61  ;;  %4538 = vmatprep.subr.bf16.mxu1 %v5622_v61  ;;  %v5984_v61 = vpack.c.bf16 %v2068_v17, %v2066_v5  ;;  %v6048_v17 = vpack.c.bf16 %v2416_v46, %v2414_v37  ;;  %v2598_v37 = vld [vmem:[#allocation5 + $0x240] sm:$0xff]  ;;  %v2096_v46 = vld [vmem:[#allocation5 + $0x110] sm:$0xff] }
 0x164   : > { %4380 = vmatpush1.bf16.msra.mxu0 %v5626_v12  ;;  %4540 = vmatpush1.bf16.msra.mxu1 %v5626_v12  ;;  %v2065_v12 = vld [vmem:[#allocation5 + $0x20] sm:$0xff] }
 0x165   : > { %4382 = vmatprep.subr.bf16.mxu0 %v5630_v13  ;;  %4542 = vmatprep.subr.bf16.mxu1 %v5630_v13  ;;  %v2067_v13 = vld [vmem:[#allocation5 + $0x30] sm:$0xff] }
 0x168   : > { %4384 = vmatpush1.bf16.msra.mxu0 %v5634_v30  ;;  %4544 = vmatpush1.bf16.msra.mxu1 %v5634_v30  ;;  %v2070_v30 = vld [vmem:[#allocation5 + $0x48] sm:$0xff] }
 0x169   : > { %4386 = vmatprep.subr.bf16.mxu0 %v5638_v34  ;;  %4546 = vmatprep.subr.bf16.mxu1 %v5638_v34  ;;  %v5987_v34 = vpack.c.bf16 %v2086_v56, %v2084_v22  ;;  %v6052_v56 = vpack.c.bf16 %v2421_v55, %v2419_v54  ;;  %v2098_v54 = vld [vmem:[#allocation5 + $0x120] sm:$0xff]  ;;  %v2601_v55 = vld [vmem:[#allocation5 + $0x258] sm:$0xff] }
 0x16c   : > { %4388 = vmatpush1.bf16.msra.mxu0 %v6608_v4  ;;  %4548 = vmatpush1.bf16.msra.mxu1 %v6608_v4  ;;  %v2094_v4 = vld [vmem:[#allocation5 + $0x100] sm:$0xff] }
 0x16d   : > { %4390 = vmatprep.subr.bf16.mxu0 %v6609_v8  ;;  %4550 = vmatprep.subr.bf16.mxu1 %v6609_v8  ;;  %v2097_v8 = vld [vmem:[#allocation5 + $0x118] sm:$0xff] }
 0x16f   : > { %1529 = vmatmul.mubr.f32.vlgmr.msra.gmra.mrb[2].mxu0 %v5724_v52  ;;  %1892 = vmatmul.mubr.f32.vlgmr.msra.gmra.mrb[2].mxu1 %v5791_v63  ;;  %v5989_v52 = vpack.c.bf16 %v2091_v42, %v2089_v31  ;;  %v2418_v31 = vld [vmem:[#allocation5 + $0x180] sm:$0xff]  ;;  %v2420_v42 = vld [vmem:[#allocation5 + $0x190] sm:$0xff] }
 0x170   : > { %4392 = vmatpush1.bf16.msra.mxu0 %v6610_v9  ;;  %4552 = vmatpush1.bf16.msra.mxu1 %v6610_v9  ;;  %v2099_v9 = vld [vmem:[#allocation5 + $0x128] sm:$0xff] }
 0x171   : > { %4394 = vmatprep.subr.bf16.mxu0 %v6611_v14  ;;  %4554 = vmatprep.subr.bf16.mxu1 %v6611_v14  ;;  %v6007_v14 = vpack.c.bf16 %v2071_v53, %v2069_v41  ;;  %v2426_v53 = vld [vmem:[#allocation5 + $0x1c0] sm:$0xff] }
 0x172   : > { %1601 = vmatprep.mubr.f32.mxu0 %v6603_v0  ;;  %1964 = vmatprep.mubr.f32.mxu1 %v6603_v0 }
 0x174   : > { %4396 = vmatpush1.bf16.msra.mxu0 %v6612_v15  ;;  %4556 = vmatpush1.bf16.msra.mxu1 %v6612_v15 }
 0x175   : > { %4398 = vmatprep.subr.bf16.mxu0 %v6613_v20  ;;  %4558 = vmatprep.subr.bf16.mxu1 %v6613_v20  ;;  %v2073_v20 = vld [vmem:[#allocation5 + $0x60] sm:$0xff] }
 0x178   : > { %4400 = vmatpush1.bf16.msra.mxu0 %v6614_v21  ;;  %4560 = vmatpush1.bf16.msra.mxu1 %v6614_v21  ;;  %v2075_v21 = vld [vmem:[#allocation5 + $0x70] sm:$0xff] }
 0x179   : > { %4402 = vmatprep.subr.bf16.mxu0 %v6615_v26  ;;  %4562 = vmatprep.subr.bf16.mxu1 %v6615_v26 }
 0x17c   : > { %4404 = vmatpush1.bf16.msra.mxu0 %v6616_v27  ;;  %4564 = vmatpush1.bf16.msra.mxu1 %v6616_v27  ;;  %v2078_v27 = vld [vmem:[#allocation5 + $0x88] sm:$0xff] }
 0x17d   : > { %4406 = vmatprep.subr.bf16.mxu0 %v6617_v32  ;;  %4566 = vmatprep.subr.bf16.mxu1 %v6617_v32  ;;  %v2080_v32 = vld [vmem:[#allocation5 + $0x98] sm:$0xff] }
 0x180   : > { %4408 = vmatpush1.bf16.msra.mxu0 %v6618_v33  ;;  %4568 = vmatpush1.bf16.msra.mxu1 %v6618_v33  ;;  %v6016_v33 = vpack.c.bf16 %v2099_v9, %v2097_v8  ;;  %v2430_v9 = vld [vmem:[#allocation5 + $0x1e0] sm:$0xff] }
 0x181   : > { %4410 = vmatprep.subr.bf16.mxu0 %v6619_v38  ;;  %4570 = vmatprep.subr.bf16.mxu1 %v6619_v38  ;;  %v6019_v38 = vpack.c.bf16 %v2075_v21, %v2073_v20  ;;  %v2432_v20 = vld [vmem:[#allocation5 + $0x1f0] sm:$0xff] }
 0x182   : > { %v6076_v21 = vpack.c.bf16 %v2432_v20, %v2430_v9 }
 0x184   : > { %4412 = vmatpush1.bf16.msra.mxu0 %v6620_v39  ;;  %4572 = vmatpush1.bf16.msra.mxu1 %v6620_v39  ;;  %v6022_v39 = vpack.c.bf16 %v2080_v32, %v2078_v27  ;;  %v6079_v27 = vld [vmem:[#allocation5 + $0x208] sm:$0xf]  ;;  %v2593_v32 = vld [vmem:[#allocation5 + $0x218] sm:$0xff] }
 0x185   : > { %4414 = vmatprep.subr.bf16.mxu0 %v6621_v44  ;;  %4574 = vmatprep.subr.bf16.mxu1 %v6621_v44  ;;  %v2077_v44 = vld [vmem:[#allocation5 + $0x80] sm:$0xff] }
 0x188   : > { %4416 = vmatpush1.bf16.msra.mxu0 %v6622_v45  ;;  %4576 = vmatpush1.bf16.msra.mxu1 %v6622_v45  ;;  %v2079_v45 = vld [vmem:[#allocation5 + $0x90] sm:$0xff] }
 0x189   : > { %4418 = vmatprep.subr.bf16.mxu0 %v6623_v50  ;;  %4578 = vmatprep.subr.bf16.mxu1 %v6623_v50  ;;  %v6027_v50 = vpack.c.bf16 %v2079_v45, %v2077_v44  ;;  %v2595_v44 = vld [vmem:[#allocation5 + $0x228] sm:$0xff]  ;;  %v2592_v45 = vld [vmem:[#allocation5 + $0x210] sm:$0xff] }
 0x18c   : > { %4420 = vmatpush1.bf16.msra.mxu0 %v6624_v51  ;;  %4580 = vmatpush1.bf16.msra.mxu1 %v6624_v51  ;;  %v6030_v51 = vld [vmem:[#allocation5 + $0xa8] sm:$0xf] }
 0x18d   : > { %4422 = vmatprep.subr.bf16.mxu0 %v6625_v58  ;;  %4582 = vmatprep.subr.bf16.mxu1 %v6625_v58  ;;  %v2417_v58 = vld [vmem:[#allocation5 + $0x178] sm:$0xff] }
 0x18f   : > { %1602 = vmatmul.mubr.f32.vlgmr.msra.gmra.mrb[2].mxu0 %v5791_v63  ;;  %1965 = vmatmul.mubr.f32.vlgmr.msra.gmra.mrb[2].mxu1 %v5938_v57  ;;  %v2092_v63 = vld [vmem:[#allocation5 + $0xf0] sm:$0xff] }
 0x190   : > { %4424 = vmatpush1.bf16.msra.mxu0 %v6626_v59  ;;  %4584 = vmatpush1.bf16.msra.mxu1 %v6626_v59  ;;  %v6013_v26 = vpack.c.bf16 %v2094_v4, %v2092_v63  ;;  %v6035_v59 = vld [vmem:[#allocation5 + $0xa0] sm:$0xf]  ;;  %v2433_v63 = vld [vmem:[#allocation5 + $0x1f8] sm:$0xff] }
 0x191   : > { %4426 = vmatprep.subr.bf16.mxu0 %v6627_v1  ;;  %4586 = vmatprep.subr.bf16.mxu1 %v6627_v1 }
 0x192   : > { %1675 = vmatprep.mubr.f32.mxu0 %v6603_v0  ;;  %2038 = vmatprep.mubr.f32.mxu1 %v6603_v0 }
 0x194   : > { %4428 = vmatpush1.bf16.msra.mxu0 %v6628_v2  ;;  %4588 = vmatpush1.bf16.msra.mxu1 %v6628_v2 }
 0x195   : > { %4430 = vmatprep.subr.bf16.mxu0 %v6629_v10  ;;  %4590 = vmatprep.subr.bf16.mxu1 %v6629_v10 }
 0x198   : > { %4432 = vmatpush1.bf16.msra.mxu0 %v6630_v11  ;;  %4592 = vmatpush1.bf16.msra.mxu1 %v6630_v11 }
 0x199   : > { %4434 = vmatprep.subr.bf16.mxu0 %v6631_v18  ;;  %4594 = vmatprep.subr.bf16.mxu1 %v6631_v18 }
 0x19c   : > { %4436 = vmatpush1.bf16.msra.mxu0 %v6632_v19  ;;  %4596 = vmatpush1.bf16.msra.mxu1 %v6632_v19 }
 0x19d   : > { %4438 = vmatprep.subr.bf16.mxu0 %v6633_v28  ;;  %4598 = vmatprep.subr.bf16.mxu1 %v6633_v28 }
 0x1a0   : > { %4440 = vmatpush1.bf16.msra.mxu0 %v5760_v62  ;;  %4600 = vmatpush1.bf16.msra.mxu1 %v5760_v62  ;;  %v2090_v62 = vld [vmem:[#allocation5 + $0xe0] sm:$0xff] }
 0x1a1   : > { %4442 = vmatprep.subr.bf16.mxu0 %v5764_v7  ;;  %4602 = vmatprep.subr.bf16.mxu1 %v5764_v7  ;;  %v2095_v7 = vld [vmem:[#allocation5 + $0x108] sm:$0xff]  ;;  %v6000_v23 = vpack.c.bf16 %v2090_v62, %v2088_v16  ;;  %v2424_v16 = vld [vmem:[#allocation5 + $0x1b0] sm:$0xff] }
 0x1a2   : > { %v2427_v62 = vld [vmem:[#allocation5 + $0x1c8] sm:$0xff] }
 0x1a4   : > { %4444 = vmatpush1.bf16.msra.mxu0 %v5768_v40  ;;  %4604 = vmatpush1.bf16.msra.mxu1 %v5768_v40  ;;  %v2093_v40 = vld [vmem:[#allocation5 + $0xf8] sm:$0xff] }
 0x1a5   : > { %4446 = vmatprep.subr.bf16.mxu0 %v5772_v48  ;;  %4606 = vmatprep.subr.bf16.mxu1 %v5772_v48  ;;  %v5993_v48 = vpack.c.bf16 %v2067_v13, %v2065_v12  ;;  %v2425_v12 = vld [vmem:[#allocation5 + $0x1b8] sm:$0xff]  ;;  %v6057_v13 = vpack.c.bf16 %v2420_v42, %v2418_v31  ;;  %v6095_v31 = vpack.c.bf16 %v2098_v54, %v2096_v46  ;;  %v2608_v54 = vld [vmem:[#allocation5 + $0x290] sm:$0xff] }
 0x1a8   : > { %4448 = vmatpush1.bf16.msra.mxu0 %v5776_v49  ;;  %4608 = vmatpush1.bf16.msra.mxu1 %v5776_v49  ;;  %v2072_v49 = vld [vmem:[#allocation5 + $0x58] sm:$0xff] }
 0x1a9   : > { %4450 = vmatprep.subr.bf16.mxu0 %v5780_v25  ;;  %4610 = vmatprep.subr.bf16.mxu1 %v5780_v25  ;;  %v5997_v3 = vpack.c.bf16 %v2072_v49, %v2070_v30  ;;  %v2074_v25 = vld [vmem:[#allocation5 + $0x68] sm:$0xff]  ;;  %v2422_v49 = vld [vmem:[#allocation5 + $0x1a0] sm:$0xff] }
 0x1aa   : > { %v6010_v15 = vpack.c.bf16 %v2076_v24, %v2074_v25  ;;  %v2428_v25 = vld [vmem:[#allocation5 + $0x1d0] sm:$0xff]  ;;  %v2431_v24 = vld [vmem:[#allocation5 + $0x1e8] sm:$0xff] }
 0x1ab   : > { %v6070_v4 = vpack.c.bf16 %v2428_v25, %v2426_v53  ;;  %v6073_v8 = vpack.c.bf16 %v2433_v63, %v2431_v24  ;;  %v2100_v53 = vld [vmem:[#allocation5 + $0x130] sm:$0xff]  ;;  %v2102_v25 = vld [vmem:[#allocation5 + $0x140] sm:$0xff]  ;;  %v2605_v24 = vld [vmem:[#allocation5 + $0x278] sm:$0xff] }
 0x1ac   : > { %4452 = vmatpush1.bf16.msra.mxu0 %v5784_v35  ;;  %4612 = vmatpush1.bf16.msra.mxu1 %v5784_v35  ;;  %v6003_v35 = vpack.c.bf16 %v2095_v7, %v2093_v40  ;;  %v2429_v40 = vld [vmem:[#allocation5 + $0x1d8] sm:$0xff]  ;;  %v6064_v7 = vpack.c.bf16 %v2424_v16, %v2422_v49  ;;  %v2103_v49 = vld [vmem:[#allocation5 + $0x148] sm:$0xff]  ;;  %v6111_v9 = vpack.c.bf16 %v2102_v25, %v2100_v53 }
 0x1ad   : > { %4654 = vmatprep.subr.bf16.mxu0 %v5974_v47  ;;  %4614 = vmatprep.subr.bf16.mxu1 %v5976_v6  ;;  %v6067_v41 = vpack.c.bf16 %v2429_v40, %v2427_v62  ;;  %v2602_v62 = vld [vmem:[#allocation5 + $0x260] sm:$0xff]  ;;  %v2607_v63 = vld [vmem:[#allocation5 + $0x288] sm:$0xff] }
 0x1af   : > { %1676 = vmatmul.mubr.f32.vlgmr.msra.gmra.mrb[2].mxu0 %v5938_v57  ;;  %2039 = vmatmul.mubr.f32.vlgmr.msra.gmra.mrb[2].mxu1 %v1973_v43  ;;  %v2415_v57 = vld [vmem:[#allocation5 + $0x168] sm:$0xff] }
 0x1b0   : > { %4656 = vmatpush1.bf16.msra.mxu0 %v5981_v60  ;;  %2335 = vmatprep.mubr.f32.mxu0 %v6603_v0  ;;  %v6037_v1 = vpack.c.bf16 %v2417_v58, %v2415_v57  ;;  %v2423_v43 = vld [vmem:[#allocation5 + $0x1a8] sm:$0xff]  ;;  %v2594_v57 = vld [vmem:[#allocation5 + $0x220] sm:$0xff]  ;;  %v2597_v58 = vld [vmem:[#allocation5 + $0x238] sm:$0xff] }
 0x1b1   : > { %4658 = vmatprep.subr.bf16.mxu0 %v5984_v61  ;;  %4616 = vmatpush1.bf16.msra.mxu1 %v5987_v34  ;;  %v6061_v30 = vpack.c.bf16 %v2425_v12, %v2423_v43  ;;  %v2600_v43 = vld [vmem:[#allocation5 + $0x250] sm:$0xff]  ;;  %v2101_v12 = vld [vmem:[#allocation5 + $0x138] sm:$0xff] }
 0x1b2   : > { %4618 = vmatprep.subr.bf16.mxu1 %v5989_v52  ;;  %2181 = vmatprep.mubr.f32.mxu1 %v6603_v0  ;;  %v6108_v40 = vpack.c.bf16 %v2103_v49, %v2101_v12  ;;  %v6115_v20 = vpack.c.bf16 %v2602_v62, %v2600_v43  ;;  %v6140_v43 = vld [vmem:[#allocation5 + $0x2b8] sm:$0xf]  ;;  %v2771_v12 = vld [vmem:[#allocation5 + $0x2c8] sm:$0xff]  ;;  %v6145_v62 = vld [vmem:[#allocation5 + $0x2b0] sm:$0xf] }
 0x1b3   : > { %6634 = vst [vmem:[#allocation18_spill] sm:$0xff] %v6140_v43  ;;  %v2773_v49 = vld [vmem:[#allocation5 + $0x2d8] sm:$0xff]  ;;  %6635 = vst [vmem:[#allocation19_spill] sm:$0xff] %v6145_v62 }
 0x1b4   : > { %4660 = vmatpush1.bf16.msra.mxu0 %v5993_v48  ;;  %v6147_v53 = vpack.c.bf16 %v2773_v49, %v2771_v12 }
 0x1b5   : > { %4662 = vmatprep.subr.bf16.mxu0 %v5997_v3  ;;  %4620 = vmatpush1.bf16.msra.mxu1 %v6000_v23 }
 0x1b6   : > { %4622 = vmatprep.subr.bf16.mxu1 %v6003_v35  ;;  %6636 = vst [vmem:[#allocation20_spill] sm:$0xff] %v6147_v53 }
 0x1b8   : > { %4664 = vmatpush1.bf16.msra.mxu0 %v6007_v14 }
 0x1b9   : > { %4666 = vmatprep.subr.bf16.mxu0 %v6010_v15  ;;  %4624 = vmatpush1.bf16.msra.mxu1 %v6013_v26 }
 0x1ba   : > { %4626 = vmatprep.subr.bf16.mxu1 %v6016_v33 }
 0x1bc   : > { %4668 = vmatpush1.bf16.msra.mxu0 %v6019_v38 }
 0x1bd   : > { %4670 = vmatprep.subr.bf16.mxu0 %v6022_v39  ;;  %4628 = vmatpush1.bf16.msra.mxu1 %v6095_v31 }
 0x1be   : > { %4630 = vmatprep.subr.bf16.mxu1 %v6108_v40 }
 0x1c0   : > { %4672 = vmatpush1.bf16.msra.mxu0 %v6027_v50 }
 0x1c1   : > { %3680 = vmatprep.subr.msk.mxu0 %vm2110_vm0, %v6030_v51  ;;  %4632 = vmatpush1.bf16.msra.mxu1 %v6111_v9 }
 0x1c4   : > { %3681 = vmatpush1.msk.msra.mxu0 %vm2110_vm0, %v6035_v59 }
 0x1c5   : > { %4694 = vmatprep.subr.bf16.mxu0 %v6037_v1 }
 0x1e2   : > { %v951_v2 = vpop.f32.mrb[0].mxu0  ;;  %v1314_v10 = vpop.f32.mrb[0].mxu1 }
 0x1e3   : > { %v953_v11 = vpop.f32.mrb[1].mxu0  ;;  %v1316_v18 = vpop.f32.mrb[1].mxu1 }
 0x1e4   : > { %v958_v19 = vmax.f32 %v951_v2, %v953_v11  ;;  %v1321_v28 = vmax.f32 %v1314_v10, %v1316_v18  ;;  %v2599_v2 = vld [vmem:[#allocation5 + $0x248] sm:$0xff]  ;;  %v6084_v10 = vld [vmem:[#allocation5 + $0x200] sm:$0xf]  ;;  %v6086_v11 = vpack.c.bf16 %v2595_v44, %v2593_v32  ;;  %v6088_v18 = vpack.c.bf16 %v2594_v57, %v2592_v45  ;;  %v2604_v44 = vld [vmem:[#allocation5 + $0x270] sm:$0xff] }
 0x1e5   : > { %v6119_v32 = vpack.c.bf16 %v2607_v63, %v2605_v24  ;;  %v2606_v45 = vld [vmem:[#allocation5 + $0x280] sm:$0xff]  ;;  %v2609_v57 = vld [vmem:[#allocation5 + $0x298] sm:$0xff] }
 0x1e6   : > { %v2048_v36 = vmax.f32 %v958_v19, %v1321_v28  ;;  %v2596_v19 = vld [vmem:[#allocation5 + $0x230] sm:$0xff] }
 0x1e7   : > { %v6102_v42 = vpack.c.bf16 %v2598_v37, %v2596_v19  ;;  %v6125_v19 = vld [vmem:[#allocation5 + $0x150] sm:$0xf]  ;;  %v6128_v37 = vpack.c.bf16 %v2606_v45, %v2604_v44 }
 0x1e8   : > { %v2056_v5 = vadd.f32 %v6045_v29, %v2048_v36  ;;  %v6091_v36 = vpack.c.bf16 %v2599_v2, %v2597_v58  ;;  %v2611_v58 = vld [vmem:[#allocation5 + $0x2a8] sm:$0xff]  ;;  %v6121_v2 = vld [vmem:[#allocation5 + $0x158] sm:$0xf] }
 0x1e9   : > { %3674 = vmatprep.subr.msk.mxu1 %vm2110_vm0, %v6121_v2  ;;  %v6133_v46 = vpack.c.bf16 %v2611_v58, %v2609_v57 }
 0x1ea   : > { %v6050_v22 = vmax.f32 %v2056_v5, 0.0  ;;  %v2603_v5 = vld [vmem:[#allocation5 + $0x268] sm:$0xff]  ;;  %3675 = vmatpush1.msk.msra.mxu1 %vm2110_vm0, %v6125_v19 }
 0x1eb   : > { %v6106_v16 = vpack.c.bf16 %v2603_v5, %v2601_v55  ;;  %v2610_v55 = vld [vmem:[#allocation5 + $0x2a0] sm:$0xff]  ;;  %4634 = vmatprep.subr.bf16.mxu1 %v5976_v6 }
 0x1ec   : > { %3682 = vmatmul.mubr.msk.f32.vlgmr.msra.gmra.mrb[4].mxu0 %vm2106_vm1, %v6050_v22  ;;  %v6560_v28 = vrot.slane %v6050_v22, 1  ;;  %v6137_v5 = vpack.c.bf16 %v2610_v55, %v2608_v54  ;;  %v2770_v54 = vld [vmem:[#allocation5 + $0x2c0] sm:$0xff]  ;;  %v2772_v55 = vld [vmem:[#allocation5 + $0x2d0] sm:$0xff] }
 0x1ed   : > { %4696 = vmatpush1.bf16.msra.mxu0 %v6048_v17  ;;  %2506 = vmatprep.mubr.f32.mxu0 %v6603_v0  ;;  %v6155_v49 = vpack.c.bf16 %v2772_v55, %v2770_v54  ;;  %v2784_v54 = vld [vmem:[#allocation5 + $0x330] sm:$0xff]  ;;  %v2787_v55 = vld [vmem:[#allocation5 + $0x348] sm:$0xff] }
 0x1ee   : > { %4698 = vmatprep.subr.bf16.mxu0 %v6052_v56 }
 0x1f1   : > { %4700 = vmatpush1.bf16.msra.mxu0 %v6057_v13 }
 0x1f2   : > { %4702 = vmatprep.subr.bf16.mxu0 %v6061_v30 }
 0x1f5   : > { %4704 = vmatpush1.bf16.msra.mxu0 %v6064_v7 }
 0x1f6   : > { %4706 = vmatprep.subr.bf16.mxu0 %v6067_v41 }
 0x1f9   : > { %4708 = vmatpush1.bf16.msra.mxu0 %v6070_v4 }
 0x1fa   : > { %4710 = vmatprep.subr.bf16.mxu0 %v6073_v8 }
 0x1fd   : > { %4712 = vmatpush1.bf16.msra.mxu0 %v6076_v21 }
 0x1fe   : > { %3686 = vmatprep.subr.msk.mxu0 %vm2110_vm0, %v6079_v27 }
 0x201   : > { %3687 = vmatpush1.msk.msra.mxu0 %vm2110_vm0, %v6084_v10 }
 0x202   : > { %3688 = vmatmul.mubr.msk.f32.vlgmr.msra.gmra.mrb[4].mxu0 %vm2106_vm1, %v6560_v28  ;;  %4734 = vmatprep.subr.bf16.mxu0 %v6086_v11  ;;  %v2775_v28 = vld [vmem:[#allocation5 + $0x2e8] sm:$0xff] }
 0x203   : > { %4736 = vmatpush1.bf16.msra.mxu0 %v6088_v18  ;;  %2684 = vmatprep.mubr.f32.mxu0 %v6603_v0 }
 0x204   : > { %4738 = vmatprep.subr.bf16.mxu0 %v6091_v36 }
 0x207   : > { %4740 = vmatpush1.bf16.msra.mxu0 %v6102_v42 }
 0x208   : > { %4742 = vmatprep.subr.bf16.mxu0 %v6106_v16 }
 0x20b   : > { %4744 = vmatpush1.bf16.msra.mxu0 %v6115_v20 }
 0x20c   : > { %4746 = vmatprep.subr.bf16.mxu0 %v6119_v32 }
 0x20f   : > { %4748 = vmatpush1.bf16.msra.mxu0 %v6128_v37 }
 0x210   : > { %4750 = vmatprep.subr.bf16.mxu0 %v6133_v46 }
 0x213   : > { %4752 = vmatpush1.bf16.msra.mxu0 %v6137_v5 }
 0x214   : > { %3692 = vmatprep.subr.msk.mxu0 %vm2110_vm0, %v6140_v43  ;;  %v2777_v43 = vld [vmem:[#allocation5 + $0x2f8] sm:$0xff] }
 0x217   : > { %3693 = vmatpush1.msk.msra.mxu0 %vm2110_vm0, %v6145_v62  ;;  %v6160_v62 = vpack.c.bf16 %v2777_v43, %v2775_v28  ;;  %v2780_v43 = vld [vmem:[#allocation5 + $0x310] sm:$0xff] }
 0x218   : > { %4774 = vmatprep.subr.bf16.mxu0 %v6147_v53 }
 0x282   : > { %v1677_v6 = vpop.f32.mrb[2].mxu0  ;;  %v2040_v25 = vpop.f32.mrb[2].mxu1 }
 0x283   : > { %v1679_v24 = vpop.f32.mrb[3].mxu0  ;;  %v2042_v63 = vpop.f32.mrb[3].mxu1 }
 0x284   : > { %v1684_v44 = vmax.f32 %v1677_v6, %v1679_v24  ;;  %v2047_v45 = vmax.f32 %v2040_v25, %v2042_v63  ;;  %v2774_v6 = vld [vmem:[#allocation5 + $0x2e0] sm:$0xff]  ;;  %v2776_v25 = vld [vmem:[#allocation5 + $0x2f0] sm:$0xff]  ;;  %v2781_v24 = vld [vmem:[#allocation5 + $0x318] sm:$0xff] }
 0x285   : > { %v6169_v63 = vpack.c.bf16 %v2776_v25, %v2774_v6  ;;  %v2789_v6 = vld [vmem:[#allocation5 + $0x358] sm:$0xff]  ;;  %v2786_v25 = vld [vmem:[#allocation5 + $0x340] sm:$0xff] }
 0x286   : > { %v2058_v57 = vmax.f32 %v1684_v44, %v2047_v45  ;;  %v2783_v44 = vld [vmem:[#allocation5 + $0x328] sm:$0xff]  ;;  %v2785_v45 = vld [vmem:[#allocation5 + $0x338] sm:$0xff] }
 0x288   : > { %v2059_v58 = vadd.f32 %v6045_v29, %v2058_v57  ;;  %v2779_v29 = vld [vmem:[#allocation5 + $0x308] sm:$0xff]  ;;  %v6181_v57 = vpack.c.bf16 %v2785_v45, %v2783_v44 }
 0x289   : > { %v6173_v28 = vpack.c.bf16 %v2781_v24, %v2779_v29  ;;  %v2788_v29 = vld [vmem:[#allocation5 + $0x350] sm:$0xff]  ;;  %v6637_v24 = vrot.slane %v6050_v22, 1 }
 0x28a   : > { %v6153_v12 = vmax.f32 %v2059_v58, 0.0  ;;  %v2782_v58 = vld [vmem:[#allocation5 + $0x320] sm:$0xff] }
 0x28c   : > { %3676 = vmatmul.mubr.msk.f32.vlgmr.msra.gmra.mrb[4].mxu1 %vm2106_vm1, %v6153_v12  ;;  %v2513_v53 = vrot.slane %v6153_v12, 1 }
 0x28d   : > { %4636 = vmatpush1.bf16.msra.mxu1 %v5987_v34  ;;  %2256 = vmatprep.mubr.f32.mxu1 %v6603_v0  ;;  %v2778_v34 = vld [vmem:[#allocation5 + $0x300] sm:$0xff] }
 0x28e   : > { %3694 = vmatmul.mubr.msk.f32.vlgmr.msra.gmra.mrb[4].mxu0 %vm2106_vm1, %v2513_v53  ;;  %4638 = vmatprep.subr.bf16.mxu1 %v5989_v52  ;;  %v6178_v52 = vpack.c.bf16 %v2780_v43, %v2778_v34 }
 0x28f   : > { %4776 = vmatpush1.bf16.msra.mxu0 %v6155_v49  ;;  %2862 = vmatprep.mubr.f32.mxu0 %v6603_v0 }
 0x290   : > { %4778 = vmatprep.subr.bf16.mxu0 %v6160_v62 }
 0x291   : > { %4640 = vmatpush1.bf16.msra.mxu1 %v6000_v23  ;;  %v6186_v23 = vpack.c.bf16 %v2784_v54, %v2782_v58  ;;  %v3045_v58 = vld [vmem:[#allocation7 + $0x50] sm:$0xff]  ;;  %v3046_v54 = vld [vmem:[#allocation7 + $0x58] sm:$0xff] }
 0x292   : > { %4642 = vmatprep.subr.bf16.mxu1 %v6003_v35  ;;  %v6189_v35 = vpack.c.bf16 %v2789_v6, %v2787_v55  ;;  %v4829_v6 = vpack.c.bf16 %v3046_v54, %v3045_v58  ;;  %v3305_v58 = vld [vmem:[#allocation7 + $0x180] sm:$0xff]  ;;  %v3306_v54 = vld [vmem:[#allocation7 + $0x188] sm:$0xff] }
 0x293   : > { %4780 = vmatpush1.bf16.msra.mxu0 %v6169_v63 }
 0x294   : > { %4782 = vmatprep.subr.bf16.mxu0 %v6173_v28 }
 0x295   : > { %4644 = vmatpush1.bf16.msra.mxu1 %v6013_v26  ;;  %v6194_v26 = vpack.c.bf16 %v2788_v29, %v2786_v25  ;;  %v3048_v25 = vld [vmem:[#allocation7 + $0x68] sm:$0xff] }
 0x296   : > { %4646 = vmatprep.subr.bf16.mxu1 %v6016_v33  ;;  %v6198_v33 = vld [vmem:[#allocation5 + $0x368] sm:$0xf] }
 0x297   : > { %4784 = vmatpush1.bf16.msra.mxu0 %v6178_v52 }
 0x298   : > { %4786 = vmatprep.subr.bf16.mxu0 %v6181_v57 }
 0x299   : > { %4648 = vmatpush1.bf16.msra.mxu1 %v6095_v31  ;;  %v2790_v31 = vld [vmem:[#allocation5 + $0x360] sm:$0xf] }
 0x29a   : > { %4650 = vmatprep.subr.bf16.mxu1 %v6108_v40  ;;  %v2691_v40 = vrot.slane %v6050_v22, 2  ;;  %v2966_v22 = vld [vmem:[#allocation7 + $0x30] sm:$0xff] }
 0x29b   : > { %4788 = vmatpush1.bf16.msra.mxu0 %v6186_v23 }
 0x29c   : > { %4790 = vmatprep.subr.bf16.mxu0 %v6189_v35 }
 0x29d   : > { %4652 = vmatpush1.bf16.msra.mxu1 %v6111_v9 }
 0x29e   : > { %3677 = vmatprep.subr.msk.mxu1 %vm2110_vm0, %v6121_v2  ;;  %v3386_v2 = vld [vmem:[%s6491_s7 + $0x20] sm:$0xff] }
 0x29f   : > { %4792 = vmatpush1.bf16.msra.mxu0 %v6194_v26 }
 0x2a0   : > { %3698 = vmatprep.subr.msk.mxu0 %vm2110_vm0, %v6198_v33 }
 0x2a1   : > { %3678 = vmatpush1.msk.msra.mxu1 %vm2110_vm0, %v6125_v19  ;;  %v3387_v19 = vld [vmem:[%s6491_s7 + $0x28] sm:$0xff] }
 0x2a2   : > { %3679 = vmatmul.mubr.msk.f32.vlgmr.msra.gmra.mrb[6].mxu1 %vm2106_vm1, %v6637_v24  ;;  %4674 = vmatprep.subr.bf16.mxu1 %v5974_v47  ;;  %v6638_v47 = vld [vmem:[#allocation18_spill] sm:$0xff]  ;;  %v3052_v24 = vld [vmem:[#allocation7 + $0x88] sm:$0xff] }
 0x2a3   : > { %4676 = vmatpush1.bf16.msra.mxu1 %v5981_v60  ;;  %3699 = vmatpush1.msk.msra.mxu0 %vm2110_vm0, %v2790_v31  ;;  %v6639_v60 = vld [vmem:[#allocation19_spill] sm:$0xff] }
 0x2a4   : > { %3700 = vmatmul.mubr.msk.f32.vlgmr.msra.gmra.mrb[4].mxu0 %vm2106_vm1, %v2691_v40  ;;  %4678 = vmatprep.subr.bf16.mxu1 %v5984_v61  ;;  %v6640_v61 = vld [vmem:[#allocation20_spill] sm:$0xff] }
 0x2a5   : > { %2406 = vmatprep.mubr.f32.mxu1 %v6603_v0  ;;  %3820 = vmatprep.mubr.msk.f32.mxu0 %vm5223_vm2, %v6603_v0 }
 0x2a7   : > { %4680 = vmatpush1.bf16.msra.mxu1 %v5993_v48  ;;  %v2869_v48 = vrot.slane %v6153_v12, 2 }
 0x2a8   : > { %4682 = vmatprep.subr.bf16.mxu1 %v5997_v3  ;;  %v2960_v3 = vld [vmem:[#allocation7] sm:$0xff] }
 0x2ab   : > { %4684 = vmatpush1.bf16.msra.mxu1 %v6007_v14  ;;  %v2961_v14 = vld [vmem:[#allocation7 + $0x8] sm:$0xff] }
 0x2ac   : > { %4686 = vmatprep.subr.bf16.mxu1 %v6010_v15  ;;  %v2962_v15 = vld [vmem:[#allocation7 + $0x10] sm:$0xff] }
 0x2af   : > { %4688 = vmatpush1.bf16.msra.mxu1 %v6019_v38  ;;  %v5222_v38 = vmov 0.0|0.0  }
 0x2b0   : > { %4690 = vmatprep.subr.bf16.mxu1 %v6022_v39  ;;  %4813 = vmatprep.subr.bf16.mxu0 %v5222_v38  ;;  %v4814_v39 = vpack.c.bf16 %v2961_v14, %v2960_v3  ;;  %v3129_v3 = vld [vmem:[#allocation7 + $0xa0] sm:$0xff]  ;;  %v3130_v14 = vld [vmem:[#allocation7 + $0xa8] sm:$0xff] }
 0x2b2   : > { %4815 = vmatpush3.bf16.msra.mxu0 %v4814_v39 }
 0x2b3   : > { %4692 = vmatpush1.bf16.msra.mxu1 %v6027_v50  ;;  %v2963_v50 = vld [vmem:[#allocation7 + $0x18] sm:$0xff]  ;;  %4816 = vmatprep.subr.bf16.mxu0 %v5222_v38 }
 0x2b4   : > { %3683 = vmatprep.subr.msk.mxu1 %vm2110_vm0, %v6030_v51  ;;  %v4817_v51 = vpack.c.bf16 %v2963_v50, %v2962_v15  ;;  %v4844_v15 = vpack.c.bf16 %v3130_v14, %v3129_v3  ;;  %v3131_v50 = vld [vmem:[#allocation7 + $0xb0] sm:$0xff]  ;;  %v3476_v3 = vld [vmem:[%s6493_s9 + $0x18] sm:$0xff] }
 0x2b6   : > { %4818 = vmatpush3.bf16.msra.mxu0 %v4817_v51  ;;  %v3132_v51 = vld [vmem:[#allocation7 + $0xb8] sm:$0xff] }
 0x2b7   : > { %3684 = vmatpush1.msk.msra.mxu1 %vm2110_vm0, %v6035_v59  ;;  %v2964_v59 = vld [vmem:[#allocation7 + $0x20] sm:$0xff]  ;;  %4819 = vmatprep.subr.bf16.mxu0 %v5222_v38 }
 0x2b8   : > { %3685 = vmatmul.mubr.msk.f32.vlgmr.msra.gmra.mrb[6].mxu1 %vm2106_vm1, %v6153_v12  ;;  %4714 = vmatprep.subr.bf16.mxu1 %v6037_v1  ;;  %v2965_v1 = vld [vmem:[#allocation7 + $0x28] sm:$0xff]  ;;  %v3391_v12 = vld [vmem:[%s6491_s7 + $0x48] sm:$0xff] }
 0x2b9   : > { %4716 = vmatpush1.bf16.msra.mxu1 %v6048_v17  ;;  %2580 = vmatprep.mubr.f32.mxu1 %v6603_v0  ;;  %v4820_v17 = vpack.c.bf16 %v2965_v1, %v2964_v59  ;;  %v4847_v59 = vpack.c.bf16 %v3132_v51, %v3131_v50  ;;  %v3133_v1 = vld [vmem:[#allocation7 + $0xc0] sm:$0xff] }
 0x2ba   : > { %4718 = vmatprep.subr.bf16.mxu1 %v6052_v56  ;;  %v2967_v56 = vld [vmem:[#allocation7 + $0x38] sm:$0xff]  ;;  %v3479_v51 = vld [vmem:[%s6493_s9 + $0x30] sm:$0xff] }
 0x2bb   : > { %4821 = vmatpush3.bf16.msra.mxu0 %v4820_v17  ;;  %v3134_v17 = vld [vmem:[#allocation7 + $0xc8] sm:$0xff] }
 0x2bc   : > { %4822 = vmatprep.subr.bf16.mxu0 %v5222_v38 }
 0x2bd   : > { %4720 = vmatpush1.bf16.msra.mxu1 %v6057_v13  ;;  %v4823_v13 = vpack.c.bf16 %v2967_v56, %v2966_v22  ;;  %v4850_v22 = vpack.c.bf16 %v3134_v17, %v3133_v1  ;;  %v3135_v56 = vld [vmem:[#allocation7 + $0xd0] sm:$0xff] }
 0x2be   : > { %4722 = vmatprep.subr.bf16.mxu1 %v6061_v30  ;;  %v2968_v30 = vld [vmem:[#allocation7 + $0x40] sm:$0xff]  ;;  %v3481_v17 = vld [vmem:[%s6493_s9 + $0x40] sm:$0xff] }
 0x2bf   : > { %4824 = vmatpush3.bf16.msra.mxu0 %v4823_v13  ;;  %v3136_v13 = vld [vmem:[#allocation7 + $0xd8] sm:$0xff] }
 0x2c0   : > { %4825 = vmatprep.subr.bf16.mxu0 %v5222_v38 }
 0x2c1   : > { %4724 = vmatpush1.bf16.msra.mxu1 %v6064_v7  ;;  %v2969_v7 = vld [vmem:[#allocation7 + $0x48] sm:$0xff] }
 0x2c2   : > { %4726 = vmatprep.subr.bf16.mxu1 %v6067_v41  ;;  %v4826_v41 = vpack.c.bf16 %v2969_v7, %v2968_v30  ;;  %v4853_v30 = vpack.c.bf16 %v3136_v13, %v3135_v56  ;;  %v3137_v7 = vld [vmem:[#allocation7 + $0xe0] sm:$0xff] }
 0x2c3   : > { %v3483_v13 = vld [vmem:[%s6493_s9 + $0x50] sm:$0xf] }
 0x2c4   : > { %4827 = vmatpush3.bf16.msra.mxu0 %v4826_v41  ;;  %v3138_v41 = vld [vmem:[#allocation7 + $0xe8] sm:$0xff] }
 0x2c5   : > { %4728 = vmatpush1.bf16.msra.mxu1 %v6070_v4  ;;  %4828 = vmatprep.subr.bf16.mxu0 %v5222_v38 }
 0x2c6   : > { %4730 = vmatprep.subr.bf16.mxu1 %v6073_v8 }
 0x2c9   : > { %4732 = vmatpush1.bf16.msra.mxu1 %v6076_v21 }
 0x2ca   : > { %3689 = vmatprep.subr.msk.mxu1 %vm2110_vm0, %v6079_v27 }
 0x2cd   : > { %3690 = vmatpush1.msk.msra.mxu1 %vm2110_vm0, %v6084_v10 }
 0x2ce   : > { %3691 = vmatmul.mubr.msk.f32.vlgmr.msra.gmra.mrb[6].mxu1 %vm2106_vm1, %v2513_v53  ;;  %4754 = vmatprep.subr.bf16.mxu1 %v6086_v11  ;;  %v3390_v53 = vld [vmem:[%s6491_s7 + $0x40] sm:$0xff] }
 0x2cf   : > { %4756 = vmatpush1.bf16.msra.mxu1 %v6088_v18  ;;  %2758 = vmatprep.mubr.f32.mxu1 %v6603_v0 }
 0x2d0   : > { %4758 = vmatprep.subr.bf16.mxu1 %v6091_v36  ;;  %v3382_v36 = vld [vmem:[%s6491_s7] sm:$0xff] }
 0x2d3   : > { %4760 = vmatpush1.bf16.msra.mxu1 %v6102_v42  ;;  %v3383_v42 = vld [vmem:[%s6491_s7 + $0x8] sm:$0xff] }
 0x2d4   : > { %4762 = vmatprep.subr.bf16.mxu1 %v6106_v16  ;;  %v3384_v16 = vld [vmem:[%s6491_s7 + $0x10] sm:$0xff]  ;;  %v4889_v9 = vpack.c.bf16 %v3383_v42, %v3382_v36  ;;  %v3217_v42 = vld [vmem:[#allocation7 + $0x110] sm:$0xff] }
 0x2d7   : > { %4764 = vmatpush1.bf16.msra.mxu1 %v6115_v20  ;;  %v3385_v20 = vld [vmem:[%s6491_s7 + $0x18] sm:$0xff] }
 0x2d8   : > { %4766 = vmatprep.subr.bf16.mxu1 %v6119_v32  ;;  %v4892_v32 = vpack.c.bf16 %v3385_v20, %v3384_v16  ;;  %v3218_v16 = vld [vmem:[#allocation7 + $0x118] sm:$0xff]  ;;  %v3219_v20 = vld [vmem:[#allocation7 + $0x120] sm:$0xff] }
 0x2db   : > { %4768 = vmatpush1.bf16.msra.mxu1 %v6128_v37  ;;  %v4895_v37 = vpack.c.bf16 %v3387_v19, %v3386_v2  ;;  %v3221_v19 = vld [vmem:[#allocation7 + $0x130] sm:$0xff] }
 0x2dc   : > { %4770 = vmatprep.subr.bf16.mxu1 %v6133_v46  ;;  %v3388_v46 = vld [vmem:[%s6491_s7 + $0x30] sm:$0xff] }
 0x2df   : > { %4772 = vmatpush1.bf16.msra.mxu1 %v6137_v5  ;;  %v3389_v5 = vld [vmem:[%s6491_s7 + $0x38] sm:$0xff] }
 0x2e0   : > { %3695 = vmatprep.subr.msk.mxu1 %vm2110_vm0, %v6638_v47 }
 0x2e3   : > { %3696 = vmatpush1.msk.msra.mxu1 %vm2110_vm0, %v6639_v60  ;;  %v3053_v60 = vld [vmem:[#allocation7 + $0x90] sm:$0xff] }
 0x2e4   : > { %3697 = vmatmul.mubr.msk.f32.vlgmr.msra.gmra.mrb[6].mxu1 %vm2106_vm1, %v2691_v40  ;;  %4794 = vmatprep.subr.bf16.mxu1 %v6640_v61  ;;  %v3051_v40 = vld [vmem:[#allocation7 + $0x80] sm:$0xff]  ;;  %v3054_v61 = vld [vmem:[#allocation7 + $0x98] sm:$0xff] }
 0x2e5   : > { %4796 = vmatpush1.bf16.msra.mxu1 %v6155_v49  ;;  %2936 = vmatprep.mubr.f32.mxu1 %v6603_v0  ;;  %v4901_v49 = vpack.c.bf16 %v3391_v12, %v3390_v53  ;;  %v4838_v47 = vpack.c.bf16 %v3052_v24, %v3051_v40 }
 0x2e6   : > { %4798 = vmatprep.subr.bf16.mxu1 %v6160_v62  ;;  %v4898_v62 = vpack.c.bf16 %v3389_v5, %v3388_v46  ;;  %v3297_v5 = vld [vmem:[#allocation7 + $0x140] sm:$0xff] }
 0x2e9   : > { %4800 = vmatpush1.bf16.msra.mxu1 %v6169_v63  ;;  %v3392_v63 = vld [vmem:[%s6491_s7 + $0x50] sm:$0xff] }
 0x2ea   : > { %4802 = vmatprep.subr.bf16.mxu1 %v6173_v28  ;;  %v3393_v28 = vld [vmem:[%s6491_s7 + $0x58] sm:$0xff] }
 0x2eb   : > { %v4904_v34 = vpack.c.bf16 %v3393_v28, %v3392_v63  ;;  %v3300_v63 = vld [vmem:[#allocation7 + $0x158] sm:$0xff] }
 0x2ed   : > { %4804 = vmatpush1.bf16.msra.mxu1 %v6178_v52  ;;  %v3704_v52 = vld [vmem:[%s6488_s4] ss:$0 sm:$0xff] }
 0x2ee   : > { %4806 = vmatprep.subr.bf16.mxu1 %v6181_v57 }
 0x2f1   : > { %4808 = vmatpush1.bf16.msra.mxu1 %v6186_v23 }
 0x2f2   : > { %4810 = vmatprep.subr.bf16.mxu1 %v6189_v35  ;;  %v3047_v35 = vld [vmem:[#allocation7 + $0x60] sm:$0xff] }
 0x2f3   : > { %v4832_v29 = vpack.c.bf16 %v3048_v25, %v3047_v35  ;;  %v3394_v35 = vld [vmem:[%s6491_s7 + $0x60] sm:$0xff]  ;;  %v3395_v25 = vld [vmem:[%s6491_s7 + $0x68] sm:$0xff] }
 0x2f5   : > { %4812 = vmatpush1.bf16.msra.mxu1 %v6194_v26  ;;  %v3049_v26 = vld [vmem:[#allocation7 + $0x70] sm:$0xff] }
 0x2f6   : > { %3701 = vmatprep.subr.msk.mxu1 %vm2110_vm0, %v6198_v33  ;;  %v3050_v33 = vld [vmem:[#allocation7 + $0x78] sm:$0xff] }
 0x2f9   : > { %3702 = vmatpush1.msk.msra.mxu1 %vm2110_vm0, %v2790_v31  ;;  %v4835_v31 = vpack.c.bf16 %v3050_v33, %v3049_v26  ;;  %v3396_v26 = vld [vmem:[%s6491_s7 + $0x70] sm:$0xff]  ;;  %v3473_v33 = vld [vmem:[%s6493_s9] sm:$0xff] }
 0x2fa   : > { %3703 = vmatmul.mubr.msk.f32.vlgmr.msra.gmra.mrb[6].mxu1 %vm2106_vm1, %v2869_v48  ;;  %4888 = vmatprep.subr.bf16.mxu1 %v5222_v38  ;;  %v4841_v48 = vpack.c.bf16 %v3054_v61, %v3053_v60 }
 0x2fb   : > { %3945 = vmatprep.mubr.msk.f32.mxu1 %vm5223_vm2, %v6603_v0  ;;  %4890 = vmatpush3.bf16.msra.mxu1 %v4889_v9  ;;  %v4865_v9 = vpack.c.bf16 %v3218_v16, %v3217_v42 }
 0x2fc   : > { %4891 = vmatprep.subr.bf16.mxu1 %v5222_v38 }
 0x2ff   : > { %4893 = vmatpush3.bf16.msra.mxu1 %v4892_v32  ;;  %v3220_v32 = vld [vmem:[#allocation7 + $0x128] sm:$0xff] }
 0x300   : > { %4894 = vmatprep.subr.bf16.mxu1 %v5222_v38  ;;  %v4868_v2 = vpack.c.bf16 %v3220_v32, %v3219_v20 }
 0x303   : > { %4896 = vmatpush3.bf16.msra.mxu1 %v4895_v37  ;;  %v3222_v37 = vld [vmem:[#allocation7 + $0x138] sm:$0xff] }
 0x304   : > { %4897 = vmatprep.subr.bf16.mxu1 %v5222_v38  ;;  %v4871_v46 = vpack.c.bf16 %v3222_v37, %v3221_v19 }
 0x307   : > { %4899 = vmatpush3.bf16.msra.mxu1 %v4898_v62  ;;  %v3298_v62 = vld [vmem:[#allocation7 + $0x148] sm:$0xff] }
 0x308   : > { %4900 = vmatprep.subr.bf16.mxu1 %v5222_v38  ;;  %v4874_v53 = vpack.c.bf16 %v3298_v62, %v3297_v5 }
 0x30b   : > { %4902 = vmatpush3.bf16.msra.mxu1 %v4901_v49  ;;  %v3299_v49 = vld [vmem:[#allocation7 + $0x150] sm:$0xff] }
 0x30c   : > { %4903 = vmatprep.subr.bf16.mxu1 %v5222_v38  ;;  %v4877_v28 = vpack.c.bf16 %v3300_v63, %v3299_v49 }
 0x30f   : > { %4905 = vmatpush3.bf16.msra.mxu1 %v4904_v34  ;;  %v3301_v34 = vld [vmem:[#allocation7 + $0x160] sm:$0xff] }
 0x310   : > { %4906 = vmatprep.subr.bf16.mxu1 %v5222_v38 }
 0x35f   : > { %v2183_v4 = vpop.f32.mrb[4].mxu1 }
 0x360   : > { %v2185_v8 = vpop.f32.mrb[5].mxu1 }
 0x377   : > { %v2864_v21 = vpop.f32.mrb[4].mxu0 }
 0x378   : > { %v4924_v27 = vadd.f32 %v2864_v21, %v2183_v4  ;;  %v2866_v10 = vpop.f32.mrb[5].mxu0  ;;  %v4856_v4 = vpack.c.bf16 %v3138_v41, %v3137_v7  ;;  %v3214_v21 = vld [vmem:[#allocation7 + $0xf8] sm:$0xff] }
 0x379   : > { %v4925_v11 = vadd.f32 %v2866_v10, %v2185_v8  ;;  %v3213_v8 = vld [vmem:[#allocation7 + $0xf0] sm:$0xff] }
 0x37b   : > { %v2947_v18 = vmax.f32 %v4924_v27, %v4925_v11  ;;  %v4859_v27 = vpack.c.bf16 %v3214_v21, %v3213_v8  ;;  %v3215_v11 = vld [vmem:[#allocation7 + $0x100] sm:$0xff] }
 0x3cd   : > { %v2938_v43 = vpop.f32.mrb[6].mxu1 }
 0x3ce   : > { %v2940_v44 = vpop.f32.mrb[7].mxu1 }
 0x3cf   : > { %v2948_v45 = vmax.f32 %v2938_v43, %v2940_v44  ;;  %v3302_v43 = vld [vmem:[#allocation7 + $0x168] sm:$0xff] }
 0x3d0   : > { %v4880_v44 = vpack.c.bf16 %v3302_v43, %v3301_v34 }
 0x3d1   : > { %v2949_v57 = vmax.f32 %v2947_v18, %v2948_v45  ;;  %v3216_v18 = vld [vmem:[#allocation7 + $0x108] sm:$0xff]  ;;  %v3303_v45 = vld [vmem:[#allocation7 + $0x170] sm:$0xff] }
 0x3d2   : > { %v4862_v36 = vpack.c.bf16 %v3216_v18, %v3215_v11 }
 0x3d3   : > { %v2957_v55 = vadd.f32 %v3704_v52, %v2949_v57  ;;  %v3304_v52 = vld [vmem:[#allocation7 + $0x178] sm:$0xff] }
 0x3d4   : > { %v4883_v57 = vpack.c.bf16 %v3304_v52, %v3303_v45 }
 0x3d5   : > { %v6336_v23 = vmax.f32 %v2957_v55, 0.0  ;;  %v4886_v55 = vpack.c.bf16 %v3306_v54, %v3305_v58 }
 0x3d7   : > { %3821 = vmatmul.mubr.msk.f32.vlgmr.msra.gmra.mrb[6].mxu0 %vm2970_vm3, %v6336_v23  ;;  %v3055_v39 = vrot.slane %v6336_v23, 1  ;;  %v3139_v10 = vrot.slane %v6336_v23, 2  ;;  %v3223_v12 = vrot.slane %v6336_v23, 3 }
 0x3d8   : > { %4830 = vmatpush3.bf16.msra.mxu0 %v4829_v6  ;;  %3843 = vmatprep.mubr.msk.f32.mxu0 %vm5223_vm2, %v6603_v0  ;;  %v3307_v6 = vrot.slane %v6336_v23, 4  ;;  %v2959_v23 = vld [vmem:[%s6490_s6] sm:$0x1] }
 0x3d9   : > { %4831 = vmatprep.subr.bf16.mxu0 %v5222_v38 }
 0x3dc   : > { %4833 = vmatpush3.bf16.msra.mxu0 %v4832_v29  ;;  %v4907_v29 = vpack.c.bf16 %v3395_v25, %v3394_v35 }
 0x3dd   : > { %4834 = vmatprep.subr.bf16.mxu0 %v5222_v38 }
 0x3de   : > { %4908 = vmatpush3.bf16.msra.mxu1 %v4907_v29 }
 0x3df   : > { %3943 = vmatprep.subr.mxu1 %v6603_v0 }
 0x3e0   : > { %4836 = vmatpush3.bf16.msra.mxu0 %v4835_v31  ;;  %v3474_v31 = vld [vmem:[%s6493_s9 + $0x8] sm:$0xff] }
 0x3e1   : > { %4837 = vmatprep.subr.bf16.mxu0 %v5222_v38  ;;  %v4910_v60 = vpack.c.bf16 %v3474_v31, %v3473_v33 }
 0x3e2   : > { %3944 = vmatpush3.msra.mxu1 %v3396_v26 }
 0x3e3   : > { %4909 = vmatprep.subr.bf16.mxu1 %v5222_v38 }
 0x3e4   : > { %4839 = vmatpush3.bf16.msra.mxu0 %v4838_v47 }
 0x3e5   : > { %4840 = vmatprep.subr.bf16.mxu0 %v5222_v38 }
 0x3e8   : > { %4842 = vmatpush3.bf16.msra.mxu0 %v4841_v48  ;;  %v3475_v48 = vld [vmem:[%s6493_s9 + $0x10] sm:$0xff] }
 0x3e9   : > { %4843 = vmatprep.subr.bf16.mxu0 %v5222_v38  ;;  %v4913_v14 = vpack.c.bf16 %v3476_v3, %v3475_v48 }
 0x3eb   : > { %3844 = vmatmul.mubr.msk.f32.vlgmr.msra.gmra.mrb[6].mxu0 %vm2970_vm3, %v3055_v39  ;;  %v3478_v39 = vld [vmem:[%s6493_s9 + $0x28] sm:$0xff] }
 0x3ec   : > { %4845 = vmatpush3.bf16.msra.mxu0 %v4844_v15  ;;  %3866 = vmatprep.mubr.msk.f32.mxu0 %vm5223_vm2, %v6603_v0  ;;  %v3477_v15 = vld [vmem:[%s6493_s9 + $0x20] sm:$0xff] }
 0x3ed   : > { %4846 = vmatprep.subr.bf16.mxu0 %v5222_v38  ;;  %v4916_v50 = vpack.c.bf16 %v3478_v39, %v3477_v15 }
 0x3f0   : > { %4848 = vmatpush3.bf16.msra.mxu0 %v4847_v59  ;;  %v3480_v59 = vld [vmem:[%s6493_s9 + $0x38] sm:$0xff] }
 0x3f1   : > { %4849 = vmatprep.subr.bf16.mxu0 %v5222_v38  ;;  %v4919_v1 = vpack.c.bf16 %v3480_v59, %v3479_v51 }
 0x3f4   : > { %4851 = vmatpush3.bf16.msra.mxu0 %v4850_v22  ;;  %v3482_v22 = vld [vmem:[%s6493_s9 + $0x48] sm:$0xff] }
 0x3f5   : > { %4852 = vmatprep.subr.bf16.mxu0 %v5222_v38  ;;  %v4922_v56 = vpack.c.bf16 %v3482_v22, %v3481_v17 }
 0x3f8   : > { %4854 = vmatpush3.bf16.msra.mxu0 %v4853_v30 }
 0x3f9   : > { %4855 = vmatprep.subr.bf16.mxu0 %v5222_v38 }
 0x3fc   : > { %4857 = vmatpush3.bf16.msra.mxu0 %v4856_v4 }
 0x3fd   : > { %4858 = vmatprep.subr.bf16.mxu0 %v5222_v38 }
 0x3ff   : > { %3867 = vmatmul.mubr.msk.f32.vlgmr.msra.gmra.mrb[6].mxu0 %vm2970_vm3, %v3139_v10 }
 0x400   : > { %4860 = vmatpush3.bf16.msra.mxu0 %v4859_v27  ;;  %3889 = vmatprep.mubr.msk.f32.mxu0 %vm5223_vm2, %v6603_v0 }
 0x401   : > { %4861 = vmatprep.subr.bf16.mxu0 %v5222_v38 }
 0x404   : > { %4863 = vmatpush3.bf16.msra.mxu0 %v4862_v36 }
 0x405   : > { %4864 = vmatprep.subr.bf16.mxu0 %v5222_v38 }
 0x408   : > { %4866 = vmatpush3.bf16.msra.mxu0 %v4865_v9 }
 0x409   : > { %4867 = vmatprep.subr.bf16.mxu0 %v5222_v38 }
 0x40c   : > { %4869 = vmatpush3.bf16.msra.mxu0 %v4868_v2 }
 0x40d   : > { %4870 = vmatprep.subr.bf16.mxu0 %v5222_v38 }
 0x410   : > { %4872 = vmatpush3.bf16.msra.mxu0 %v4871_v46 }
 0x411   : > { %4873 = vmatprep.subr.bf16.mxu0 %v5222_v38 }
 0x413   : > { %3890 = vmatmul.mubr.msk.f32.vlgmr.msra.gmra.mrb[6].mxu0 %vm2970_vm3, %v3223_v12 }
 0x414   : > { %4875 = vmatpush3.bf16.msra.mxu0 %v4874_v53  ;;  %3912 = vmatprep.mubr.msk.f32.mxu0 %vm5223_vm2, %v6603_v0 }
 0x415   : > { %4876 = vmatprep.subr.bf16.mxu0 %v5222_v38 }
 0x418   : > { %4878 = vmatpush3.bf16.msra.mxu0 %v4877_v28 }
 0x419   : > { %4879 = vmatprep.subr.bf16.mxu0 %v5222_v38 }
 0x41c   : > { %4881 = vmatpush3.bf16.msra.mxu0 %v4880_v44 }
 0x41d   : > { %4882 = vmatprep.subr.bf16.mxu0 %v5222_v38 }
 0x420   : > { %4884 = vmatpush3.bf16.msra.mxu0 %v4883_v57 }
 0x421   : > { %4885 = vmatprep.subr.bf16.mxu0 %v5222_v38 }
 0x424   : > { %4887 = vmatpush3.bf16.msra.mxu0 %v4886_v55 }
 0x427   : > { %3913 = vmatmul.mubr.msk.f32.vlgmr.msra.gmra.mrb[6].mxu0 %vm2970_vm3, %v3307_v6 }
 0x4fa   : > { %v3376_v40 = vpop.f32.mrb[6].mxu0 }
 0x4fb   : > { %v4926_v24 = vadd.f32 %v3376_v40, %v2959_v23  ;;  %v3914_v47 = vpop.f32.mrb[7].mxu0 }
 0x4fd   : > { %v3381_v61 = vmax.f32 %v4926_v24, 0.0 }
 0x4ff   : > { %3946 = vmatmul.mubr.msk.f32.vlgmr.msra.gmra.mrb[8].mxu1 %vm3398_vm4, %v3381_v61 }
 0x500   : > { %4911 = vmatpush3.bf16.msra.mxu1 %v4910_v60  ;;  %3970 = vmatprep.mubr.msk.f32.mxu1 %vm5223_vm2, %v6603_v0 }
 0x501   : > { %4912 = vmatprep.subr.bf16.mxu1 %v5222_v38 }
 0x504   : > { %4914 = vmatpush3.bf16.msra.mxu1 %v4913_v14 }
 0x505   : > { %4915 = vmatprep.subr.bf16.mxu1 %v5222_v38 }
 0x508   : > { %4917 = vmatpush3.bf16.msra.mxu1 %v4916_v50 }
 0x509   : > { %4918 = vmatprep.subr.bf16.mxu1 %v5222_v38 }
 0x50c   : > { %4920 = vmatpush3.bf16.msra.mxu1 %v4919_v1 }
 0x50d   : > { %4921 = vmatprep.subr.bf16.mxu1 %v5222_v38  ;;  %v3397_v38 = vld [vmem:[%s6492_s8] sm:$0x1] }
 0x510   : > { %4923 = vmatpush3.bf16.msra.mxu1 %v4922_v56 }
 0x511   : > { %3968 = vmatprep.subr.mxu1 %v6603_v0  ;;  %v3484_v0 = vld [vmem:[%s6494_s10] sm:$0x1] }
 0x514   : > { %3969 = vmatpush3.msk.msra.mxu1 %vm2110_vm0, %v3483_v13 }
 0x5d2   : > { %v3468_v30 = vpop.f32.mrb[8].mxu1 }
 0x5d3   : > { %v3469_v7 = vadd.f32 %v3468_v30, %v3397_v38  ;;  %v3947_v41 = vpop.f32.mrb[9].mxu1 }
 0x5d5   : > { %v3472_v4 = vmax.f32 %v3469_v7, 0.0 }
 0x5d7   : > { %3971 = vmatmul.mubr.msk.f32.vlgmr.msra.gmra.mrb[10].mxu1 %vm2106_vm1, %v3472_v4 }
 0x6aa   : > { %v3557_v8 = vpop.f32.mrb[10].mxu1 }
 0x6ab   : > { %v3558_v21 = vadd.f32 %v3557_v8, %v3484_v0  ;;  %v3972_v27 = vpop.f32.mrb[11].mxu1 }
 0x6ad   : > { %3561 = vst [vmem:[%s422_s29] sm:$0x1] %v3558_v21 }
 0x6ae   : > { %5155 = shalt.err (!%p5152_p9)
}
 0x6af   : > { %s5156_s12 = scalar_lea.hbm %s6442_s25, 16  ;;  %s5160_s26 = scalar_lea.hbm %s6642_s28, 32 }
 0x6b0   : > { %p5157_p2 = scmp.ne.s32.totalorder %s6442_s25, %s5156_s12  ;;  %p5161_p5 = scmp.lt.u32.totalorder %s6442_s25, %s6642_s28 }
 0x6b1   : > { %p5162_p10 = scmp.lt.u32.totalorder %s5160_s26, %s5156_s12  ;;  %p5164_p4 = scmp.lt.u32.totalorder %s5156_s12, %s6442_s25 }
 0x6b2   : > { %p5158_p3 = pnand %p5157_p2, %p6643_p7 }
 0x6b3   : > { %p5163_p12 = por %p5162_p10, %p5161_p5 }
 0x6b4   : > { %p5159_p0 = pneg %p5158_p3 }
 0x6b5   : > { %p5165_p8 = por %p5164_p4, %p5163_p12 }
 0x6b7   : > { %p5166_p11 = pnand %p5165_p8, %p5159_p0 }
 0x6b9   : > { %5169 = shalt.err (!%p5166_p11)
}
 0x6ba   : > { %4993 = dma.vmem_to_hbm [thread:$0]  (%p6643_p7), %s6444_s13, 16, %s6442_s25, %s3563_s30  }
 0x6bb PF: > { %s6644_s29 = sld [smem:[#allocation14_spill]]  ;;  %s6645_s22 = sld [smem:[#allocation12_spill]] }
 0x6bc   : > { %s6646_s17 = sld [smem:[#allocation17_spill]] }
 0x6c1   : > { %p5015_p13 = scmp.ge.s32.totalorder %s6644_s29, 2  ;;  %s3587_s20 = sand.u32 1, %s6645_s22  }
 0x6c2   : > { %p6647_p1 = scmp.ne.s32.totalorder %s6646_s17, 0  ;;  %s3588_s14 = scalar_lea.sflag [#allocation4], %s3587_s20 }
 0x6c4   : > { %p5006_p6 = pnand %p5015_p13, %p6647_p1 }
 0x6c6   : > { %5195 = dma.done.wait (!%p5006_p6), %s3588_s14, 16  }
 0x6c7   : > { %5197 = vsyncadd (!%p5006_p6), %s3588_s14, 4294967280  ;;  %s6648_s20 = sld [smem:[#allocation15_spill]]  ;;  %s6649_s21 = sld [smem:[#allocation13_spill]] }
 0x6c8   : > { %s6650_s19 = sld [smem:[#allocation16_spill]]  ;;  %s6651_s17 = smov %s5204_s18 }
 0x6cd   : > { %p23_p9 = scmp.ge.s32.totalorder %s6648_s20, 4   ;;  %s6652_s18 = smov %s6649_s21 }
 0x6cf   :  { %25 = sbr.rel (!%p23_p9) target bundleno = 7 (0x7), region = 120 }
 0x6d6   :  { %3592 = vsyncpa [#allocation3], 1 }
 0x6d7   :  { %3594 = vsyncpa [#allocation3 + $0x1], 1 }
 0x6d8   :  { %3595 = vsyncpa [#allocation6], 1 }
 0x6d9   :  { %3596 = vsyncpa [#allocation4], 1 }
 0x6da   :  { %3598 = vsyncpa [#allocation4 + $0x1], 1 }

</bundles_post_ra>
